<compile_context>
chip_gen: v5e
topology: v5e:2x2
jax: 0.10.0
libtpu: 0.0.40
codegen_flags: <defaults>
</compile_context>

<pallas_src>
import math

import jax
import jax.numpy as jnp
from jax.experimental import pallas as pl
from jax.experimental.pallas import tpu as pltpu  # noqa: F401  (TPU backend namespace)

# ----------------------- scaled-down "bert-base-cased" config -----------------
VOCAB = 64
HIDDEN = 32
N_LAYERS = 2
N_HEADS = 4
HEAD_DIM = HIDDEN // N_HEADS
INTERMEDIATE = 64
MAX_POS = 16
SEQ = 8
BATCH = 2
OUT_DIM = 1
LN_EPS = 1e-12
BN_EPS = 1e-5

TOTAL_BATCH = 2 * BATCH            # twin inputs stacked along batch
TOTAL_TOKENS = TOTAL_BATCH * SEQ   # rows of the activation slab


# =============================== fused Pallas kernel ===========================
def _model_kernel(emb_ref, bias_ref, clssel_ref, eg_ref, eb_ref,
                  wqkv_ref, bqkv_ref, wo_ref, bo_ref, ln1g_ref, ln1b_ref,
                  w1_ref, b1_ref, w2_ref, b2_ref, ln2g_ref, ln2b_ref,
                  poolw_ref, poolb_ref, bng_ref, bnb_ref, bnm_ref, bnv_ref,
                  fcw_ref, fcb_ref, o_ref):
    f32 = jnp.float32

    def layernorm(y, g, b):
        mu = jnp.mean(y, axis=-1, keepdims=True)
        var = jnp.mean((y - mu) * (y - mu), axis=-1, keepdims=True)
        return (y - mu) * jax.lax.rsqrt(var + LN_EPS) * g + b

    def gelu(y):
        # TODO(synk): HF bert-base-cased uses exact erf GELU; tanh approximation used here.
        return 0.5 * y * (1.0 + jnp.tanh(0.7978845608028654 *
                                         (y + 0.044715 * (y * y * y))))

    # ---- embeddings LayerNorm (no residual, no zero-buffer) ----
    x = layernorm(emb_ref[...], eg_ref[...], eb_ref[...])           # (2B*S, H)
    bias = bias_ref[...]                                            # (2B*S, 2B*S)
    scale = 1.0 / math.sqrt(HEAD_DIM)

    # ---- transformer layers, statically unrolled, all weights VMEM-resident ----
    for l in range(N_LAYERS):
        # fused QKV projection: one (2B*S, H) x (H, 3H) MXU push
        qkv = jnp.dot(x, wqkv_ref[l], preferred_element_type=f32) + bqkv_ref[l]
        wo_l = wo_ref[l]                                            # (H, H)
        attn = jnp.zeros((TOTAL_TOKENS, HIDDEN), f32)
        for h in range(N_HEADS):                                    # unrolled head loop
            lo = h * HEAD_DIM
            qh = qkv[:, lo:lo + HEAD_DIM]                           # (2B*S, D)
            kh = qkv[:, HIDDEN + lo:HIDDEN + lo + HEAD_DIM]
            vh = qkv[:, 2 * HIDDEN + lo:2 * HIDDEN + lo + HEAD_DIM]
            # scores over ALL tokens; block-diagonal additive mask keeps attention
            # strictly within each (batch, twin) sequence and masks padded keys.
            s = jax.lax.dot_general(qh, kh, (((1,), (1,)), ((), ())),
                                    preferred_element_type=f32) * scale + bias
            s = s - jnp.max(s, axis=-1, keepdims=True)
            p = jnp.exp(s)
            p = p * pl.reciprocal(jnp.sum(p, axis=-1, keepdims=True), approx=True)
            ctx = jnp.dot(p, vh, preferred_element_type=f32)        # (2B*S, D)
            # fold the output projection per head (sublane-aligned rows of W_O),
            # avoiding an explicit head concat.
            attn = attn + jnp.dot(ctx, wo_l[lo:lo + HEAD_DIM, :],
                                  preferred_element_type=f32)
        attn = attn + bo_ref[l]
        x = layernorm(attn + x, ln1g_ref[l], ln1b_ref[l])
        hmid = gelu(jnp.dot(x, w1_ref[l], preferred_element_type=f32) + b1_ref[l])
        ffn = jnp.dot(hmid, w2_ref[l], preferred_element_type=f32) + b2_ref[l]
        x = layernorm(ffn + x, ln2g_ref[l], ln2b_ref[l])

    # ---- pooler: gather CLS rows via one-hot selector matmul (no relayout) ----
    cls = jnp.dot(clssel_ref[...], x, preferred_element_type=f32)   # (2B, H)
    pooled = jnp.tanh(jnp.dot(cls, poolw_ref[...], preferred_element_type=f32)
                      + poolb_ref[...])                             # (2B, H)

    # ---- twin head: BatchNorm1d(eval) -> ReLU -> (Dropout=identity) -> Linear ----
    bng = bng_ref[...]; bnb = bnb_ref[...]
    bnm = bnm_ref[...]; bnv = bnv_ref[...]
    fcw = fcw_ref[...]                                              # (OUT_DIM, 2H)

    def bn_relu(z, a, b):
        zn = (z - bnm[:, a:b]) * jax.lax.rsqrt(bnv[:, a:b] + BN_EPS)
        return jnp.maximum(zn * bng[:, a:b] + bnb[:, a:b], 0.0)

    # concat(out1, out2) along features == apply first/second half of BN & W
    # to the twin-1 / twin-2 pooled halves — no in-kernel concatenate needed.
    z1 = bn_relu(pooled[:BATCH], 0, HIDDEN)                         # (B, H)
    z2 = bn_relu(pooled[BATCH:], HIDDEN, 2 * HIDDEN)                # (B, H)
    # TODO(synk): Dropout(0.5) / training-mode BatchNorm batch stats omitted — inference semantics.
    if OUT_DIM == 1:
        # width-1 output: VPU multiply + lane reduction instead of an MXU push.
        out = (jnp.sum(z1 * fcw[:, :HIDDEN], axis=-1, keepdims=True)
               + jnp.sum(z2 * fcw[:, HIDDEN:], axis=-1, keepdims=True)
               + fcb_ref[...])
    else:
        out = (jax.lax.dot_general(z1, fcw[:, :HIDDEN], (((1,), (1,)), ((), ())),
                                   preferred_element_type=f32)
               + jax.lax.dot_general(z2, fcw[:, HIDDEN:], (((1,), (1,)), ((), ())),
                                     preferred_element_type=f32)
               + fcb_ref[...])
    o_ref[...] = out


# ============================ parameters & forward =============================
def init_params(key):
    keys = iter(jax.random.split(key, 64))

    def nrm(shape, std=0.02):
        return jax.random.normal(next(keys), shape, jnp.float32) * std

    L = N_LAYERS
    return {
        "word_emb": nrm((VOCAB, HIDDEN)),
        "pos_emb": nrm((MAX_POS, HIDDEN)),
        "type_emb": nrm((2, HIDDEN)),
        "emb_ln_g": jnp.ones((1, HIDDEN), jnp.float32),
        "emb_ln_b": jnp.zeros((1, HIDDEN), jnp.float32),
        # per-layer weights stacked along a leading layer axis
        "wqkv": nrm((L, HIDDEN, 3 * HIDDEN)),                 # wq|wk|wv fused
        "bqkv": jnp.zeros((L, 1, 3 * HIDDEN), jnp.float32),
        "wo": nrm((L, HIDDEN, HIDDEN)),
        "bo": jnp.zeros((L, 1, HIDDEN), jnp.float32),
        "ln1_g": jnp.ones((L, 1, HIDDEN), jnp.float32),
        "ln1_b": jnp.zeros((L, 1, HIDDEN), jnp.float32),
        "w1": nrm((L, HIDDEN, INTERMEDIATE)),
        "b1": jnp.zeros((L, 1, INTERMEDIATE), jnp.float32),
        "w2": nrm((L, INTERMEDIATE, HIDDEN)),
        "b2": jnp.zeros((L, 1, HIDDEN), jnp.float32),
        "ln2_g": jnp.ones((L, 1, HIDDEN), jnp.float32),
        "ln2_b": jnp.zeros((L, 1, HIDDEN), jnp.float32),
        "pool_w": nrm((HIDDEN, HIDDEN)),
        "pool_b": jnp.zeros((1, HIDDEN), jnp.float32),
        # fc head: BatchNorm1d(2*HIDDEN) running stats + Linear(2*HIDDEN, OUT_DIM)
        "bn_g": jnp.ones((1, 2 * HIDDEN), jnp.float32),
        "bn_b": jnp.zeros((1, 2 * HIDDEN), jnp.float32),
        "bn_m": jnp.zeros((1, 2 * HIDDEN), jnp.float32),
        "bn_v": jnp.ones((1, 2 * HIDDEN), jnp.float32),
        "fc_w": nrm((OUT_DIM, 2 * HIDDEN)),                   # PyTorch (out, in) layout
        "fc_b": jnp.zeros((1, OUT_DIM), jnp.float32),
    }


@jax.jit
def text_twin_forward(params, input_ids1, attention_mask1, input_ids2, attention_mask2):
    # ---- stack the twins along batch: one shared-weight encoder pass ----
    ids = jnp.concatenate([input_ids1, input_ids2], axis=0)          # (2B, S)
    amask = jnp.concatenate([attention_mask1, attention_mask2], axis=0)
    tb, s = ids.shape

    # ---- embedding lookups (gather = glue JAX) ----
    we = jnp.take(params["word_emb"], ids, axis=0)                   # (2B,S,H)
    pe = params["pos_emb"][:s][None, :, :]
    te = params["type_emb"][0][None, None, :]                        # token_type_ids == 0
    emb = (we + pe + te).reshape(tb * s, HIDDEN).astype(jnp.float32)

    # ---- additive attention bias over the flattened token axis:
    #      0 where (same sequence AND key not padded), else -10000 (BERT convention)
    key_ok = amask.astype(jnp.float32).reshape(tb * s)
    row_b = jnp.arange(tb * s, dtype=jnp.int32) // s
    same = (row_b[:, None] == row_b[None, :]).astype(jnp.float32)
    bias = (same * key_ok[None, :] - 1.0) * 10000.0                  # (2B*S, 2B*S)

    # ---- one-hot selector that picks each sequence's CLS row ----
    cls_sel = (jnp.arange(tb, dtype=jnp.int32)[:, None] * s
               == jnp.arange(tb * s, dtype=jnp.int32)[None, :]).astype(jnp.float32)

    # ---- single fused pallas_call for the whole forward (everything VMEM-resident) ----
    return pl.pallas_call(
        _model_kernel,
        out_shape=jax.ShapeDtypeStruct((BATCH, OUT_DIM), jnp.float32),
    )(emb, bias, cls_sel,
      params["emb_ln_g"], params["emb_ln_b"],
      params["wqkv"], params["bqkv"], params["wo"], params["bo"],
      params["ln1_g"], params["ln1_b"], params["w1"], params["b1"],
      params["w2"], params["b2"], params["ln2_g"], params["ln2_b"],
      params["pool_w"], params["pool_b"],
      params["bn_g"], params["bn_b"], params["bn_m"], params["bn_v"],
      params["fc_w"], params["fc_b"])


# ==================================== main =====================================
if __name__ == "__main__":
    key = jax.random.PRNGKey(0)
    kp, k1, k2 = jax.random.split(key, 3)
    params = init_params(kp)

    input_ids1 = jax.random.randint(k1, (BATCH, SEQ), 0, VOCAB, dtype=jnp.int32)
    input_ids2 = jax.random.randint(k2, (BATCH, SEQ), 0, VOCAB, dtype=jnp.int32)
    attention_mask1 = jnp.ones((BATCH, SEQ), jnp.int32)
    attention_mask2 = jnp.array([[1] * SEQ, [1] * (SEQ - 2) + [0, 0]], jnp.int32)

    out = text_twin_forward(params, input_ids1, attention_mask1,
                            input_ids2, attention_mask2)
    jax.block_until_ready(out)
    assert out.shape == (BATCH, OUT_DIM) and out.dtype == jnp.float32
    print("KERNEL_OK")
</pallas_src>

<mosaic_0001>
module attributes {stable_mosaic.version = 11 : i64} {
  func.func @_model_kernel(%arg0: memref<32x32xf32, #tpu.memory_space<vmem>>, %arg1: memref<32x32xf32, #tpu.memory_space<vmem>>, %arg2: memref<4x32xf32, #tpu.memory_space<vmem>>, %arg3: memref<1x32xf32, #tpu.memory_space<vmem>>, %arg4: memref<1x32xf32, #tpu.memory_space<vmem>>, %arg5: memref<2x32x96xf32, #tpu.memory_space<vmem>>, %arg6: memref<2x1x96xf32, #tpu.memory_space<vmem>>, %arg7: memref<2x32x32xf32, #tpu.memory_space<vmem>>, %arg8: memref<2x1x32xf32, #tpu.memory_space<vmem>>, %arg9: memref<2x1x32xf32, #tpu.memory_space<vmem>>, %arg10: memref<2x1x32xf32, #tpu.memory_space<vmem>>, %arg11: memref<2x32x64xf32, #tpu.memory_space<vmem>>, %arg12: memref<2x1x64xf32, #tpu.memory_space<vmem>>, %arg13: memref<2x64x32xf32, #tpu.memory_space<vmem>>, %arg14: memref<2x1x32xf32, #tpu.memory_space<vmem>>, %arg15: memref<2x1x32xf32, #tpu.memory_space<vmem>>, %arg16: memref<2x1x32xf32, #tpu.memory_space<vmem>>, %arg17: memref<32x32xf32, #tpu.memory_space<vmem>>, %arg18: memref<1x32xf32, #tpu.memory_space<vmem>>, %arg19: memref<1x64xf32, #tpu.memory_space<vmem>>, %arg20: memref<1x64xf32, #tpu.memory_space<vmem>>, %arg21: memref<1x64xf32, #tpu.memory_space<vmem>>, %arg22: memref<1x64xf32, #tpu.memory_space<vmem>>, %arg23: memref<1x64xf32, #tpu.memory_space<vmem>>, %arg24: memref<1x1xf32, #tpu.memory_space<vmem>>, %arg25: memref<2x1xf32, #tpu.memory_space<vmem>>) attributes {dimension_semantics = [], scalar_prefetch = 0 : i64, scratch_operands = 0 : i64, tpu.core_type = #tpu.core_type<tc>} {
    %c0 = arith.constant 0 : index
    %c0_0 = arith.constant 0 : index
    %0 = vector.load %arg0[%c0, %c0_0] : memref<32x32xf32, #tpu.memory_space<vmem>>, vector<32x32xf32>
    %c0_1 = arith.constant 0 : index
    %c0_2 = arith.constant 0 : index
    %1 = vector.load %arg3[%c0_1, %c0_2] : memref<1x32xf32, #tpu.memory_space<vmem>>, vector<1x32xf32>
    %c0_3 = arith.constant 0 : index
    %c0_4 = arith.constant 0 : index
    %2 = vector.load %arg4[%c0_3, %c0_4] : memref<1x32xf32, #tpu.memory_space<vmem>>, vector<1x32xf32>
    %cst = arith.constant dense<0.000000e+00> : vector<32xf32>
    %3 = vector.multi_reduction <add>, %0, %cst [1] : vector<32x32xf32> to vector<32xf32>
    %4 = vector.shape_cast %3 : vector<32xf32> to vector<32x1xf32>
    %cst_5 = arith.constant 3.200000e+01 : f32
    %5 = vector.broadcast %cst_5 : f32 to vector<32x1xf32>
    %6 = arith.divf %4, %5 : vector<32x1xf32>
    %7 = vector.broadcast %6 : vector<32x1xf32> to vector<32x32xf32>
    %8 = arith.subf %0, %7 : vector<32x32xf32>
    %9 = vector.broadcast %6 : vector<32x1xf32> to vector<32x32xf32>
    %10 = arith.subf %0, %9 : vector<32x32xf32>
    %11 = arith.mulf %8, %10 : vector<32x32xf32>
    %cst_6 = arith.constant dense<0.000000e+00> : vector<32xf32>
    %12 = vector.multi_reduction <add>, %11, %cst_6 [1] : vector<32x32xf32> to vector<32xf32>
    %13 = vector.shape_cast %12 : vector<32xf32> to vector<32x1xf32>
    %cst_7 = arith.constant 3.200000e+01 : f32
    %14 = vector.broadcast %cst_7 : f32 to vector<32x1xf32>
    %15 = arith.divf %13, %14 : vector<32x1xf32>
    %16 = vector.broadcast %6 : vector<32x1xf32> to vector<32x32xf32>
    %17 = arith.subf %0, %16 : vector<32x32xf32>
    %cst_8 = arith.constant 9.99999996E-13 : f32
    %18 = vector.broadcast %cst_8 : f32 to vector<32x1xf32>
    %19 = arith.addf %15, %18 : vector<32x1xf32>
    %20 = math.rsqrt %19 : vector<32x1xf32>
    %21 = vector.broadcast %20 : vector<32x1xf32> to vector<32x32xf32>
    %22 = arith.mulf %17, %21 : vector<32x32xf32>
    %23 = vector.broadcast %1 : vector<1x32xf32> to vector<32x32xf32>
    %24 = arith.mulf %22, %23 : vector<32x32xf32>
    %25 = vector.broadcast %2 : vector<1x32xf32> to vector<32x32xf32>
    %26 = arith.addf %24, %25 : vector<32x32xf32>
    %c0_9 = arith.constant 0 : index
    %c0_10 = arith.constant 0 : index
    %27 = vector.load %arg1[%c0_9, %c0_10] : memref<32x32xf32, #tpu.memory_space<vmem>>, vector<32x32xf32>
    %c0_11 = arith.constant 0 : index
    %c0_12 = arith.constant 0 : index
    %c0_13 = arith.constant 0 : index
    %28 = vector.load %arg5[%c0_11, %c0_12, %c0_13] : memref<2x32x96xf32, #tpu.memory_space<vmem>>, vector<1x32x96xf32>
    %29 = vector.shape_cast %28 : vector<1x32x96xf32> to vector<32x96xf32>
    %cst_14 = arith.constant dense<0.000000e+00> : vector<32x96xf32>
    %30 = tpu.matmul %26, %29, %cst_14 {dimension_numbers = #tpu.dot_dimension_numbers<[1], [0], [0], [1], [0, 0, 1, 1], [], []>} : vector<32x32xf32>, vector<32x96xf32>, vector<32x96xf32> -> vector<32x96xf32>
    %c0_15 = arith.constant 0 : index
    %c0_16 = arith.constant 0 : index
    %c0_17 = arith.constant 0 : index
    %31 = vector.load %arg6[%c0_15, %c0_16, %c0_17] : memref<2x1x96xf32, #tpu.memory_space<vmem>>, vector<1x1x96xf32>
    %32 = vector.shape_cast %31 : vector<1x1x96xf32> to vector<1x96xf32>
    %33 = vector.broadcast %32 : vector<1x96xf32> to vector<32x96xf32>
    %34 = arith.addf %30, %33 : vector<32x96xf32>
    %c0_18 = arith.constant 0 : index
    %c0_19 = arith.constant 0 : index
    %c0_20 = arith.constant 0 : index
    %35 = vector.load %arg7[%c0_18, %c0_19, %c0_20] : memref<2x32x32xf32, #tpu.memory_space<vmem>>, vector<1x32x32xf32>
    %36 = vector.shape_cast %35 : vector<1x32x32xf32> to vector<32x32xf32>
    %cst_21 = arith.constant 0.000000e+00 : f32
    %37 = vector.broadcast %cst_21 : f32 to vector<32x32xf32>
    %38 = vector.extract_strided_slice %34 {offsets = [0, 0], sizes = [32, 8], strides = [1, 1]} : vector<32x96xf32> to vector<32x8xf32>
    %39 = vector.extract_strided_slice %34 {offsets = [0, 32], sizes = [32, 8], strides = [1, 1]} : vector<32x96xf32> to vector<32x8xf32>
    %40 = vector.extract_strided_slice %34 {offsets = [0, 64], sizes = [32, 8], strides = [1, 1]} : vector<32x96xf32> to vector<32x8xf32>
    %cst_22 = arith.constant dense<0.000000e+00> : vector<32x32xf32>
    %41 = tpu.matmul %38, %39, %cst_22 {dimension_numbers = #tpu.dot_dimension_numbers<[1], [1], [0], [0], [0, 0, 1, 0], [], []>} : vector<32x8xf32>, vector<32x8xf32>, vector<32x32xf32> -> vector<32x32xf32>
    %cst_23 = arith.constant 0.353553385 : f32
    %42 = vector.broadcast %cst_23 : f32 to vector<32x32xf32>
    %43 = arith.mulf %41, %42 : vector<32x32xf32>
    %44 = arith.addf %43, %27 : vector<32x32xf32>
    %cst_24 = arith.constant dense<0xFF800000> : vector<32xf32>
    %45 = vector.multi_reduction <maximumf>, %44, %cst_24 [1] : vector<32x32xf32> to vector<32xf32>
    %46 = vector.shape_cast %45 : vector<32xf32> to vector<32x1xf32>
    %47 = vector.broadcast %46 : vector<32x1xf32> to vector<32x32xf32>
    %48 = arith.subf %44, %47 : vector<32x32xf32>
    %49 = math.exp %48 : vector<32x32xf32>
    %cst_25 = arith.constant dense<0.000000e+00> : vector<32xf32>
    %50 = vector.multi_reduction <add>, %49, %cst_25 [1] : vector<32x32xf32> to vector<32xf32>
    %51 = vector.shape_cast %50 : vector<32xf32> to vector<32x1xf32>
    %52 = tpu.reciprocal %51 {approx = true} : vector<32x1xf32> -> vector<32x1xf32>
    %53 = vector.broadcast %52 : vector<32x1xf32> to vector<32x32xf32>
    %54 = arith.mulf %49, %53 : vector<32x32xf32>
    %cst_26 = arith.constant dense<0.000000e+00> : vector<32x8xf32>
    %55 = tpu.matmul %54, %40, %cst_26 {dimension_numbers = #tpu.dot_dimension_numbers<[1], [0], [0], [1], [0, 0, 1, 1], [], []>} : vector<32x32xf32>, vector<32x8xf32>, vector<32x8xf32> -> vector<32x8xf32>
    %56 = vector.extract_strided_slice %36 {offsets = [0, 0], sizes = [8, 32], strides = [1, 1]} : vector<32x32xf32> to vector<8x32xf32>
    %cst_27 = arith.constant dense<0.000000e+00> : vector<32x32xf32>
    %57 = tpu.matmul %55, %56, %cst_27 {dimension_numbers = #tpu.dot_dimension_numbers<[1], [0], [0], [1], [0, 0, 1, 1], [], []>} : vector<32x8xf32>, vector<8x32xf32>, vector<32x32xf32> -> vector<32x32xf32>
    %58 = arith.addf %37, %57 : vector<32x32xf32>
    %59 = vector.extract_strided_slice %34 {offsets = [0, 8], sizes = [32, 8], strides = [1, 1]} : vector<32x96xf32> to vector<32x8xf32>
    %60 = vector.extract_strided_slice %34 {offsets = [0, 40], sizes = [32, 8], strides = [1, 1]} : vector<32x96xf32> to vector<32x8xf32>
    %61 = vector.extract_strided_slice %34 {offsets = [0, 72], sizes = [32, 8], strides = [1, 1]} : vector<32x96xf32> to vector<32x8xf32>
    %cst_28 = arith.constant dense<0.000000e+00> : vector<32x32xf32>
    %62 = tpu.matmul %59, %60, %cst_28 {dimension_numbers = #tpu.dot_dimension_numbers<[1], [1], [0], [0], [0, 0, 1, 0], [], []>} : vector<32x8xf32>, vector<32x8xf32>, vector<32x32xf32> -> vector<32x32xf32>
    %cst_29 = arith.constant 0.353553385 : f32
    %63 = vector.broadcast %cst_29 : f32 to vector<32x32xf32>
    %64 = arith.mulf %62, %63 : vector<32x32xf32>
    %65 = arith.addf %64, %27 : vector<32x32xf32>
    %cst_30 = arith.constant dense<0xFF800000> : vector<32xf32>
    %66 = vector.multi_reduction <maximumf>, %65, %cst_30 [1] : vector<32x32xf32> to vector<32xf32>
    %67 = vector.shape_cast %66 : vector<32xf32> to vector<32x1xf32>
    %68 = vector.broadcast %67 : vector<32x1xf32> to vector<32x32xf32>
    %69 = arith.subf %65, %68 : vector<32x32xf32>
    %70 = math.exp %69 : vector<32x32xf32>
    %cst_31 = arith.constant dense<0.000000e+00> : vector<32xf32>
    %71 = vector.multi_reduction <add>, %70, %cst_31 [1] : vector<32x32xf32> to vector<32xf32>
    %72 = vector.shape_cast %71 : vector<32xf32> to vector<32x1xf32>
    %73 = tpu.reciprocal %72 {approx = true} : vector<32x1xf32> -> vector<32x1xf32>
    %74 = vector.broadcast %73 : vector<32x1xf32> to vector<32x32xf32>
    %75 = arith.mulf %70, %74 : vector<32x32xf32>
    %cst_32 = arith.constant dense<0.000000e+00> : vector<32x8xf32>
    %76 = tpu.matmul %75, %61, %cst_32 {dimension_numbers = #tpu.dot_dimension_numbers<[1], [0], [0], [1], [0, 0, 1, 1], [], []>} : vector<32x32xf32>, vector<32x8xf32>, vector<32x8xf32> -> vector<32x8xf32>
    %77 = vector.extract_strided_slice %36 {offsets = [8, 0], sizes = [8, 32], strides = [1, 1]} : vector<32x32xf32> to vector<8x32xf32>
    %cst_33 = arith.constant dense<0.000000e+00> : vector<32x32xf32>
    %78 = tpu.matmul %76, %77, %cst_33 {dimension_numbers = #tpu.dot_dimension_numbers<[1], [0], [0], [1], [0, 0, 1, 1], [], []>} : vector<32x8xf32>, vector<8x32xf32>, vector<32x32xf32> -> vector<32x32xf32>
    %79 = arith.addf %58, %78 : vector<32x32xf32>
    %80 = vector.extract_strided_slice %34 {offsets = [0, 16], sizes = [32, 8], strides = [1, 1]} : vector<32x96xf32> to vector<32x8xf32>
    %81 = vector.extract_strided_slice %34 {offsets = [0, 48], sizes = [32, 8], strides = [1, 1]} : vector<32x96xf32> to vector<32x8xf32>
    %82 = vector.extract_strided_slice %34 {offsets = [0, 80], sizes = [32, 8], strides = [1, 1]} : vector<32x96xf32> to vector<32x8xf32>
    %cst_34 = arith.constant dense<0.000000e+00> : vector<32x32xf32>
    %83 = tpu.matmul %80, %81, %cst_34 {dimension_numbers = #tpu.dot_dimension_numbers<[1], [1], [0], [0], [0, 0, 1, 0], [], []>} : vector<32x8xf32>, vector<32x8xf32>, vector<32x32xf32> -> vector<32x32xf32>
    %cst_35 = arith.constant 0.353553385 : f32
    %84 = vector.broadcast %cst_35 : f32 to vector<32x32xf32>
    %85 = arith.mulf %83, %84 : vector<32x32xf32>
    %86 = arith.addf %85, %27 : vector<32x32xf32>
    %cst_36 = arith.constant dense<0xFF800000> : vector<32xf32>
    %87 = vector.multi_reduction <maximumf>, %86, %cst_36 [1] : vector<32x32xf32> to vector<32xf32>
    %88 = vector.shape_cast %87 : vector<32xf32> to vector<32x1xf32>
    %89 = vector.broadcast %88 : vector<32x1xf32> to vector<32x32xf32>
    %90 = arith.subf %86, %89 : vector<32x32xf32>
    %91 = math.exp %90 : vector<32x32xf32>
    %cst_37 = arith.constant dense<0.000000e+00> : vector<32xf32>
    %92 = vector.multi_reduction <add>, %91, %cst_37 [1] : vector<32x32xf32> to vector<32xf32>
    %93 = vector.shape_cast %92 : vector<32xf32> to vector<32x1xf32>
    %94 = tpu.reciprocal %93 {approx = true} : vector<32x1xf32> -> vector<32x1xf32>
    %95 = vector.broadcast %94 : vector<32x1xf32> to vector<32x32xf32>
    %96 = arith.mulf %91, %95 : vector<32x32xf32>
    %cst_38 = arith.constant dense<0.000000e+00> : vector<32x8xf32>
    %97 = tpu.matmul %96, %82, %cst_38 {dimension_numbers = #tpu.dot_dimension_numbers<[1], [0], [0], [1], [0, 0, 1, 1], [], []>} : vector<32x32xf32>, vector<32x8xf32>, vector<32x8xf32> -> vector<32x8xf32>
    %98 = vector.extract_strided_slice %36 {offsets = [16, 0], sizes = [8, 32], strides = [1, 1]} : vector<32x32xf32> to vector<8x32xf32>
    %cst_39 = arith.constant dense<0.000000e+00> : vector<32x32xf32>
    %99 = tpu.matmul %97, %98, %cst_39 {dimension_numbers = #tpu.dot_dimension_numbers<[1], [0], [0], [1], [0, 0, 1, 1], [], []>} : vector<32x8xf32>, vector<8x32xf32>, vector<32x32xf32> -> vector<32x32xf32>
    %100 = arith.addf %79, %99 : vector<32x32xf32>
    %101 = vector.extract_strided_slice %34 {offsets = [0, 24], sizes = [32, 8], strides = [1, 1]} : vector<32x96xf32> to vector<32x8xf32>
    %102 = vector.extract_strided_slice %34 {offsets = [0, 56], sizes = [32, 8], strides = [1, 1]} : vector<32x96xf32> to vector<32x8xf32>
    %103 = vector.extract_strided_slice %34 {offsets = [0, 88], sizes = [32, 8], strides = [1, 1]} : vector<32x96xf32> to vector<32x8xf32>
    %cst_40 = arith.constant dense<0.000000e+00> : vector<32x32xf32>
    %104 = tpu.matmul %101, %102, %cst_40 {dimension_numbers = #tpu.dot_dimension_numbers<[1], [1], [0], [0], [0, 0, 1, 0], [], []>} : vector<32x8xf32>, vector<32x8xf32>, vector<32x32xf32> -> vector<32x32xf32>
    %cst_41 = arith.constant 0.353553385 : f32
    %105 = vector.broadcast %cst_41 : f32 to vector<32x32xf32>
    %106 = arith.mulf %104, %105 : vector<32x32xf32>
    %107 = arith.addf %106, %27 : vector<32x32xf32>
    %cst_42 = arith.constant dense<0xFF800000> : vector<32xf32>
    %108 = vector.multi_reduction <maximumf>, %107, %cst_42 [1] : vector<32x32xf32> to vector<32xf32>
    %109 = vector.shape_cast %108 : vector<32xf32> to vector<32x1xf32>
    %110 = vector.broadcast %109 : vector<32x1xf32> to vector<32x32xf32>
    %111 = arith.subf %107, %110 : vector<32x32xf32>
    %112 = math.exp %111 : vector<32x32xf32>
    %cst_43 = arith.constant dense<0.000000e+00> : vector<32xf32>
    %113 = vector.multi_reduction <add>, %112, %cst_43 [1] : vector<32x32xf32> to vector<32xf32>
    %114 = vector.shape_cast %113 : vector<32xf32> to vector<32x1xf32>
    %115 = tpu.reciprocal %114 {approx = true} : vector<32x1xf32> -> vector<32x1xf32>
    %116 = vector.broadcast %115 : vector<32x1xf32> to vector<32x32xf32>
    %117 = arith.mulf %112, %116 : vector<32x32xf32>
    %cst_44 = arith.constant dense<0.000000e+00> : vector<32x8xf32>
    %118 = tpu.matmul %117, %103, %cst_44 {dimension_numbers = #tpu.dot_dimension_numbers<[1], [0], [0], [1], [0, 0, 1, 1], [], []>} : vector<32x32xf32>, vector<32x8xf32>, vector<32x8xf32> -> vector<32x8xf32>
    %119 = vector.extract_strided_slice %36 {offsets = [24, 0], sizes = [8, 32], strides = [1, 1]} : vector<32x32xf32> to vector<8x32xf32>
    %cst_45 = arith.constant dense<0.000000e+00> : vector<32x32xf32>
    %120 = tpu.matmul %118, %119, %cst_45 {dimension_numbers = #tpu.dot_dimension_numbers<[1], [0], [0], [1], [0, 0, 1, 1], [], []>} : vector<32x8xf32>, vector<8x32xf32>, vector<32x32xf32> -> vector<32x32xf32>
    %121 = arith.addf %100, %120 : vector<32x32xf32>
    %c0_46 = arith.constant 0 : index
    %c0_47 = arith.constant 0 : index
    %c0_48 = arith.constant 0 : index
    %122 = vector.load %arg8[%c0_46, %c0_47, %c0_48] : memref<2x1x32xf32, #tpu.memory_space<vmem>>, vector<1x1x32xf32>
    %123 = vector.shape_cast %122 : vector<1x1x32xf32> to vector<1x32xf32>
    %124 = vector.broadcast %123 : vector<1x32xf32> to vector<32x32xf32>
    %125 = arith.addf %121, %124 : vector<32x32xf32>
    %126 = arith.addf %125, %26 : vector<32x32xf32>
    %c0_49 = arith.constant 0 : index
    %c0_50 = arith.constant 0 : index
    %c0_51 = arith.constant 0 : index
    %127 = vector.load %arg9[%c0_49, %c0_50, %c0_51] : memref<2x1x32xf32, #tpu.memory_space<vmem>>, vector<1x1x32xf32>
    %128 = vector.shape_cast %127 : vector<1x1x32xf32> to vector<1x32xf32>
    %c0_52 = arith.constant 0 : index
    %c0_53 = arith.constant 0 : index
    %c0_54 = arith.constant 0 : index
    %129 = vector.load %arg10[%c0_52, %c0_53, %c0_54] : memref<2x1x32xf32, #tpu.memory_space<vmem>>, vector<1x1x32xf32>
    %130 = vector.shape_cast %129 : vector<1x1x32xf32> to vector<1x32xf32>
    %cst_55 = arith.constant dense<0.000000e+00> : vector<32xf32>
    %131 = vector.multi_reduction <add>, %126, %cst_55 [1] : vector<32x32xf32> to vector<32xf32>
    %132 = vector.shape_cast %131 : vector<32xf32> to vector<32x1xf32>
    %cst_56 = arith.constant 3.200000e+01 : f32
    %133 = vector.broadcast %cst_56 : f32 to vector<32x1xf32>
    %134 = arith.divf %132, %133 : vector<32x1xf32>
    %135 = vector.broadcast %134 : vector<32x1xf32> to vector<32x32xf32>
    %136 = arith.subf %126, %135 : vector<32x32xf32>
    %137 = vector.broadcast %134 : vector<32x1xf32> to vector<32x32xf32>
    %138 = arith.subf %126, %137 : vector<32x32xf32>
    %139 = arith.mulf %136, %138 : vector<32x32xf32>
    %cst_57 = arith.constant dense<0.000000e+00> : vector<32xf32>
    %140 = vector.multi_reduction <add>, %139, %cst_57 [1] : vector<32x32xf32> to vector<32xf32>
    %141 = vector.shape_cast %140 : vector<32xf32> to vector<32x1xf32>
    %cst_58 = arith.constant 3.200000e+01 : f32
    %142 = vector.broadcast %cst_58 : f32 to vector<32x1xf32>
    %143 = arith.divf %141, %142 : vector<32x1xf32>
    %144 = vector.broadcast %134 : vector<32x1xf32> to vector<32x32xf32>
    %145 = arith.subf %126, %144 : vector<32x32xf32>
    %cst_59 = arith.constant 9.99999996E-13 : f32
    %146 = vector.broadcast %cst_59 : f32 to vector<32x1xf32>
    %147 = arith.addf %143, %146 : vector<32x1xf32>
    %148 = math.rsqrt %147 : vector<32x1xf32>
    %149 = vector.broadcast %148 : vector<32x1xf32> to vector<32x32xf32>
    %150 = arith.mulf %145, %149 : vector<32x32xf32>
    %151 = vector.broadcast %128 : vector<1x32xf32> to vector<32x32xf32>
    %152 = arith.mulf %150, %151 : vector<32x32xf32>
    %153 = vector.broadcast %130 : vector<1x32xf32> to vector<32x32xf32>
    %154 = arith.addf %152, %153 : vector<32x32xf32>
    %c0_60 = arith.constant 0 : index
    %c0_61 = arith.constant 0 : index
    %c0_62 = arith.constant 0 : index
    %155 = vector.load %arg11[%c0_60, %c0_61, %c0_62] : memref<2x32x64xf32, #tpu.memory_space<vmem>>, vector<1x32x64xf32>
    %156 = vector.shape_cast %155 : vector<1x32x64xf32> to vector<32x64xf32>
    %cst_63 = arith.constant dense<0.000000e+00> : vector<32x64xf32>
    %157 = tpu.matmul %154, %156, %cst_63 {dimension_numbers = #tpu.dot_dimension_numbers<[1], [0], [0], [1], [0, 0, 1, 1], [], []>} : vector<32x32xf32>, vector<32x64xf32>, vector<32x64xf32> -> vector<32x64xf32>
    %c0_64 = arith.constant 0 : index
    %c0_65 = arith.constant 0 : index
    %c0_66 = arith.constant 0 : index
    %158 = vector.load %arg12[%c0_64, %c0_65, %c0_66] : memref<2x1x64xf32, #tpu.memory_space<vmem>>, vector<1x1x64xf32>
    %159 = vector.shape_cast %158 : vector<1x1x64xf32> to vector<1x64xf32>
    %160 = vector.broadcast %159 : vector<1x64xf32> to vector<32x64xf32>
    %161 = arith.addf %157, %160 : vector<32x64xf32>
    %cst_67 = arith.constant 5.000000e-01 : f32
    %162 = vector.broadcast %cst_67 : f32 to vector<32x64xf32>
    %163 = arith.mulf %162, %161 : vector<32x64xf32>
    %164 = arith.mulf %161, %161 : vector<32x64xf32>
    %165 = arith.mulf %164, %161 : vector<32x64xf32>
    %cst_68 = arith.constant 4.471500e-02 : f32
    %166 = vector.broadcast %cst_68 : f32 to vector<32x64xf32>
    %167 = arith.mulf %166, %165 : vector<32x64xf32>
    %168 = arith.addf %161, %167 : vector<32x64xf32>
    %cst_69 = arith.constant 0.797884583 : f32
    %169 = vector.broadcast %cst_69 : f32 to vector<32x64xf32>
    %170 = arith.mulf %169, %168 : vector<32x64xf32>
    %171 = math.tanh %170 : vector<32x64xf32>
    %cst_70 = arith.constant 1.000000e+00 : f32
    %172 = vector.broadcast %cst_70 : f32 to vector<32x64xf32>
    %173 = arith.addf %172, %171 : vector<32x64xf32>
    %174 = arith.mulf %163, %173 : vector<32x64xf32>
    %c0_71 = arith.constant 0 : index
    %c0_72 = arith.constant 0 : index
    %c0_73 = arith.constant 0 : index
    %175 = vector.load %arg13[%c0_71, %c0_72, %c0_73] : memref<2x64x32xf32, #tpu.memory_space<vmem>>, vector<1x64x32xf32>
    %176 = vector.shape_cast %175 : vector<1x64x32xf32> to vector<64x32xf32>
    %cst_74 = arith.constant dense<0.000000e+00> : vector<32x32xf32>
    %177 = tpu.matmul %174, %176, %cst_74 {dimension_numbers = #tpu.dot_dimension_numbers<[1], [0], [0], [1], [0, 0, 1, 1], [], []>} : vector<32x64xf32>, vector<64x32xf32>, vector<32x32xf32> -> vector<32x32xf32>
    %c0_75 = arith.constant 0 : index
    %c0_76 = arith.constant 0 : index
    %c0_77 = arith.constant 0 : index
    %178 = vector.load %arg14[%c0_75, %c0_76, %c0_77] : memref<2x1x32xf32, #tpu.memory_space<vmem>>, vector<1x1x32xf32>
    %179 = vector.shape_cast %178 : vector<1x1x32xf32> to vector<1x32xf32>
    %180 = vector.broadcast %179 : vector<1x32xf32> to vector<32x32xf32>
    %181 = arith.addf %177, %180 : vector<32x32xf32>
    %182 = arith.addf %181, %154 : vector<32x32xf32>
    %c0_78 = arith.constant 0 : index
    %c0_79 = arith.constant 0 : index
    %c0_80 = arith.constant 0 : index
    %183 = vector.load %arg15[%c0_78, %c0_79, %c0_80] : memref<2x1x32xf32, #tpu.memory_space<vmem>>, vector<1x1x32xf32>
    %184 = vector.shape_cast %183 : vector<1x1x32xf32> to vector<1x32xf32>
    %c0_81 = arith.constant 0 : index
    %c0_82 = arith.constant 0 : index
    %c0_83 = arith.constant 0 : index
    %185 = vector.load %arg16[%c0_81, %c0_82, %c0_83] : memref<2x1x32xf32, #tpu.memory_space<vmem>>, vector<1x1x32xf32>
    %186 = vector.shape_cast %185 : vector<1x1x32xf32> to vector<1x32xf32>
    %cst_84 = arith.constant dense<0.000000e+00> : vector<32xf32>
    %187 = vector.multi_reduction <add>, %182, %cst_84 [1] : vector<32x32xf32> to vector<32xf32>
    %188 = vector.shape_cast %187 : vector<32xf32> to vector<32x1xf32>
    %cst_85 = arith.constant 3.200000e+01 : f32
    %189 = vector.broadcast %cst_85 : f32 to vector<32x1xf32>
    %190 = arith.divf %188, %189 : vector<32x1xf32>
    %191 = vector.broadcast %190 : vector<32x1xf32> to vector<32x32xf32>
    %192 = arith.subf %182, %191 : vector<32x32xf32>
    %193 = vector.broadcast %190 : vector<32x1xf32> to vector<32x32xf32>
    %194 = arith.subf %182, %193 : vector<32x32xf32>
    %195 = arith.mulf %192, %194 : vector<32x32xf32>
    %cst_86 = arith.constant dense<0.000000e+00> : vector<32xf32>
    %196 = vector.multi_reduction <add>, %195, %cst_86 [1] : vector<32x32xf32> to vector<32xf32>
    %197 = vector.shape_cast %196 : vector<32xf32> to vector<32x1xf32>
    %cst_87 = arith.constant 3.200000e+01 : f32
    %198 = vector.broadcast %cst_87 : f32 to vector<32x1xf32>
    %199 = arith.divf %197, %198 : vector<32x1xf32>
    %200 = vector.broadcast %190 : vector<32x1xf32> to vector<32x32xf32>
    %201 = arith.subf %182, %200 : vector<32x32xf32>
    %cst_88 = arith.constant 9.99999996E-13 : f32
    %202 = vector.broadcast %cst_88 : f32 to vector<32x1xf32>
    %203 = arith.addf %199, %202 : vector<32x1xf32>
    %204 = math.rsqrt %203 : vector<32x1xf32>
    %205 = vector.broadcast %204 : vector<32x1xf32> to vector<32x32xf32>
    %206 = arith.mulf %201, %205 : vector<32x32xf32>
    %207 = vector.broadcast %184 : vector<1x32xf32> to vector<32x32xf32>
    %208 = arith.mulf %206, %207 : vector<32x32xf32>
    %209 = vector.broadcast %186 : vector<1x32xf32> to vector<32x32xf32>
    %210 = arith.addf %208, %209 : vector<32x32xf32>
    %c1 = arith.constant 1 : index
    %c0_89 = arith.constant 0 : index
    %c0_90 = arith.constant 0 : index
    %211 = vector.load %arg5[%c1, %c0_89, %c0_90] : memref<2x32x96xf32, #tpu.memory_space<vmem>>, vector<1x32x96xf32>
    %212 = vector.shape_cast %211 : vector<1x32x96xf32> to vector<32x96xf32>
    %cst_91 = arith.constant dense<0.000000e+00> : vector<32x96xf32>
    %213 = tpu.matmul %210, %212, %cst_91 {dimension_numbers = #tpu.dot_dimension_numbers<[1], [0], [0], [1], [0, 0, 1, 1], [], []>} : vector<32x32xf32>, vector<32x96xf32>, vector<32x96xf32> -> vector<32x96xf32>
    %c1_92 = arith.constant 1 : index
    %c0_93 = arith.constant 0 : index
    %c0_94 = arith.constant 0 : index
    %214 = vector.load %arg6[%c1_92, %c0_93, %c0_94] : memref<2x1x96xf32, #tpu.memory_space<vmem>>, vector<1x1x96xf32>
    %215 = vector.shape_cast %214 : vector<1x1x96xf32> to vector<1x96xf32>
    %216 = vector.broadcast %215 : vector<1x96xf32> to vector<32x96xf32>
    %217 = arith.addf %213, %216 : vector<32x96xf32>
    %c1_95 = arith.constant 1 : index
    %c0_96 = arith.constant 0 : index
    %c0_97 = arith.constant 0 : index
    %218 = vector.load %arg7[%c1_95, %c0_96, %c0_97] : memref<2x32x32xf32, #tpu.memory_space<vmem>>, vector<1x32x32xf32>
    %219 = vector.shape_cast %218 : vector<1x32x32xf32> to vector<32x32xf32>
    %cst_98 = arith.constant 0.000000e+00 : f32
    %220 = vector.broadcast %cst_98 : f32 to vector<32x32xf32>
    %221 = vector.extract_strided_slice %217 {offsets = [0, 0], sizes = [32, 8], strides = [1, 1]} : vector<32x96xf32> to vector<32x8xf32>
    %222 = vector.extract_strided_slice %217 {offsets = [0, 32], sizes = [32, 8], strides = [1, 1]} : vector<32x96xf32> to vector<32x8xf32>
    %223 = vector.extract_strided_slice %217 {offsets = [0, 64], sizes = [32, 8], strides = [1, 1]} : vector<32x96xf32> to vector<32x8xf32>
    %cst_99 = arith.constant dense<0.000000e+00> : vector<32x32xf32>
    %224 = tpu.matmul %221, %222, %cst_99 {dimension_numbers = #tpu.dot_dimension_numbers<[1], [1], [0], [0], [0, 0, 1, 0], [], []>} : vector<32x8xf32>, vector<32x8xf32>, vector<32x32xf32> -> vector<32x32xf32>
    %cst_100 = arith.constant 0.353553385 : f32
    %225 = vector.broadcast %cst_100 : f32 to vector<32x32xf32>
    %226 = arith.mulf %224, %225 : vector<32x32xf32>
    %227 = arith.addf %226, %27 : vector<32x32xf32>
    %cst_101 = arith.constant dense<0xFF800000> : vector<32xf32>
    %228 = vector.multi_reduction <maximumf>, %227, %cst_101 [1] : vector<32x32xf32> to vector<32xf32>
    %229 = vector.shape_cast %228 : vector<32xf32> to vector<32x1xf32>
    %230 = vector.broadcast %229 : vector<32x1xf32> to vector<32x32xf32>
    %231 = arith.subf %227, %230 : vector<32x32xf32>
    %232 = math.exp %231 : vector<32x32xf32>
    %cst_102 = arith.constant dense<0.000000e+00> : vector<32xf32>
    %233 = vector.multi_reduction <add>, %232, %cst_102 [1] : vector<32x32xf32> to vector<32xf32>
    %234 = vector.shape_cast %233 : vector<32xf32> to vector<32x1xf32>
    %235 = tpu.reciprocal %234 {approx = true} : vector<32x1xf32> -> vector<32x1xf32>
    %236 = vector.broadcast %235 : vector<32x1xf32> to vector<32x32xf32>
    %237 = arith.mulf %232, %236 : vector<32x32xf32>
    %cst_103 = arith.constant dense<0.000000e+00> : vector<32x8xf32>
    %238 = tpu.matmul %237, %223, %cst_103 {dimension_numbers = #tpu.dot_dimension_numbers<[1], [0], [0], [1], [0, 0, 1, 1], [], []>} : vector<32x32xf32>, vector<32x8xf32>, vector<32x8xf32> -> vector<32x8xf32>
    %239 = vector.extract_strided_slice %219 {offsets = [0, 0], sizes = [8, 32], strides = [1, 1]} : vector<32x32xf32> to vector<8x32xf32>
    %cst_104 = arith.constant dense<0.000000e+00> : vector<32x32xf32>
    %240 = tpu.matmul %238, %239, %cst_104 {dimension_numbers = #tpu.dot_dimension_numbers<[1], [0], [0], [1], [0, 0, 1, 1], [], []>} : vector<32x8xf32>, vector<8x32xf32>, vector<32x32xf32> -> vector<32x32xf32>
    %241 = arith.addf %220, %240 : vector<32x32xf32>
    %242 = vector.extract_strided_slice %217 {offsets = [0, 8], sizes = [32, 8], strides = [1, 1]} : vector<32x96xf32> to vector<32x8xf32>
    %243 = vector.extract_strided_slice %217 {offsets = [0, 40], sizes = [32, 8], strides = [1, 1]} : vector<32x96xf32> to vector<32x8xf32>
    %244 = vector.extract_strided_slice %217 {offsets = [0, 72], sizes = [32, 8], strides = [1, 1]} : vector<32x96xf32> to vector<32x8xf32>
    %cst_105 = arith.constant dense<0.000000e+00> : vector<32x32xf32>
    %245 = tpu.matmul %242, %243, %cst_105 {dimension_numbers = #tpu.dot_dimension_numbers<[1], [1], [0], [0], [0, 0, 1, 0], [], []>} : vector<32x8xf32>, vector<32x8xf32>, vector<32x32xf32> -> vector<32x32xf32>
    %cst_106 = arith.constant 0.353553385 : f32
    %246 = vector.broadcast %cst_106 : f32 to vector<32x32xf32>
    %247 = arith.mulf %245, %246 : vector<32x32xf32>
    %248 = arith.addf %247, %27 : vector<32x32xf32>
    %cst_107 = arith.constant dense<0xFF800000> : vector<32xf32>
    %249 = vector.multi_reduction <maximumf>, %248, %cst_107 [1] : vector<32x32xf32> to vector<32xf32>
    %250 = vector.shape_cast %249 : vector<32xf32> to vector<32x1xf32>
    %251 = vector.broadcast %250 : vector<32x1xf32> to vector<32x32xf32>
    %252 = arith.subf %248, %251 : vector<32x32xf32>
    %253 = math.exp %252 : vector<32x32xf32>
    %cst_108 = arith.constant dense<0.000000e+00> : vector<32xf32>
    %254 = vector.multi_reduction <add>, %253, %cst_108 [1] : vector<32x32xf32> to vector<32xf32>
    %255 = vector.shape_cast %254 : vector<32xf32> to vector<32x1xf32>
    %256 = tpu.reciprocal %255 {approx = true} : vector<32x1xf32> -> vector<32x1xf32>
    %257 = vector.broadcast %256 : vector<32x1xf32> to vector<32x32xf32>
    %258 = arith.mulf %253, %257 : vector<32x32xf32>
    %cst_109 = arith.constant dense<0.000000e+00> : vector<32x8xf32>
    %259 = tpu.matmul %258, %244, %cst_109 {dimension_numbers = #tpu.dot_dimension_numbers<[1], [0], [0], [1], [0, 0, 1, 1], [], []>} : vector<32x32xf32>, vector<32x8xf32>, vector<32x8xf32> -> vector<32x8xf32>
    %260 = vector.extract_strided_slice %219 {offsets = [8, 0], sizes = [8, 32], strides = [1, 1]} : vector<32x32xf32> to vector<8x32xf32>
    %cst_110 = arith.constant dense<0.000000e+00> : vector<32x32xf32>
    %261 = tpu.matmul %259, %260, %cst_110 {dimension_numbers = #tpu.dot_dimension_numbers<[1], [0], [0], [1], [0, 0, 1, 1], [], []>} : vector<32x8xf32>, vector<8x32xf32>, vector<32x32xf32> -> vector<32x32xf32>
    %262 = arith.addf %241, %261 : vector<32x32xf32>
    %263 = vector.extract_strided_slice %217 {offsets = [0, 16], sizes = [32, 8], strides = [1, 1]} : vector<32x96xf32> to vector<32x8xf32>
    %264 = vector.extract_strided_slice %217 {offsets = [0, 48], sizes = [32, 8], strides = [1, 1]} : vector<32x96xf32> to vector<32x8xf32>
    %265 = vector.extract_strided_slice %217 {offsets = [0, 80], sizes = [32, 8], strides = [1, 1]} : vector<32x96xf32> to vector<32x8xf32>
    %cst_111 = arith.constant dense<0.000000e+00> : vector<32x32xf32>
    %266 = tpu.matmul %263, %264, %cst_111 {dimension_numbers = #tpu.dot_dimension_numbers<[1], [1], [0], [0], [0, 0, 1, 0], [], []>} : vector<32x8xf32>, vector<32x8xf32>, vector<32x32xf32> -> vector<32x32xf32>
    %cst_112 = arith.constant 0.353553385 : f32
    %267 = vector.broadcast %cst_112 : f32 to vector<32x32xf32>
    %268 = arith.mulf %266, %267 : vector<32x32xf32>
    %269 = arith.addf %268, %27 : vector<32x32xf32>
    %cst_113 = arith.constant dense<0xFF800000> : vector<32xf32>
    %270 = vector.multi_reduction <maximumf>, %269, %cst_113 [1] : vector<32x32xf32> to vector<32xf32>
    %271 = vector.shape_cast %270 : vector<32xf32> to vector<32x1xf32>
    %272 = vector.broadcast %271 : vector<32x1xf32> to vector<32x32xf32>
    %273 = arith.subf %269, %272 : vector<32x32xf32>
    %274 = math.exp %273 : vector<32x32xf32>
    %cst_114 = arith.constant dense<0.000000e+00> : vector<32xf32>
    %275 = vector.multi_reduction <add>, %274, %cst_114 [1] : vector<32x32xf32> to vector<32xf32>
    %276 = vector.shape_cast %275 : vector<32xf32> to vector<32x1xf32>
    %277 = tpu.reciprocal %276 {approx = true} : vector<32x1xf32> -> vector<32x1xf32>
    %278 = vector.broadcast %277 : vector<32x1xf32> to vector<32x32xf32>
    %279 = arith.mulf %274, %278 : vector<32x32xf32>
    %cst_115 = arith.constant dense<0.000000e+00> : vector<32x8xf32>
    %280 = tpu.matmul %279, %265, %cst_115 {dimension_numbers = #tpu.dot_dimension_numbers<[1], [0], [0], [1], [0, 0, 1, 1], [], []>} : vector<32x32xf32>, vector<32x8xf32>, vector<32x8xf32> -> vector<32x8xf32>
    %281 = vector.extract_strided_slice %219 {offsets = [16, 0], sizes = [8, 32], strides = [1, 1]} : vector<32x32xf32> to vector<8x32xf32>
    %cst_116 = arith.constant dense<0.000000e+00> : vector<32x32xf32>
    %282 = tpu.matmul %280, %281, %cst_116 {dimension_numbers = #tpu.dot_dimension_numbers<[1], [0], [0], [1], [0, 0, 1, 1], [], []>} : vector<32x8xf32>, vector<8x32xf32>, vector<32x32xf32> -> vector<32x32xf32>
    %283 = arith.addf %262, %282 : vector<32x32xf32>
    %284 = vector.extract_strided_slice %217 {offsets = [0, 24], sizes = [32, 8], strides = [1, 1]} : vector<32x96xf32> to vector<32x8xf32>
    %285 = vector.extract_strided_slice %217 {offsets = [0, 56], sizes = [32, 8], strides = [1, 1]} : vector<32x96xf32> to vector<32x8xf32>
    %286 = vector.extract_strided_slice %217 {offsets = [0, 88], sizes = [32, 8], strides = [1, 1]} : vector<32x96xf32> to vector<32x8xf32>
    %cst_117 = arith.constant dense<0.000000e+00> : vector<32x32xf32>
    %287 = tpu.matmul %284, %285, %cst_117 {dimension_numbers = #tpu.dot_dimension_numbers<[1], [1], [0], [0], [0, 0, 1, 0], [], []>} : vector<32x8xf32>, vector<32x8xf32>, vector<32x32xf32> -> vector<32x32xf32>
    %cst_118 = arith.constant 0.353553385 : f32
    %288 = vector.broadcast %cst_118 : f32 to vector<32x32xf32>
    %289 = arith.mulf %287, %288 : vector<32x32xf32>
    %290 = arith.addf %289, %27 : vector<32x32xf32>
    %cst_119 = arith.constant dense<0xFF800000> : vector<32xf32>
    %291 = vector.multi_reduction <maximumf>, %290, %cst_119 [1] : vector<32x32xf32> to vector<32xf32>
    %292 = vector.shape_cast %291 : vector<32xf32> to vector<32x1xf32>
    %293 = vector.broadcast %292 : vector<32x1xf32> to vector<32x32xf32>
    %294 = arith.subf %290, %293 : vector<32x32xf32>
    %295 = math.exp %294 : vector<32x32xf32>
    %cst_120 = arith.constant dense<0.000000e+00> : vector<32xf32>
    %296 = vector.multi_reduction <add>, %295, %cst_120 [1] : vector<32x32xf32> to vector<32xf32>
    %297 = vector.shape_cast %296 : vector<32xf32> to vector<32x1xf32>
    %298 = tpu.reciprocal %297 {approx = true} : vector<32x1xf32> -> vector<32x1xf32>
    %299 = vector.broadcast %298 : vector<32x1xf32> to vector<32x32xf32>
    %300 = arith.mulf %295, %299 : vector<32x32xf32>
    %cst_121 = arith.constant dense<0.000000e+00> : vector<32x8xf32>
    %301 = tpu.matmul %300, %286, %cst_121 {dimension_numbers = #tpu.dot_dimension_numbers<[1], [0], [0], [1], [0, 0, 1, 1], [], []>} : vector<32x32xf32>, vector<32x8xf32>, vector<32x8xf32> -> vector<32x8xf32>
    %302 = vector.extract_strided_slice %219 {offsets = [24, 0], sizes = [8, 32], strides = [1, 1]} : vector<32x32xf32> to vector<8x32xf32>
    %cst_122 = arith.constant dense<0.000000e+00> : vector<32x32xf32>
    %303 = tpu.matmul %301, %302, %cst_122 {dimension_numbers = #tpu.dot_dimension_numbers<[1], [0], [0], [1], [0, 0, 1, 1], [], []>} : vector<32x8xf32>, vector<8x32xf32>, vector<32x32xf32> -> vector<32x32xf32>
    %304 = arith.addf %283, %303 : vector<32x32xf32>
    %c1_123 = arith.constant 1 : index
    %c0_124 = arith.constant 0 : index
    %c0_125 = arith.constant 0 : index
    %305 = vector.load %arg8[%c1_123, %c0_124, %c0_125] : memref<2x1x32xf32, #tpu.memory_space<vmem>>, vector<1x1x32xf32>
    %306 = vector.shape_cast %305 : vector<1x1x32xf32> to vector<1x32xf32>
    %307 = vector.broadcast %306 : vector<1x32xf32> to vector<32x32xf32>
    %308 = arith.addf %304, %307 : vector<32x32xf32>
    %309 = arith.addf %308, %210 : vector<32x32xf32>
    %c1_126 = arith.constant 1 : index
    %c0_127 = arith.constant 0 : index
    %c0_128 = arith.constant 0 : index
    %310 = vector.load %arg9[%c1_126, %c0_127, %c0_128] : memref<2x1x32xf32, #tpu.memory_space<vmem>>, vector<1x1x32xf32>
    %311 = vector.shape_cast %310 : vector<1x1x32xf32> to vector<1x32xf32>
    %c1_129 = arith.constant 1 : index
    %c0_130 = arith.constant 0 : index
    %c0_131 = arith.constant 0 : index
    %312 = vector.load %arg10[%c1_129, %c0_130, %c0_131] : memref<2x1x32xf32, #tpu.memory_space<vmem>>, vector<1x1x32xf32>
    %313 = vector.shape_cast %312 : vector<1x1x32xf32> to vector<1x32xf32>
    %cst_132 = arith.constant dense<0.000000e+00> : vector<32xf32>
    %314 = vector.multi_reduction <add>, %309, %cst_132 [1] : vector<32x32xf32> to vector<32xf32>
    %315 = vector.shape_cast %314 : vector<32xf32> to vector<32x1xf32>
    %cst_133 = arith.constant 3.200000e+01 : f32
    %316 = vector.broadcast %cst_133 : f32 to vector<32x1xf32>
    %317 = arith.divf %315, %316 : vector<32x1xf32>
    %318 = vector.broadcast %317 : vector<32x1xf32> to vector<32x32xf32>
    %319 = arith.subf %309, %318 : vector<32x32xf32>
    %320 = vector.broadcast %317 : vector<32x1xf32> to vector<32x32xf32>
    %321 = arith.subf %309, %320 : vector<32x32xf32>
    %322 = arith.mulf %319, %321 : vector<32x32xf32>
    %cst_134 = arith.constant dense<0.000000e+00> : vector<32xf32>
    %323 = vector.multi_reduction <add>, %322, %cst_134 [1] : vector<32x32xf32> to vector<32xf32>
    %324 = vector.shape_cast %323 : vector<32xf32> to vector<32x1xf32>
    %cst_135 = arith.constant 3.200000e+01 : f32
    %325 = vector.broadcast %cst_135 : f32 to vector<32x1xf32>
    %326 = arith.divf %324, %325 : vector<32x1xf32>
    %327 = vector.broadcast %317 : vector<32x1xf32> to vector<32x32xf32>
    %328 = arith.subf %309, %327 : vector<32x32xf32>
    %cst_136 = arith.constant 9.99999996E-13 : f32
    %329 = vector.broadcast %cst_136 : f32 to vector<32x1xf32>
    %330 = arith.addf %326, %329 : vector<32x1xf32>
    %331 = math.rsqrt %330 : vector<32x1xf32>
    %332 = vector.broadcast %331 : vector<32x1xf32> to vector<32x32xf32>
    %333 = arith.mulf %328, %332 : vector<32x32xf32>
    %334 = vector.broadcast %311 : vector<1x32xf32> to vector<32x32xf32>
    %335 = arith.mulf %333, %334 : vector<32x32xf32>
    %336 = vector.broadcast %313 : vector<1x32xf32> to vector<32x32xf32>
    %337 = arith.addf %335, %336 : vector<32x32xf32>
    %c1_137 = arith.constant 1 : index
    %c0_138 = arith.constant 0 : index
    %c0_139 = arith.constant 0 : index
    %338 = vector.load %arg11[%c1_137, %c0_138, %c0_139] : memref<2x32x64xf32, #tpu.memory_space<vmem>>, vector<1x32x64xf32>
    %339 = vector.shape_cast %338 : vector<1x32x64xf32> to vector<32x64xf32>
    %cst_140 = arith.constant dense<0.000000e+00> : vector<32x64xf32>
    %340 = tpu.matmul %337, %339, %cst_140 {dimension_numbers = #tpu.dot_dimension_numbers<[1], [0], [0], [1], [0, 0, 1, 1], [], []>} : vector<32x32xf32>, vector<32x64xf32>, vector<32x64xf32> -> vector<32x64xf32>
    %c1_141 = arith.constant 1 : index
    %c0_142 = arith.constant 0 : index
    %c0_143 = arith.constant 0 : index
    %341 = vector.load %arg12[%c1_141, %c0_142, %c0_143] : memref<2x1x64xf32, #tpu.memory_space<vmem>>, vector<1x1x64xf32>
    %342 = vector.shape_cast %341 : vector<1x1x64xf32> to vector<1x64xf32>
    %343 = vector.broadcast %342 : vector<1x64xf32> to vector<32x64xf32>
    %344 = arith.addf %340, %343 : vector<32x64xf32>
    %cst_144 = arith.constant 5.000000e-01 : f32
    %345 = vector.broadcast %cst_144 : f32 to vector<32x64xf32>
    %346 = arith.mulf %345, %344 : vector<32x64xf32>
    %347 = arith.mulf %344, %344 : vector<32x64xf32>
    %348 = arith.mulf %347, %344 : vector<32x64xf32>
    %cst_145 = arith.constant 4.471500e-02 : f32
    %349 = vector.broadcast %cst_145 : f32 to vector<32x64xf32>
    %350 = arith.mulf %349, %348 : vector<32x64xf32>
    %351 = arith.addf %344, %350 : vector<32x64xf32>
    %cst_146 = arith.constant 0.797884583 : f32
    %352 = vector.broadcast %cst_146 : f32 to vector<32x64xf32>
    %353 = arith.mulf %352, %351 : vector<32x64xf32>
    %354 = math.tanh %353 : vector<32x64xf32>
    %cst_147 = arith.constant 1.000000e+00 : f32
    %355 = vector.broadcast %cst_147 : f32 to vector<32x64xf32>
    %356 = arith.addf %355, %354 : vector<32x64xf32>
    %357 = arith.mulf %346, %356 : vector<32x64xf32>
    %c1_148 = arith.constant 1 : index
    %c0_149 = arith.constant 0 : index
    %c0_150 = arith.constant 0 : index
    %358 = vector.load %arg13[%c1_148, %c0_149, %c0_150] : memref<2x64x32xf32, #tpu.memory_space<vmem>>, vector<1x64x32xf32>
    %359 = vector.shape_cast %358 : vector<1x64x32xf32> to vector<64x32xf32>
    %cst_151 = arith.constant dense<0.000000e+00> : vector<32x32xf32>
    %360 = tpu.matmul %357, %359, %cst_151 {dimension_numbers = #tpu.dot_dimension_numbers<[1], [0], [0], [1], [0, 0, 1, 1], [], []>} : vector<32x64xf32>, vector<64x32xf32>, vector<32x32xf32> -> vector<32x32xf32>
    %c1_152 = arith.constant 1 : index
    %c0_153 = arith.constant 0 : index
    %c0_154 = arith.constant 0 : index
    %361 = vector.load %arg14[%c1_152, %c0_153, %c0_154] : memref<2x1x32xf32, #tpu.memory_space<vmem>>, vector<1x1x32xf32>
    %362 = vector.shape_cast %361 : vector<1x1x32xf32> to vector<1x32xf32>
    %363 = vector.broadcast %362 : vector<1x32xf32> to vector<32x32xf32>
    %364 = arith.addf %360, %363 : vector<32x32xf32>
    %365 = arith.addf %364, %337 : vector<32x32xf32>
    %c1_155 = arith.constant 1 : index
    %c0_156 = arith.constant 0 : index
    %c0_157 = arith.constant 0 : index
    %366 = vector.load %arg15[%c1_155, %c0_156, %c0_157] : memref<2x1x32xf32, #tpu.memory_space<vmem>>, vector<1x1x32xf32>
    %367 = vector.shape_cast %366 : vector<1x1x32xf32> to vector<1x32xf32>
    %c1_158 = arith.constant 1 : index
    %c0_159 = arith.constant 0 : index
    %c0_160 = arith.constant 0 : index
    %368 = vector.load %arg16[%c1_158, %c0_159, %c0_160] : memref<2x1x32xf32, #tpu.memory_space<vmem>>, vector<1x1x32xf32>
    %369 = vector.shape_cast %368 : vector<1x1x32xf32> to vector<1x32xf32>
    %cst_161 = arith.constant dense<0.000000e+00> : vector<32xf32>
    %370 = vector.multi_reduction <add>, %365, %cst_161 [1] : vector<32x32xf32> to vector<32xf32>
    %371 = vector.shape_cast %370 : vector<32xf32> to vector<32x1xf32>
    %cst_162 = arith.constant 3.200000e+01 : f32
    %372 = vector.broadcast %cst_162 : f32 to vector<32x1xf32>
    %373 = arith.divf %371, %372 : vector<32x1xf32>
    %374 = vector.broadcast %373 : vector<32x1xf32> to vector<32x32xf32>
    %375 = arith.subf %365, %374 : vector<32x32xf32>
    %376 = vector.broadcast %373 : vector<32x1xf32> to vector<32x32xf32>
    %377 = arith.subf %365, %376 : vector<32x32xf32>
    %378 = arith.mulf %375, %377 : vector<32x32xf32>
    %cst_163 = arith.constant dense<0.000000e+00> : vector<32xf32>
    %379 = vector.multi_reduction <add>, %378, %cst_163 [1] : vector<32x32xf32> to vector<32xf32>
    %380 = vector.shape_cast %379 : vector<32xf32> to vector<32x1xf32>
    %cst_164 = arith.constant 3.200000e+01 : f32
    %381 = vector.broadcast %cst_164 : f32 to vector<32x1xf32>
    %382 = arith.divf %380, %381 : vector<32x1xf32>
    %383 = vector.broadcast %373 : vector<32x1xf32> to vector<32x32xf32>
    %384 = arith.subf %365, %383 : vector<32x32xf32>
    %cst_165 = arith.constant 9.99999996E-13 : f32
    %385 = vector.broadcast %cst_165 : f32 to vector<32x1xf32>
    %386 = arith.addf %382, %385 : vector<32x1xf32>
    %387 = math.rsqrt %386 : vector<32x1xf32>
    %388 = vector.broadcast %387 : vector<32x1xf32> to vector<32x32xf32>
    %389 = arith.mulf %384, %388 : vector<32x32xf32>
    %390 = vector.broadcast %367 : vector<1x32xf32> to vector<32x32xf32>
    %391 = arith.mulf %389, %390 : vector<32x32xf32>
    %392 = vector.broadcast %369 : vector<1x32xf32> to vector<32x32xf32>
    %393 = arith.addf %391, %392 : vector<32x32xf32>
    %c0_166 = arith.constant 0 : index
    %c0_167 = arith.constant 0 : index
    %394 = vector.load %arg2[%c0_166, %c0_167] : memref<4x32xf32, #tpu.memory_space<vmem>>, vector<4x32xf32>
    %cst_168 = arith.constant dense<0.000000e+00> : vector<4x32xf32>
    %395 = tpu.matmul %394, %393, %cst_168 {dimension_numbers = #tpu.dot_dimension_numbers<[1], [0], [0], [1], [0, 0, 1, 1], [], []>} : vector<4x32xf32>, vector<32x32xf32>, vector<4x32xf32> -> vector<4x32xf32>
    %c0_169 = arith.constant 0 : index
    %c0_170 = arith.constant 0 : index
    %396 = vector.load %arg17[%c0_169, %c0_170] : memref<32x32xf32, #tpu.memory_space<vmem>>, vector<32x32xf32>
    %cst_171 = arith.constant dense<0.000000e+00> : vector<4x32xf32>
    %397 = tpu.matmul %395, %396, %cst_171 {dimension_numbers = #tpu.dot_dimension_numbers<[1], [0], [0], [1], [0, 0, 1, 1], [], []>} : vector<4x32xf32>, vector<32x32xf32>, vector<4x32xf32> -> vector<4x32xf32>
    %c0_172 = arith.constant 0 : index
    %c0_173 = arith.constant 0 : index
    %398 = vector.load %arg18[%c0_172, %c0_173] : memref<1x32xf32, #tpu.memory_space<vmem>>, vector<1x32xf32>
    %399 = vector.broadcast %398 : vector<1x32xf32> to vector<4x32xf32>
    %400 = arith.addf %397, %399 : vector<4x32xf32>
    %401 = math.tanh %400 : vector<4x32xf32>
    %c0_174 = arith.constant 0 : index
    %c0_175 = arith.constant 0 : index
    %402 = vector.load %arg19[%c0_174, %c0_175] : memref<1x64xf32, #tpu.memory_space<vmem>>, vector<1x64xf32>
    %c0_176 = arith.constant 0 : index
    %c0_177 = arith.constant 0 : index
    %403 = vector.load %arg20[%c0_176, %c0_177] : memref<1x64xf32, #tpu.memory_space<vmem>>, vector<1x64xf32>
    %c0_178 = arith.constant 0 : index
    %c0_179 = arith.constant 0 : index
    %404 = vector.load %arg21[%c0_178, %c0_179] : memref<1x64xf32, #tpu.memory_space<vmem>>, vector<1x64xf32>
    %c0_180 = arith.constant 0 : index
    %c0_181 = arith.constant 0 : index
    %405 = vector.load %arg22[%c0_180, %c0_181] : memref<1x64xf32, #tpu.memory_space<vmem>>, vector<1x64xf32>
    %c0_182 = arith.constant 0 : index
    %c0_183 = arith.constant 0 : index
    %406 = vector.load %arg23[%c0_182, %c0_183] : memref<1x64xf32, #tpu.memory_space<vmem>>, vector<1x64xf32>
    %407 = vector.extract_strided_slice %401 {offsets = [0, 0], sizes = [2, 32], strides = [1, 1]} : vector<4x32xf32> to vector<2x32xf32>
    %408 = vector.extract_strided_slice %404 {offsets = [0, 0], sizes = [1, 32], strides = [1, 1]} : vector<1x64xf32> to vector<1x32xf32>
    %409 = vector.broadcast %408 : vector<1x32xf32> to vector<2x32xf32>
    %410 = arith.subf %407, %409 : vector<2x32xf32>
    %411 = vector.extract_strided_slice %405 {offsets = [0, 0], sizes = [1, 32], strides = [1, 1]} : vector<1x64xf32> to vector<1x32xf32>
    %cst_184 = arith.constant 9.99999974E-6 : f32
    %412 = vector.broadcast %cst_184 : f32 to vector<1x32xf32>
    %413 = arith.addf %411, %412 : vector<1x32xf32>
    %414 = math.rsqrt %413 : vector<1x32xf32>
    %415 = vector.broadcast %414 : vector<1x32xf32> to vector<2x32xf32>
    %416 = arith.mulf %410, %415 : vector<2x32xf32>
    %417 = vector.extract_strided_slice %402 {offsets = [0, 0], sizes = [1, 32], strides = [1, 1]} : vector<1x64xf32> to vector<1x32xf32>
    %418 = vector.broadcast %417 : vector<1x32xf32> to vector<2x32xf32>
    %419 = arith.mulf %416, %418 : vector<2x32xf32>
    %420 = vector.extract_strided_slice %403 {offsets = [0, 0], sizes = [1, 32], strides = [1, 1]} : vector<1x64xf32> to vector<1x32xf32>
    %421 = vector.broadcast %420 : vector<1x32xf32> to vector<2x32xf32>
    %422 = arith.addf %419, %421 : vector<2x32xf32>
    %cst_185 = arith.constant 0.000000e+00 : f32
    %423 = vector.broadcast %cst_185 : f32 to vector<2x32xf32>
    %424 = arith.maximumf %422, %423 : vector<2x32xf32>
    %425 = vector.extract_strided_slice %401 {offsets = [2, 0], sizes = [2, 32], strides = [1, 1]} : vector<4x32xf32> to vector<2x32xf32>
    %426 = vector.extract_strided_slice %404 {offsets = [0, 32], sizes = [1, 32], strides = [1, 1]} : vector<1x64xf32> to vector<1x32xf32>
    %427 = vector.broadcast %426 : vector<1x32xf32> to vector<2x32xf32>
    %428 = arith.subf %425, %427 : vector<2x32xf32>
    %429 = vector.extract_strided_slice %405 {offsets = [0, 32], sizes = [1, 32], strides = [1, 1]} : vector<1x64xf32> to vector<1x32xf32>
    %cst_186 = arith.constant 9.99999974E-6 : f32
    %430 = vector.broadcast %cst_186 : f32 to vector<1x32xf32>
    %431 = arith.addf %429, %430 : vector<1x32xf32>
    %432 = math.rsqrt %431 : vector<1x32xf32>
    %433 = vector.broadcast %432 : vector<1x32xf32> to vector<2x32xf32>
    %434 = arith.mulf %428, %433 : vector<2x32xf32>
    %435 = vector.extract_strided_slice %402 {offsets = [0, 32], sizes = [1, 32], strides = [1, 1]} : vector<1x64xf32> to vector<1x32xf32>
    %436 = vector.broadcast %435 : vector<1x32xf32> to vector<2x32xf32>
    %437 = arith.mulf %434, %436 : vector<2x32xf32>
    %438 = vector.extract_strided_slice %403 {offsets = [0, 32], sizes = [1, 32], strides = [1, 1]} : vector<1x64xf32> to vector<1x32xf32>
    %439 = vector.broadcast %438 : vector<1x32xf32> to vector<2x32xf32>
    %440 = arith.addf %437, %439 : vector<2x32xf32>
    %cst_187 = arith.constant 0.000000e+00 : f32
    %441 = vector.broadcast %cst_187 : f32 to vector<2x32xf32>
    %442 = arith.maximumf %440, %441 : vector<2x32xf32>
    %443 = vector.extract_strided_slice %406 {offsets = [0, 0], sizes = [1, 32], strides = [1, 1]} : vector<1x64xf32> to vector<1x32xf32>
    %444 = vector.broadcast %443 : vector<1x32xf32> to vector<2x32xf32>
    %445 = arith.mulf %424, %444 : vector<2x32xf32>
    %cst_188 = arith.constant dense<0.000000e+00> : vector<2xf32>
    %446 = vector.multi_reduction <add>, %445, %cst_188 [1] : vector<2x32xf32> to vector<2xf32>
    %447 = vector.shape_cast %446 : vector<2xf32> to vector<2x1xf32>
    %448 = vector.extract_strided_slice %406 {offsets = [0, 32], sizes = [1, 32], strides = [1, 1]} : vector<1x64xf32> to vector<1x32xf32>
    %449 = vector.broadcast %448 : vector<1x32xf32> to vector<2x32xf32>
    %450 = arith.mulf %442, %449 : vector<2x32xf32>
    %cst_189 = arith.constant dense<0.000000e+00> : vector<2xf32>
    %451 = vector.multi_reduction <add>, %450, %cst_189 [1] : vector<2x32xf32> to vector<2xf32>
    %452 = vector.shape_cast %451 : vector<2xf32> to vector<2x1xf32>
    %453 = arith.addf %447, %452 : vector<2x1xf32>
    %c0_190 = arith.constant 0 : index
    %c0_191 = arith.constant 0 : index
    %454 = vector.load %arg24[%c0_190, %c0_191] : memref<1x1xf32, #tpu.memory_space<vmem>>, vector<1x1xf32>
    %455 = vector.broadcast %454 : vector<1x1xf32> to vector<2x1xf32>
    %456 = arith.addf %453, %455 : vector<2x1xf32>
    %c0_192 = arith.constant 0 : index
    %c0_193 = arith.constant 0 : index
    %457 = vector.load %arg25[%c0_192, %c0_193] : memref<2x1xf32, #tpu.memory_space<vmem>>, vector<2x1xf32>
    tpu.vector_store %arg25[%c0_192, %c0_193], %456 {strides = array<i32>} : memref<2x1xf32, #tpu.memory_space<vmem>>, vector<2x1xf32>,
    return
  }
}

</mosaic_0001>

<bundles_post_ra>
// kernel: text_twin_forward.1
= control target key start
LH: loop header
LB: loop body
LE: loop exit
PB: predicated region body
PF: predicated region fallthrough
CT: control target
= control target key end

     0   :  { %vm88_vm0 = vcmask 261120   ;;  %v3344_v8 = vmov 32.0   ;;  %s4661_s29 = smov 120   ;;  %vm267_vm14 = vcmask 64512   ;;  %s4651_s30 = smov 112   ;;  %s4613_s0 = inlined_call_operand.vmem [shape: f32[32,32], index: 0, kind: input, shape index: {}]   ;;  %s4614_s3 = inlined_call_operand.vmem [shape: f32[1,32], index: 3, kind: input, shape index: {}]   ;;  %s4615_s4 = inlined_call_operand.vmem [shape: f32[1,32], index: 4, kind: input, shape index: {}]   ;;  %s4616_s6 = inlined_call_operand.vmem [shape: f32[2,1,96], index: 6, kind: input, shape index: {}]   ;;  %s4617_s5 = inlined_call_operand.vmem [shape: f32[2,32,96], index: 5, kind: input, shape index: {}]   ;;  %s4618_s1 = inlined_call_operand.vmem [shape: f32[32,32], index: 1, kind: input, shape index: {}]   ;;  %s4619_s7 = inlined_call_operand.vmem [shape: f32[2,32,32], index: 7, kind: input, shape index: {}]   ;;  %s4620_s8 = inlined_call_operand.vmem [shape: f32[2,1,32], index: 8, kind: input, shape index: {}]   ;;  %s4621_s9 = inlined_call_operand.vmem [shape: f32[2,1,32], index: 9, kind: input, shape index: {}]   ;;  %s4622_s10 = inlined_call_operand.vmem [shape: f32[2,1,32], index: 10, kind: input, shape index: {}]   ;;  %s4623_s12 = inlined_call_operand.vmem [shape: f32[2,1,64], index: 12, kind: input, shape index: {}]   ;;  %s4624_s11 = inlined_call_operand.vmem [shape: f32[2,32,64], index: 11, kind: input, shape index: {}]   ;;  %s4625_s14 = inlined_call_operand.vmem [shape: f32[2,1,32], index: 14, kind: input, shape index: {}]   ;;  %s4626_s13 = inlined_call_operand.vmem [shape: f32[2,64,32], index: 13, kind: input, shape index: {}]   ;;  %s4627_s15 = inlined_call_operand.vmem [shape: f32[2,1,32], index: 15, kind: input, shape index: {}]   ;;  %s4628_s16 = inlined_call_operand.vmem [shape: f32[2,1,32], index: 16, kind: input, shape index: {}]   ;;  %s4629_s17 = inlined_call_operand.vmem [shape: f32[32,32], index: 17, kind: input, shape index: {}]   ;;  %s4630_s2 = inlined_call_operand.vmem [shape: f32[4,32], index: 2, kind: input, shape index: {}]   ;;  %s4631_s19 = inlined_call_operand.vmem [shape: f32[1,64], index: 19, kind: input, shape index: {}]   ;;  %s4632_s23 = inlined_call_operand.vmem [shape: f32[1,64], index: 23, kind: input, shape index: {}]   ;;  %s4633_s21 = inlined_call_operand.vmem [shape: f32[1,64], index: 21, kind: input, shape index: {}]   ;;  %s4634_s20 = inlined_call_operand.vmem [shape: f32[1,64], index: 20, kind: input, shape index: {}]   ;;  %s4635_s18 = inlined_call_operand.vmem [shape: f32[1,32], index: 18, kind: input, shape index: {}]   ;;  %s4636_s22 = inlined_call_operand.vmem [shape: f32[1,64], index: 22, kind: input, shape index: {}]   ;;  %s4637_s24 = inlined_call_operand.<no memory space> [shape: f32[1,1], index: 24, kind: input, shape index: {}]   ;;  %s4638_s25 = inlined_call_operand.vmem [shape: f32[2,1], index: 25, kind: output, shape index: {}]  }
   0x1   :  { %4669 = sst [smem:[#allocation3_spill]] %s4613_s0  ;;  %3150 = vrcp.f32 %v3344_v8  ;;  %s4663_s0 = smov 88  }
   0x2   :  { %4670 = sst [smem:[#allocation4_spill]] %s4614_s3  ;;  %s4659_s26 = smov 72  }
   0x3   :  { %4671 = sst [smem:[#allocation5_spill]] %s4615_s4  ;;  %s4657_s4 = smov 80  }
   0x4   :  { %4672 = sst [smem:[#allocation6_spill]] %s4616_s6  ;;  %s4653_s3 = smov 104  }
   0x5   :  { %4673 = sst [smem:[#allocation7_spill]] %s4617_s5  ;;  %s4655_s27 = smov 40  }
   0x6   :  { %4674 = sst [smem:[#allocation8_spill]] %s4618_s1  ;;  %s4667_s1 = smov 96  }
   0x7   :  { %4675 = sst [smem:[#allocation9_spill]] %s4619_s7  ;;  %v3151_v9 = vpop.eup %3150 }
   0x8   :  { %4676 = sst [smem:[#allocation10_spill]] %s4620_s8  ;;  %v102_v10 = vmul.f32 32.0, %v3151_v9  ;;  %vm106_vm1 = vweird.f32 %v3151_v9 }
   0x9   :  { %4677 = sst [smem:[#allocation11_spill]] %s4621_s9 }
   0xa   :  { %4678 = sst [smem:[#allocation12_spill]] %s4622_s10  ;;  %v103_v11 = vsub.f32 1.0, %v102_v10 }
   0xb   :  { %4679 = sst [smem:[#allocation13_spill]] %s4637_s24  ;;  %s4700_s24 = smov 48  }
   0xc   :  { %4680 = sst [smem:[#allocation14_spill]] %s4638_s25  ;;  %v104_v12 = vmul.f32 %v3151_v9, %v103_v11  ;;  %s4701_s25 = smov 40  }
   0xd   :  { %s4681_s7 = sld [smem:[#allocation3_spill]] }
   0xe   :  { %v105_v13 = vadd.f32 %v3151_v9, %v104_v12  ;;  %s4682_s28 = sld [smem:[#allocation7_spill]] }
   0xf   :  { %s4683_s6 = sld [smem:[#allocation4_spill]] }
  0x10   :  { %v3502_v14 = vsel %vm106_vm1, %v3151_v9, %v105_v13  ;;  %s4684_s9 = sld [smem:[#allocation5_spill]] }
  0x11   :  { %s4685_s10 = sld [smem:[#allocation6_spill]] }
  0x12   :  { %s4686_s8 = sld [smem:[#allocation8_spill]] }
  0x13   :  { %v84_v0 = vld [vmem:[%s4681_s7 + $0x10] sm:$0xff]  ;;  %v82_v1 = vld [vmem:[%s4681_s7] sm:$0xff]  ;;  %v85_v4 = vld [vmem:[%s4681_s7 + $0x18] sm:$0xff]  ;;  %s4687_s5 = sld [smem:[#allocation9_spill]] }
  0x14   :  { %v95_v2 = vsel %vm88_vm0, %v84_v0, 0.0  ;;  %v89_v3 = vsel %vm88_vm0, %v82_v1, 0.0  ;;  %v83_v5 = vld [vmem:[%s4681_s7 + $0x8] sm:$0xff]  ;;  %v98_v6 = vsel %vm88_vm0, %v85_v4, 0.0  ;;  %v205_v35 = vld [vmem:[%s4682_s28 + $0x18] sm:$0xff]  ;;  %v204_v36 = vld [vmem:[%s4682_s28 + $0x10] sm:$0xff] }
  0x15   :  { %96 = vadd.xlane.f32.xlu1 %v95_v2  ;;  %90 = vadd.xlane.f32.xlu0 %v89_v3  ;;  %v92_v7 = vsel %vm88_vm0, %v83_v5, 0.0  ;;  %v203_v37 = vld [vmem:[%s4682_s28 + $0x8] sm:$0xff]  ;;  %v202_v38 = vld [vmem:[%s4682_s28] sm:$0xff]  ;;  %s4665_s7 = smov 64  }
  0x16   :  { %234 = vmatpush.msra.mxu0 %v205_v35 }
  0x18   :  { %235 = vmatpush.msra.mxu0 %v204_v36 }
  0x1a   :  { %236 = vmatpush.msra.mxu0 %v203_v37 }
  0x1c   :  { %237 = vmatpush.msra.mxu0 %v202_v38 }
  0x1d   :  { %99 = vadd.xlane.f32.xlu1 %v98_v6  ;;  %93 = vadd.xlane.f32.xlu0 %v92_v7 }
  0x88   :  { %v97_v15 = vpop.xlane.xlu1 %96  ;;  %v91_v16 = vpop.xlane.xlu0 %90 }
  0x89   :  { %v110_v17 = vmul.f32 %v3502_v14, %v97_v15  ;;  %v108_v18 = vmul.f32 %v3502_v14, %v91_v16 }
  0x8b   :  { %v3506_v19 = vsub.f32 %v84_v0, %v110_v17  ;;  %v3508_v20 = vsub.f32 %v82_v1, %v108_v18  ;;  %v3126_v1 = vld [vmem:[%s4683_s6] ss:$0 sm:$0xff]  ;;  %s4649_s6 = smov 56  }
  0x8d   :  { %v118_v21 = vmul.f32 %v3506_v19, %v3506_v19  ;;  %v116_v22 = vmul.f32 %v3508_v20, %v3508_v20 }
  0x8f   :  { %v126_v23 = vsel %vm88_vm0, %v118_v21, 0.0  ;;  %v120_v24 = vsel %vm88_vm0, %v116_v22, 0.0 }
  0x90   :  { %v100_v25 = vpop.xlane.xlu1 %99  ;;  %127 = vadd.xlane.f32.xlu0 %v126_v23  ;;  %121 = vadd.xlane.f32.xlu2 %v120_v24  ;;  %v94_v26 = vpop.xlane.xlu0 %93 }
  0x91   :  { %v111_v27 = vmul.f32 %v3502_v14, %v100_v25  ;;  %v109_v28 = vmul.f32 %v3502_v14, %v94_v26 }
  0x93   :  { %v3518_v29 = vsub.f32 %v85_v4, %v111_v27  ;;  %v3520_v30 = vsub.f32 %v83_v5, %v109_v28  ;;  %v3127_v5 = vld [vmem:[%s4684_s9] ss:$0 sm:$0xff]  ;;  %s4647_s9 = smov 48  }
  0x95   :  { %v119_v31 = vmul.f32 %v3518_v29, %v3518_v29  ;;  %v117_v32 = vmul.f32 %v3520_v30, %v3520_v30 }
  0x97   :  { %v129_v33 = vsel %vm88_vm0, %v119_v31, 0.0  ;;  %v123_v34 = vsel %vm88_vm0, %v117_v32, 0.0  ;;  %v3128_v32 = vld [vmem:[%s4685_s10] ss:$0 sm:$0xff] }
  0x98   :  { %130 = vadd.xlane.f32.xlu1 %v129_v33  ;;  %124 = vadd.xlane.f32.xlu2 %v123_v34 }
 0x103   :  { %v122_v39 = vpop.xlane.xlu2 %121  ;;  %v128_v40 = vpop.xlane.xlu0 %127 }
 0x104   :  { %v132_v41 = vmul.f32 %v122_v39, %v3502_v14  ;;  %v134_v42 = vmul.f32 %v128_v40, %v3502_v14 }
 0x106   :  { %v136_v43 = vadd.f32 1e-12, %v132_v41  ;;  %v138_v44 = vadd.f32 1e-12, %v134_v42 }
 0x108   :  { %3152 = vrsqrt.f32 %v136_v43  ;;  %vm146_vm3 = vweird.f32 %v136_v43  ;;  %vm166_vm5 = vweird.f32 %v138_v44 }
 0x109   :  { %3154 = vrsqrt.f32 %v138_v44 }
 0x10b   :  { %v131_v45 = vpop.xlane.xlu1 %130  ;;  %v125_v46 = vpop.xlane.xlu2 %124 }
 0x10c   :  { %v135_v47 = vmul.f32 %v131_v45, %v3502_v14  ;;  %v133_v48 = vmul.f32 %v125_v46, %v3502_v14 }
 0x10e   :  { %v3153_v49 = vpop.eup %3152  ;;  %v139_v50 = vadd.f32 1e-12, %v135_v47  ;;  %v137_v51 = vadd.f32 1e-12, %v133_v48 }
 0x10f   :  { %v3155_v52 = vpop.eup %3154  ;;  %v141_v53 = vmul.f32 %v3153_v49, %v136_v43  ;;  %vm147_vm2 = vweird.f32 %v3153_v49 }
 0x110   :  { %v161_v54 = vmul.f32 %v3155_v52, %v138_v44  ;;  %3156 = vrsqrt.f32 %v139_v50  ;;  %vm148_vm4 = vmor %vm146_vm3, %vm147_vm2  ;;  %vm167_vm6 = vweird.f32 %v3155_v52  ;;  %vm156_vm9 = vweird.f32 %v137_v51 }
 0x111   :  { %v142_v55 = vmul.f32 %v3153_v49, %v141_v53  ;;  %3158 = vrsqrt.f32 %v137_v51  ;;  %vm168_vm8 = vmor %vm166_vm5, %vm167_vm6  ;;  %vm176_vm11 = vweird.f32 %v139_v50 }
 0x112   :  { %v162_v57 = vmul.f32 %v3155_v52, %v161_v54  ;;  %v3634_v54 = vld [vmem:[%s4686_s8] sm:$0xff] }
 0x113   :  { %v143_v56 = vmul.f32 0.5, %v142_v55 }
 0x114   :  { %v163_v62 = vmul.f32 0.5, %v162_v57 }
 0x115   :  { %v144_v58 = vsub.f32 1.5, %v143_v56 }
 0x116   :  { %v3157_v59 = vpop.eup %3156  ;;  %v164_v6 = vsub.f32 1.5, %v163_v62 }
 0x117   :  { %v3159_v60 = vpop.eup %3158  ;;  %v145_v61 = vmul.f32 %v3153_v49, %v144_v58  ;;  %v171_v63 = vmul.f32 %v3157_v59, %v139_v50  ;;  %vm177_vm12 = vweird.f32 %v3157_v59 }
 0x118   :  { %v151_v0 = vmul.f32 %v3159_v60, %v137_v51  ;;  %vm157_vm7 = vweird.f32 %v3159_v60  ;;  %v165_v12 = vmul.f32 %v3155_v52, %v164_v6  ;;  %vm178_vm13 = vmor %vm176_vm11, %vm177_vm12  ;;  %vm1301_vm12 = vcmask 523264  }
 0x119   :  { %v149_v2 = vsel %vm148_vm4, %v3153_v49, %v145_v61  ;;  %v172_v7 = vmul.f32 %v3157_v59, %v171_v63  ;;  %vm158_vm10 = vmor %vm156_vm9, %vm157_vm7 }
 0x11a   :  { %v152_v3 = vmul.f32 %v3159_v60, %v151_v0  ;;  %v180_v4 = vmul.f32 %v149_v2, %v3508_v20  ;;  %v169_v20 = vsel %vm168_vm8, %v3155_v52, %v165_v12  ;;  %v3648_v0 = vld [vmem:[%s4686_s8 + $0x10] sm:$0xff] }
 0x11b   :  { %v173_v13 = vmul.f32 0.5, %v172_v7  ;;  %v182_v23 = vmul.f32 %v169_v20, %v3506_v19 }
 0x11c   :  { %v153_v8 = vmul.f32 0.5, %v152_v3  ;;  %v187_v9 = vmul.f32 %v3126_v1, %v180_v4 }
 0x11d   :  { %v174_v18 = vsub.f32 1.5, %v173_v13  ;;  %v189_v25 = vmul.f32 %v3126_v1, %v182_v23 }
 0x11e   :  { %v154_v10 = vsub.f32 1.5, %v153_v8  ;;  %v3551_v11 = vadd.f32 %v3127_v5, %v187_v9 }
 0x11f   :  { %v175_v24 = vmul.f32 %v3157_v59, %v174_v18  ;;  %v3561_v27 = vadd.f32 %v3127_v5, %v189_v25 }
 0x120   :  { %v155_v15 = vmul.f32 %v3159_v60, %v154_v10  ;;  %2847 = vmatmul.msk.f32.vlgmr.msra.gmra.mxu0 %vm88_vm0, %v3551_v11 }
 0x121   :  { %v179_v26 = vsel %vm178_vm13, %v3157_v59, %v175_v24  ;;  %v3641_v59 = vld [vmem:[%s4686_s8 + $0x8] sm:$0xff] }
 0x122   :  { %v159_v16 = vsel %vm158_vm10, %v3159_v60, %v155_v15  ;;  %v183_v28 = vmul.f32 %v179_v26, %v3518_v29 }
 0x123   :  { %v181_v17 = vmul.f32 %v159_v16, %v3520_v30 }
 0x124   :  { %v190_v30 = vmul.f32 %v3126_v1, %v183_v28 }
 0x125   :  { %v188_v21 = vmul.f32 %v3126_v1, %v181_v17 }
 0x126   :  { %v3566_v31 = vadd.f32 %v3127_v5, %v190_v30 }
 0x127   :  { %v3556_v22 = vadd.f32 %v3127_v5, %v188_v21  ;;  %v3655_v5 = vld [vmem:[%s4686_s8 + $0x18] sm:$0xff] }
 0x129   :  { %2848 = vmatmul.msk.f32.gmra.mxu0 %vm88_vm0, %v3556_v22 }
 0x131   :  { %2849 = vmatmul.msk.f32.gmra.mxu0 %vm88_vm0, %v3561_v27 }
 0x139   :  { %2850 = vmatmul.msk.f32.gmra.mxu0 %vm88_vm0, %v3566_v31 }
 0x19d   :  { %v239_v19 = vpop.f32.mrf.mxu0 }
 0x19e   :  { %v3591_v38 = vadd.f32 %v3128_v32, %v239_v19 }
 0x1a6   :  { %v242_v33 = vpop.f32.mrf.mxu0 }
 0x1a7   :  { %v3573_v34 = vadd.f32 %v3128_v32, %v242_v33 }
 0x1a9   :  { %261 = vrot.lane.b32.xlu1 %v3573_v34, %s4667_s1  ;;  %v3665_v9 = vpack.i.bf16 %v3591_v38, %v3573_v34 }
 0x1ae   :  { %v245_v29 = vpop.f32.mrf.mxu0 }
 0x1af   :  { %v3577_v35 = vadd.f32 %v3128_v32, %v245_v29 }
 0x1b1   :  { %428 = vrot.lane.b32.xlu1 %v3573_v34, %s4663_s0  ;;  %263 = vrot.lane.b32.xlu0 %v3577_v35, %s4667_s1 }
 0x1b6   :  { %v248_v36 = vpop.f32.mrf.mxu0 }
 0x1b7   :  { %v3583_v37 = vadd.f32 %v3128_v32, %v248_v36 }
 0x1b9   :  { %420 = vrot.lane.b32.xlu1 %v3573_v34, %s4661_s29  ;;  %265 = vrot.lane.b32.xlu2 %v3583_v37, %s4667_s1  ;;  %v3673_v10 = vpack.i.bf16 %v3577_v35, %v3583_v37 }
 0x1ba   :  { %432 = vrot.lane.b32.xlu0 %v3583_v37, %s4663_s0 }
 0x1c1   :  { %259 = vrot.lane.b32.xlu2 %v3591_v38, %s4667_s1 }
 0x1c2   :  { %426 = vrot.lane.b32.xlu0 %v3591_v38, %s4663_s0 }
 0x1c9   :  { %430 = vrot.lane.b32.xlu2 %v3577_v35, %s4663_s0  ;;  %s4695_s0 = smov 72  }
 0x1ca   :  { %422 = vrot.lane.b32.xlu0 %v3577_v35, %s4661_s29 }
 0x1d1   :  { %418 = vrot.lane.b32.xlu2 %v3591_v38, %s4661_s29 }
 0x1d2   :  { %680 = vrot.lane.b32.xlu0 %v3583_v37, %s4657_s4 }
 0x1d9   :  { %678 = vrot.lane.b32.xlu2 %v3577_v35, %s4657_s4 }
 0x1e1   :  { %424 = vrot.lane.b32.xlu2 %v3583_v37, %s4661_s29  ;;  %s4691_s29 = smov 96  }
 0x213   :  { %v266_v39 = vpop.permute.xlu2 %265 }
 0x214   :  { %2851 = vmatpush.xpose.msk.msra.mxu1 %vm267_vm14, %v266_v39 }
 0x21b   :  { %v260_v41 = vpop.permute.xlu2 %259  ;;  %v262_v42 = vpop.permute.xlu1 %261 }
 0x223   :  { %v264_v40 = vpop.permute.xlu0 %263  ;;  %v431_v44 = vpop.permute.xlu2 %430 }
 0x224   :  { %2852 = vmatpush.xpose.msk.msra.mxu1 %vm267_vm14, %v264_v40  ;;  %v429_v45 = vpop.permute.xlu1 %428 }
 0x228   :  { %2853 = vmatpush.xpose.msk.msra.mxu1 %vm267_vm14, %v262_v42 }
 0x22b   :  { %v419_v47 = vpop.permute.xlu2 %418 }
 0x22c   :  { %v433_v43 = vpop.permute.xlu0 %432  ;;  %2854 = vmatpush.xpose.msk.msra.mxu1 %vm267_vm14, %v260_v41  ;;  %v421_v49 = vpop.permute.xlu1 %420 }
 0x22d   :  { %2863 = vmatpush.xpose.msk.msra.mxu3 %vm267_vm14, %v433_v43 }
 0x22f   :  { %2855 = vmatmul.msk.f32.vlgmr.msra.gmra.mxu1 %vm267_vm14, %v3591_v38 }
 0x231   :  { %2864 = vmatpush.xpose.msk.msra.mxu3 %vm267_vm14, %v431_v44 }
 0x233   :  { %v679_v51 = vpop.permute.xlu2 %678 }
 0x234   :  { %v427_v46 = vpop.permute.xlu0 %426 }
 0x235   :  { %2865 = vmatpush.xpose.msk.msra.mxu3 %vm267_vm14, %v429_v45 }
 0x237   :  { %2856 = vmatmul.msk.f32.gmra.mxu1 %vm267_vm14, %v3573_v34 }
 0x239   :  { %2866 = vmatpush.xpose.msk.msra.mxu3 %vm267_vm14, %v427_v46 }
 0x23b   :  { %v425_v52 = vpop.permute.xlu2 %424 }
 0x23c   :  { %2867 = vmatmul.msk.f32.vlgmr.msra.gmra.mxu3 %vm267_vm14, %v419_v47  ;;  %v423_v48 = vpop.permute.xlu0 %422 }
 0x23f   :  { %2857 = vmatmul.msk.f32.gmra.mxu1 %vm267_vm14, %v3577_v35 }
 0x244   :  { %2868 = vmatmul.msk.f32.gmra.mxu3 %vm267_vm14, %v421_v49  ;;  %v681_v50 = vpop.permute.xlu0 %680 }
 0x245   :  { %2883 = vmatpush.xpose.msk.msrb.mxu3 %vm267_vm14, %v681_v50 }
 0x247   :  { %2858 = vmatmul.msk.f32.gmra.mxu1 %vm267_vm14, %v3583_v37 }
 0x249   :  { %2884 = vmatpush.xpose.msk.msrb.mxu3 %vm267_vm14, %v679_v51 }
 0x24c   :  { %2869 = vmatmul.msk.f32.gmra.mxu3 %vm267_vm14, %v423_v48 }
 0x254   :  { %2870 = vmatmul.msk.f32.gmra.mxu3 %vm267_vm14, %v425_v52 }
 0x2ac   :  { %v301_v53 = vpop.f32.mrf.mxu1 }
 0x2ad   :  { %v313_v55 = vmul.f32 0.35355338, %v301_v53 }
 0x2af   :  { %v317_v56 = vadd.f32 %v313_v55, %v3634_v54 }
 0x2b1   :  { %v321_v57 = vsel %vm88_vm0, %v317_v56, -inf }
 0x2b2   :  { %322 = vmax.xlane.f32.xlu1 %v321_v57 }
 0x2b4   :  { %v304_v58 = vpop.f32.mrf.mxu1 }
 0x2b5   :  { %v314_v60 = vmul.f32 0.35355338, %v304_v58 }
 0x2b7   :  { %v318_v61 = vadd.f32 %v314_v60, %v3641_v59 }
 0x2b9   :  { %v324_v62 = vsel %vm88_vm0, %v318_v61, -inf }
 0x2ba   :  { %325 = vmax.xlane.f32.xlu0 %v324_v62 }
 0x2bc   :  { %v307_v63 = vpop.f32.mrf.mxu1 }
 0x2bd   :  { %v315_v1 = vmul.f32 0.35355338, %v307_v63 }
 0x2bf   :  { %v319_v2 = vadd.f32 %v315_v1, %v3648_v0  ;;  %v467_v15 = vpop.f32.mrf.mxu3 }
 0x2c0   :  { %v479_v58 = vmul.f32 0.35355338, %v467_v15 }
 0x2c1   :  { %v327_v3 = vsel %vm88_vm0, %v319_v2, -inf }
 0x2c2   :  { %328 = vmax.xlane.f32.xlu2 %v327_v3  ;;  %v3721_v60 = vadd.f32 %v479_v58, %v3634_v54 }
 0x2c4   :  { %v310_v4 = vpop.f32.mrf.mxu1 }
 0x2c5   :  { %v316_v6 = vmul.f32 0.35355338, %v310_v4 }
 0x2c7   :  { %v320_v7 = vadd.f32 %v316_v6, %v3655_v5  ;;  %v470_v24 = vpop.f32.mrf.mxu3 }
 0x2c8   :  { %v480_v62 = vmul.f32 0.35355338, %v470_v24 }
 0x2c9   :  { %v330_v8 = vsel %vm88_vm0, %v320_v7, -inf }
 0x2ca   :  { %331 = vmax.xlane.f32.xlu1 %v330_v8  ;;  %v3726_v63 = vadd.f32 %v480_v62, %v3641_v59 }
 0x2cc   :  { %v490_v1 = vsel %vm88_vm0, %v3726_v63, -inf }
 0x2ce   :  { %676 = vrot.lane.b32.xlu0 %v3573_v34, %s4657_s4 }
 0x2cf   :  { %v3687_v32 = vpop.f32.mrf.mxu3 }
 0x2d6   :  { %674 = vrot.lane.b32.xlu0 %v3591_v38, %s4657_s4  ;;  %s4689_s4 = sld [smem:[#allocation11_spill]] }
 0x2d7   :  { %v476_v42 = vpop.f32.mrf.mxu3 }
 0x2d8   :  { %v482_v45 = vmul.f32 0.35355338, %v476_v42  ;;  %v481_v42 = vmul.f32 0.35355338, %v3687_v32 }
 0x2da   :  { %3052 = vrot.lane.b32.xlu2 %v3665_v9, %s4665_s7  ;;  %v3700_v47 = vadd.f32 %v482_v45, %v3655_v5 }
 0x2dc   :  { %v496_v49 = vsel %vm88_vm0, %v3700_v47, -inf }
 0x2de   :  { %666 = vrot.lane.b32.xlu0 %v3591_v38, %s4651_s30 }
 0x2e3   :  { %3047 = vrot.lane.b32.xlu1 %v3673_v10, %s4665_s7 }
 0x2e6   :  { %668 = vrot.lane.b32.xlu0 %v3573_v34, %s4651_s30 }
 0x325   :  { %v323_v12 = vpop.xlane.xlu1 %322 }
 0x326   :  { %v333_v13 = vsub.f32 %v317_v56, %v323_v12 }
 0x328   :  { %v337_v16 = vmul.f32 1.442695, %v333_v13 }
 0x32a   :  { %3160 = vpow2.f32 %v337_v16 }
 0x32d   :  { %v326_v17 = vpop.xlane.xlu0 %325 }
 0x32e   :  { %v334_v18 = vsub.f32 %v318_v61, %v326_v17  ;;  %v487_v61 = vsel %vm88_vm0, %v3721_v60, -inf }
 0x330   :  { %v3679_v20 = vpop.eup %3160  ;;  %v339_v21 = vmul.f32 1.442695, %v334_v18 }
 0x331   :  { %v345_v23 = vsel %vm88_vm0, %v3679_v20, 0.0 }
 0x332   :  { %3162 = vpow2.f32 %v339_v21  ;;  %346 = vadd.xlane.f32.xlu1 %v345_v23 }
 0x335   :  { %v329_v25 = vpop.xlane.xlu2 %328 }
 0x336   :  { %v335_v26 = vsub.f32 %v319_v2, %v329_v25 }
 0x338   :  { %v3683_v28 = vpop.eup %3162  ;;  %v341_v30 = vmul.f32 1.442695, %v335_v26 }
 0x339   :  { %v348_v19 = vsel %vm88_vm0, %v3683_v28, 0.0 }
 0x33a   :  { %3164 = vpow2.f32 %v341_v30  ;;  %349 = vadd.xlane.f32.xlu2 %v348_v19 }
 0x33d   :  { %v332_v33 = vpop.xlane.xlu1 %331  ;;  %v3053_v52 = vpop.permute.xlu2 %3052 }
 0x33e   :  { %v336_v29 = vsub.f32 %v320_v7, %v332_v33  ;;  %v3054_v56 = vunpack.i.l.bf16 %v3053_v52  ;;  %v3055_v57 = vunpack.i.h.bf16 %v3053_v52 }
 0x340   :  { %v3689_v36 = vpop.eup %3164  ;;  %v343_v39 = vmul.f32 1.442695, %v336_v29  ;;  %v677_v40 = vpop.permute.xlu0 %676 }
 0x341   :  { %2885 = vmatpush.xpose.msk.msrb.mxu3 %vm267_vm14, %v677_v40  ;;  %v351_v41 = vsel %vm88_vm0, %v3689_v36, 0.0 }
 0x342   :  { %3166 = vpow2.f32 %v343_v39  ;;  %352 = vadd.xlane.f32.xlu1 %v351_v41 }
 0x348   :  { %v3694_v43 = vpop.eup %3166  ;;  %v675_v44 = vpop.permute.xlu0 %674 }
 0x349   :  { %2886 = vmatpush.xpose.msk.msrb.mxu3 %vm267_vm14, %v675_v44  ;;  %v354_v46 = vsel %vm88_vm0, %v3694_v43, 0.0  ;;  %v3756_v44 = vadd.f32 %v481_v42, %v3648_v0 }
 0x34a   :  { %355 = vadd.xlane.f32.xlu0 %v354_v46 }
 0x350   :  { %v667_v48 = vpop.permute.xlu0 %666 }
 0x351   :  { %2887 = vmatmul.msk.f32.vlgmr.msrb.gmra.mxu3 %vm267_vm14, %v667_v48 }
 0x352   :  { %497 = vmax.xlane.f32.xlu0 %v496_v49  ;;  %670 = vrot.lane.b32.xlu2 %v3577_v35, %s4651_s30 }
 0x355   :  { %v3048_v50 = vpop.permute.xlu1 %3047 }
 0x356   :  { %v3049_v51 = vunpack.i.l.bf16 %v3048_v50  ;;  %v3050_v55 = vunpack.i.h.bf16 %v3048_v50 }
 0x358   :  { %401 = vmatpush.msra.mxu2 %v3049_v51  ;;  %v669_v53 = vpop.permute.xlu0 %668 }
 0x359   :  { %2888 = vmatmul.msk.f32.gmra.mxu3 %vm267_vm14, %v669_v53 }
 0x35a   :  { %402 = vmatpush.msra.mxu2 %v3050_v55  ;;  %v251_v55 = vld [vmem:[%s4687_s5] sm:$0xff] }
 0x35b   :  { %672 = vrot.lane.b32.xlu1 %v3583_v37, %s4651_s30  ;;  %s4688_s30 = sld [smem:[#allocation10_spill]] }
 0x35c   :  { %403 = vmatpush.msra.mxu2 %v3054_v56 }
 0x35e   :  { %404 = vmatpush.msra.mxu2 %v3055_v57 }
 0x363   :  { %3062 = vrot.lane.b32.xlu1 %v3665_v9, %s4649_s6 }
 0x366   :  { %3057 = vrot.lane.b32.xlu0 %v3673_v10, %s4649_s6  ;;  %s4690_s6 = sld [smem:[#allocation12_spill]] }
 0x36b   :  { %891 = vrot.lane.b32.xlu1 %v3583_v37, %s4659_s26 }
 0x36e   :  { %889 = vrot.lane.b32.xlu0 %v3577_v35, %s4659_s26 }
 0x376   :  { %887 = vrot.lane.b32.xlu0 %v3573_v34, %s4659_s26 }
 0x395   :  { %488 = vmax.xlane.f32.xlu1 %v487_v61 }
 0x3a0   :  { %491 = vmax.xlane.f32.xlu0 %v490_v1 }
 0x3a5   :  { %v347_v2 = vpop.xlane.xlu1 %346 }
 0x3a6   :  { %3168 = vrcp.f32 %v347_v2 }
 0x3ac   :  { %v3169_v3 = vpop.eup %3168 }
 0x3ad   :  { %v350_v4 = vpop.xlane.xlu2 %349  ;;  %v361_v6 = vmul.f32 %v3169_v3, %v3679_v20 }
 0x3ae   :  { %3170 = vrcp.f32 %v350_v4  ;;  %877 = vrot.lane.b32.xlu1 %v3591_v38, %s4653_s3 }
 0x3af   :  { %2859 = vmatmul.msk.f32.vlgmr.msra.gmra.mxu2 %vm88_vm0, %v361_v6 }
 0x3b4   :  { %v3171_v7 = vpop.eup %3170  ;;  %879 = vrot.lane.b32.xlu0 %v3573_v34, %s4653_s3 }
 0x3b5   :  { %v353_v8 = vpop.xlane.xlu1 %352  ;;  %v671_v12 = vpop.permute.xlu2 %670  ;;  %v362_v13 = vmul.f32 %v3171_v7, %v3683_v28 }
 0x3b6   :  { %3172 = vrcp.f32 %v353_v8  ;;  %2889 = vmatmul.msk.f32.gmra.mxu3 %vm267_vm14, %v671_v12 }
 0x3b7   :  { %2860 = vmatmul.msk.f32.gmra.mxu2 %vm88_vm0, %v362_v13 }
 0x3bc   :  { %v3173_v15 = vpop.eup %3172  ;;  %881 = vrot.lane.b32.xlu0 %v3577_v35, %s4653_s3 }
 0x3bd   :  { %v356_v16 = vpop.xlane.xlu0 %355  ;;  %v363_v17 = vmul.f32 %v3173_v15, %v3689_v36 }
 0x3be   :  { %3174 = vrcp.f32 %v356_v16 }
 0x3bf   :  { %2861 = vmatmul.msk.f32.gmra.mxu2 %vm88_vm0, %v363_v17 }
 0x3c4   :  { %v3175_v34 = vpop.eup %3174  ;;  %883 = vrot.lane.b32.xlu0 %v3583_v37, %s4653_s3  ;;  %s4692_s3 = smov 64  }
 0x3c5   :  { %v498_v18 = vpop.xlane.xlu0 %497  ;;  %v364_v20 = vmul.f32 %v3175_v34, %v3694_v43 }
 0x3c6   :  { %v502_v21 = vsub.f32 %v3700_v47, %v498_v18  ;;  %v493_v47 = vsel %vm88_vm0, %v3756_v44, -inf }
 0x3c7   :  { %2862 = vmatmul.msk.f32.gmra.mxu2 %vm88_vm0, %v364_v20 }
 0x3c8   :  { %v509_v23 = vmul.f32 1.442695, %v502_v21 }
 0x3ca   :  { %3176 = vpow2.f32 %v509_v23 }
 0x3cd   :  { %v673_v35 = vpop.permute.xlu1 %672 }
 0x3ce   :  { %2890 = vmatmul.msk.f32.gmra.mxu3 %vm267_vm14, %v673_v35 }
 0x3d0   :  { %v3177_v24 = vpop.eup %3176 }
 0x3d1   :  { %v520_v25 = vsel %vm88_vm0, %v3177_v24, 0.0 }
 0x3d2   :  { %521 = vadd.xlane.f32.xlu2 %v520_v25 }
 0x3d4   :  { %v715_v26 = vpop.f32.mrf.mxu3 }
 0x3d5   :  { %v727_v28 = vmul.f32 0.35355338, %v715_v26  ;;  %v3063_v29 = vpop.permute.xlu1 %3062 }
 0x3d6   :  { %v3064_v39 = vunpack.i.l.bf16 %v3063_v29  ;;  %v3065_v40 = vunpack.i.h.bf16 %v3063_v29 }
 0x3d7   :  { %v731_v37 = vadd.f32 %v727_v28, %v3634_v54 }
 0x3d8   :  { %v3058_v30 = vpop.permute.xlu0 %3057 }
 0x3d9   :  { %v735_v19 = vsel %vm88_vm0, %v731_v37, -inf  ;;  %v3059_v33 = vunpack.i.l.bf16 %v3058_v30  ;;  %v3060_v36 = vunpack.i.h.bf16 %v3058_v30 }
 0x3da   :  { %736 = vmax.xlane.f32.xlu1 %v735_v19 }
 0x3db   :  { %567 = vmatpush.msrb.mxu0 %v3059_v33  ;;  %3029 = vmatpush.msrb.mxu1 %v3059_v33 }
 0x3dc   :  { %v718_v45 = vpop.f32.mrf.mxu3 }
 0x3dd   :  { %568 = vmatpush.msrb.mxu0 %v3060_v36  ;;  %3030 = vmatpush.msrb.mxu1 %v3060_v36  ;;  %v728_v46 = vmul.f32 0.35355338, %v718_v45  ;;  %v892_v53 = vpop.permute.xlu1 %891 }
 0x3df   :  { %569 = vmatpush.msrb.mxu0 %v3064_v39  ;;  %3031 = vmatpush.msrb.mxu1 %v3064_v39  ;;  %v3762_v51 = vadd.f32 %v728_v46, %v3641_v59 }
 0x3e0   :  { %v890_v41 = vpop.permute.xlu0 %889 }
 0x3e1   :  { %570 = vmatpush.msrb.mxu0 %v3065_v40  ;;  %3032 = vmatpush.msrb.mxu1 %v3065_v40 }
 0x3e3   :  { %652 = vmatpush.msra.mxu1 %v251_v55 }
 0x3e8   :  { %v888_v43 = vpop.permute.xlu0 %887 }
 0x3ea   :  { %885 = vrot.lane.b32.xlu2 %v3591_v38, %s4659_s26  ;;  %v738_v38 = vsel %vm88_vm0, %v3762_v51, -inf  ;;  %s4697_s26 = smov 104  }
 0x408   :  { %v489_v56 = vpop.xlane.xlu1 %488 }
 0x409   :  { %v499_v57 = vsub.f32 %v3721_v60, %v489_v56 }
 0x40b   :  { %v503_v58 = vmul.f32 1.442695, %v499_v57 }
 0x413   :  { %494 = vmax.xlane.f32.xlu2 %v493_v47  ;;  %v492_v48 = vpop.xlane.xlu0 %491 }
 0x414   :  { %v500_v49 = vsub.f32 %v3726_v63, %v492_v48 }
 0x416   :  { %v505_v50 = vmul.f32 1.442695, %v500_v49 }
 0x418   :  { %3178 = vpow2.f32 %v505_v50 }
 0x419   :  { %3180 = vpow2.f32 %v503_v58 }
 0x41b   :  { %739 = vmax.xlane.f32.xlu2 %v738_v38 }
 0x41e   :  { %v3766_v32 = vpop.eup %3178 }
 0x41f   :  { %v514_v52 = vsel %vm88_vm0, %v3766_v32, 0.0  ;;  %v3779_v2 = vpop.eup %3180 }
 0x420   :  { %515 = vadd.xlane.f32.xlu1 %v514_v52  ;;  %v878_v3 = vpop.permute.xlu1 %877  ;;  %v511_v6 = vsel %vm88_vm0, %v3779_v2, 0.0 }
 0x426   :  { %v880_v26 = vpop.permute.xlu0 %879 }
 0x42e   :  { %v882_v28 = vpop.permute.xlu0 %881 }
 0x432   :  { %v406_v13 = vpop.f32.mrf.mxu2 }
 0x436   :  { %v884_v33 = vpop.permute.xlu0 %883 }
 0x439   :  { %v721_v61 = vpop.f32.mrf.mxu3 }
 0x43a   :  { %v729_v62 = vmul.f32 0.35355338, %v721_v61  ;;  %v409_v23 = vpop.f32.mrf.mxu2 }
 0x43c   :  { %v3775_v63 = vadd.f32 %v729_v62, %v3648_v0 }
 0x43e   :  { %v741_v1 = vsel %vm88_vm0, %v3775_v63, -inf }
 0x43f   :  { %742 = vmax.xlane.f32.xlu2 %v741_v1 }
 0x445   :  { %v522_v4 = vpop.xlane.xlu2 %521 }
 0x446   :  { %3182 = vrcp.f32 %v522_v4 }
 0x447   :  { %512 = vadd.xlane.f32.xlu2 %v511_v6 }
 0x44c   :  { %v3183_v60 = vpop.eup %3182 }
 0x44d   :  { %v737_v7 = vpop.xlane.xlu1 %736  ;;  %v530_v8 = vmul.f32 %v3183_v60, %v3177_v24  ;;  %v886_v35 = vpop.permute.xlu2 %885 }
 0x44e   :  { %v747_v12 = vsub.f32 %v731_v37, %v737_v7  ;;  %v412_v24 = vpop.f32.mrf.mxu2 }
 0x44f   :  { %2874 = vmatmul.msk.f32.vlgmr.msrb.gmra.mxu1 %vm88_vm0, %v530_v8 }
 0x450   :  { %v751_v15 = vmul.f32 1.442695, %v747_v12  ;;  %2899 = vmatpush.xpose.msk.msrb.mxu1 %vm267_vm14, %v892_v53 }
 0x451   :  { %v724_v16 = vpop.f32.mrf.mxu3 }
 0x452   :  { %3184 = vpow2.f32 %v751_v15  ;;  %v730_v17 = vmul.f32 0.35355338, %v724_v16 }
 0x454   :  { %2900 = vmatpush.xpose.msk.msrb.mxu1 %vm267_vm14, %v890_v41  ;;  %v734_v34 = vadd.f32 %v730_v17, %v3655_v5 }
 0x456   :  { %v744_v18 = vsel %vm88_vm0, %v734_v34, -inf  ;;  %v415_v25 = vpop.f32.mrf.mxu2 }
 0x457   :  { %745 = vmax.xlane.f32.xlu0 %v744_v18  ;;  %2879 = vmatmul.msk.f32.vlgmr.msra.gmra.mxu1 %vm267_vm14, %v406_v13 }
 0x458   :  { %v3789_v20 = vpop.eup %3184  ;;  %2901 = vmatpush.xpose.msk.msrb.mxu1 %vm267_vm14, %v888_v43 }
 0x459   :  { %v759_v21 = vsel %vm88_vm0, %v3789_v20, 0.0 }
 0x45a   :  { %760 = vadd.xlane.f32.xlu1 %v759_v21 }
 0x45c   :  { %2902 = vmatpush.xpose.msk.msrb.mxu1 %vm267_vm14, %v886_v35 }
 0x45f   :  { %2880 = vmatmul.msk.f32.gmra.mxu1 %vm267_vm14, %v409_v23 }
 0x467   :  { %2881 = vmatmul.msk.f32.gmra.mxu1 %vm267_vm14, %v412_v24 }
 0x46f   :  { %2882 = vmatmul.msk.f32.gmra.mxu1 %vm267_vm14, %v415_v25 }
 0x473   :  { %3072 = vrot.lane.b32.xlu1 %v3665_v9, %s4647_s9 }
 0x477   :  { %2903 = vmatmul.msk.f32.vlgmr.msrb.gmra.mxu1 %vm267_vm14, %v878_v3 }
 0x47f   :  { %2904 = vmatmul.msk.f32.gmra.mxu1 %vm267_vm14, %v880_v26 }
 0x486   :  { %v495_v37 = vpop.xlane.xlu2 %494 }
 0x487   :  { %v501_v30 = vsub.f32 %v3756_v44, %v495_v37  ;;  %2905 = vmatmul.msk.f32.gmra.mxu1 %vm267_vm14, %v882_v28 }
 0x489   :  { %v507_v19 = vmul.f32 1.442695, %v501_v30 }
 0x48b   :  { %3186 = vpow2.f32 %v507_v19 }
 0x48e   :  { %v740_v29 = vpop.xlane.xlu2 %739 }
 0x48f   :  { %v748_v36 = vsub.f32 %v3762_v51, %v740_v29  ;;  %2906 = vmatmul.msk.f32.gmra.mxu1 %vm267_vm14, %v884_v33 }
 0x491   :  { %v3806_v39 = vpop.eup %3186  ;;  %v753_v40 = vmul.f32 1.442695, %v748_v36 }
 0x492   :  { %v517_v41 = vsel %vm88_vm0, %v3806_v39, 0.0 }
 0x493   :  { %3188 = vpow2.f32 %v753_v40  ;;  %518 = vadd.xlane.f32.xlu2 %v517_v41  ;;  %v516_v46 = vpop.xlane.xlu1 %515  ;;  %v253_v40 = vld [vmem:[%s4687_s5 + $0x10] sm:$0xff] }
 0x494   :  { %3033 = vmatpush.msra.mxu3 %v253_v40 }
 0x499   :  { %v3810_v42 = vpop.eup %3188 }
 0x49a   :  { %v762_v43 = vsel %vm88_vm0, %v3810_v42, 0.0 }
 0x49b   :  { %763 = vadd.xlane.f32.xlu0 %v762_v43 }
 0x4ab   :  { %3067 = vrot.lane.b32.xlu2 %v3673_v10, %s4647_s9  ;;  %s4693_s9 = smov 88  }
 0x4b2   :  { %v743_v44 = vpop.xlane.xlu2 %742 }
 0x4b3   :  { %v749_v48 = vsub.f32 %v3775_v63, %v743_v44 }
 0x4b5   :  { %v755_v50 = vmul.f32 1.442695, %v749_v48 }
 0x4ba   :  { %v513_v45 = vpop.xlane.xlu2 %512 }
 0x4bb   :  { %3190 = vrcp.f32 %v513_v45 }
 0x4bc   :  { %3192 = vrcp.f32 %v516_v46 }
 0x4bd   :  { %3194 = vpow2.f32 %v755_v50 }
 0x4c1   :  { %v3191_v47 = vpop.eup %3190 }
 0x4c2   :  { %v527_v49 = vmul.f32 %v3191_v47, %v3779_v2  ;;  %v3193_v51 = vpop.eup %3192 }
 0x4c3   :  { %v528_v52 = vmul.f32 %v3193_v51, %v3766_v32  ;;  %v3823_v57 = vpop.eup %3194 }
 0x4c4   :  { %2871 = vmatmul.msk.f32.vlgmr.msrb.gmra.mxu0 %vm88_vm0, %v527_v49  ;;  %v765_v58 = vsel %vm88_vm0, %v3823_v57, 0.0 }
 0x4ca   :  { %v746_v38 = vpop.xlane.xlu0 %745 }
 0x4cb   :  { %v750_v53 = vsub.f32 %v734_v34, %v746_v38 }
 0x4cc   :  { %2872 = vmatmul.msk.f32.gmra.mxu0 %vm88_vm0, %v528_v52  ;;  %v3821_v55 = vpop.f32.mrf.mxu1 }
 0x4cd   :  { %v757_v56 = vmul.f32 1.442695, %v750_v53  ;;  %v761_v17 = vpop.xlane.xlu1 %760 }
 0x4cf   :  { %3196 = vpow2.f32 %v757_v56 }
 0x4d4   :  { %766 = vadd.xlane.f32.xlu2 %v765_v58  ;;  %v3827_v61 = vpop.f32.mrf.mxu1 }
 0x4d5   :  { %v3829_v62 = vpop.eup %3196 }
 0x4d6   :  { %v768_v32 = vsel %vm88_vm0, %v3829_v62, 0.0 }
 0x4d7   :  { %769 = vadd.xlane.f32.xlu0 %v768_v32 }
 0x4dc   :  { %v3833_v63 = vpop.f32.mrf.mxu1 }
 0x4e4   :  { %v3835_v1 = vpop.f32.mrf.mxu1 }
 0x4e5   :  { %v3073_v26 = vpop.permute.xlu1 %3072 }
 0x4e6   :  { %v3074_v19 = vunpack.i.l.bf16 %v3073_v26  ;;  %v3075_v33 = vunpack.i.h.bf16 %v3073_v26 }
 0x4ec   :  { %3077 = vrot.lane.b32.xlu2 %v3673_v10, %s4655_s27  ;;  %v3839_v2 = vpop.f32.mrf.mxu1 }
 0x4f4   :  { %v926_v3 = vpop.f32.mrf.mxu1 }
 0x4f5   :  { %v938_v4 = vmul.f32 0.35355338, %v926_v3 }
 0x4f7   :  { %v3842_v6 = vadd.f32 %v938_v4, %v3634_v54 }
 0x4f9   :  { %v946_v60 = vsel %vm88_vm0, %v3842_v6, -inf }
 0x4fa   :  { %947 = vmax.xlane.f32.xlu1 %v946_v60 }
 0x4fc   :  { %v929_v7 = vpop.f32.mrf.mxu1 }
 0x4fd   :  { %v939_v8 = vmul.f32 0.35355338, %v929_v7 }
 0x4ff   :  { %v3847_v12 = vadd.f32 %v939_v8, %v3641_v59 }
 0x501   :  { %v949_v13 = vsel %vm88_vm0, %v3847_v12, -inf }
 0x502   :  { %950 = vmax.xlane.f32.xlu0 %v949_v13 }
 0x504   :  { %v932_v10 = vpop.f32.mrf.mxu1 }
 0x505   :  { %v940_v15 = vmul.f32 0.35355338, %v932_v10 }
 0x506   :  { %v519_v16 = vpop.xlane.xlu2 %518 }
 0x507   :  { %3198 = vrcp.f32 %v519_v16  ;;  %v3852_v54 = vadd.f32 %v940_v15, %v3648_v0 }
 0x508   :  { %3200 = vrcp.f32 %v761_v17 }
 0x509   :  { %v952_v34 = vsel %vm88_vm0, %v3852_v54, -inf }
 0x50a   :  { %953 = vmax.xlane.f32.xlu0 %v952_v34 }
 0x50c   :  { %v935_v18 = vpop.f32.mrf.mxu1 }
 0x50d   :  { %v3199_v21 = vpop.eup %3198  ;;  %v941_v59 = vmul.f32 0.35355338, %v935_v18 }
 0x50e   :  { %v3068_v23 = vpop.permute.xlu2 %3067  ;;  %v529_v35 = vmul.f32 %v3199_v21, %v3806_v39  ;;  %v764_v37 = vpop.xlane.xlu0 %763  ;;  %v252_v39 = vld [vmem:[%s4687_s5 + $0x8] sm:$0xff] }
 0x50f   :  { %v3069_v24 = vunpack.i.l.bf16 %v3068_v23  ;;  %v3858_v25 = vadd.f32 %v941_v59, %v3655_v5  ;;  %v3070_v0 = vunpack.i.h.bf16 %v3068_v23  ;;  %v3201_v30 = vpop.eup %3200  ;;  %3202 = vrcp.f32 %v764_v37  ;;  %611 = vmatpush.msrb.mxu2 %v252_v39 }
 0x510   :  { %2873 = vmatmul.msk.f32.gmra.mxu0 %vm88_vm0, %v529_v35  ;;  %v775_v29 = vmul.f32 %v3201_v30, %v3789_v20 }
 0x511   :  { %815 = vmatpush.msra.mxu0 %v3069_v24  ;;  %v955_v28 = vsel %vm88_vm0, %v3858_v25, -inf  ;;  %859 = vmatpush.msra.mxu2 %v253_v40 }
 0x512   :  { %956 = vmax.xlane.f32.xlu0 %v955_v28 }
 0x513   :  { %816 = vmatpush.msra.mxu0 %v3070_v0 }
 0x515   :  { %817 = vmatpush.msra.mxu0 %v3074_v19  ;;  %v3203_v5 = vpop.eup %3202 }
 0x516   :  { %v776_v36 = vmul.f32 %v3203_v5, %v3810_v42  ;;  %v254_v5 = vld [vmem:[%s4687_s5 + $0x18] sm:$0xff] }
 0x517   :  { %818 = vmatpush.msra.mxu0 %v3075_v33 }
 0x518   :  { %2891 = vmatmul.msk.f32.vlgmr.msra.gmra.mxu0 %vm88_vm0, %v775_v29 }
 0x519   :  { %1070 = vmatpush.msrb.mxu0 %v254_v5  ;;  %v1206_v5 = vld [vmem:[%s4624_s11 + $0x10] sm:$0xff] }
 0x520   :  { %2892 = vmatmul.msk.f32.gmra.mxu0 %vm88_vm0, %v776_v36 }
 0x541   :  { %v572_v20 = vpop.f32.mrf.mxu0 }
 0x542   :  { %2875 = vmatmul.msk.f32.vlgmr.msrb.gmra.mxu2 %vm267_vm14, %v572_v20 }
 0x547   :  { %v767_v41 = vpop.xlane.xlu2 %766 }
 0x548   :  { %3204 = vrcp.f32 %v767_v41 }
 0x549   :  { %v575_v43 = vpop.f32.mrf.mxu0 }
 0x54a   :  { %2876 = vmatmul.msk.f32.gmra.mxu2 %vm267_vm14, %v575_v43  ;;  %v770_v42 = vpop.xlane.xlu0 %769 }
 0x54b   :  { %3206 = vrcp.f32 %v770_v42 }
 0x54e   :  { %v3205_v44 = vpop.eup %3204 }
 0x54f   :  { %v3078_v45 = vpop.permute.xlu2 %3077  ;;  %v777_v46 = vmul.f32 %v3205_v44, %v3823_v57 }
 0x550   :  { %v3079_v47 = vunpack.i.l.bf16 %v3078_v45  ;;  %v3080_v48 = vunpack.i.h.bf16 %v3078_v45 }
 0x551   :  { %2893 = vmatmul.msk.f32.gmra.mxu0 %vm88_vm0, %v777_v46  ;;  %v3207_v49 = vpop.eup %3206 }
 0x552   :  { %1026 = vmatpush.msrb.mxu3 %v3079_v47  ;;  %v778_v50 = vmul.f32 %v3207_v49, %v3829_v62  ;;  %v3129_v49 = vld [vmem:[%s4688_s30] ss:$0 sm:$0xff] }
 0x554   :  { %1027 = vmatpush.msrb.mxu3 %v3080_v48 }
 0x559   :  { %2894 = vmatmul.msk.f32.gmra.mxu0 %vm88_vm0, %v778_v50 }
 0x56d   :  { %v948_v51 = vpop.xlane.xlu1 %947 }
 0x56e   :  { %v958_v38 = vsub.f32 %v3842_v6, %v948_v51 }
 0x570   :  { %v962_v52 = vmul.f32 1.442695, %v958_v38 }
 0x572   :  { %3208 = vpow2.f32 %v962_v52 }
 0x575   :  { %v951_v53 = vpop.xlane.xlu0 %950 }
 0x576   :  { %v959_v56 = vsub.f32 %v3847_v12, %v951_v53 }
 0x578   :  { %v3209_v57 = vpop.eup %3208  ;;  %v964_v58 = vmul.f32 1.442695, %v959_v56 }
 0x579   :  { %v970_v32 = vsel %vm88_vm0, %v3209_v57, 0.0 }
 0x57a   :  { %3210 = vpow2.f32 %v964_v58  ;;  %971 = vadd.xlane.f32.xlu0 %v970_v32 }
 0x57d   :  { %v954_v3 = vpop.xlane.xlu0 %953 }
 0x57e   :  { %v960_v4 = vsub.f32 %v3852_v54, %v954_v3 }
 0x580   :  { %v3211_v62 = vpop.eup %3210  ;;  %v966_v60 = vmul.f32 1.442695, %v960_v4 }
 0x581   :  { %v973_v7 = vsel %vm88_vm0, %v3211_v62, 0.0 }
 0x582   :  { %3212 = vpow2.f32 %v966_v60  ;;  %974 = vadd.xlane.f32.xlu1 %v973_v7 }
 0x585   :  { %v957_v10 = vpop.xlane.xlu0 %956 }
 0x586   :  { %v961_v16 = vsub.f32 %v3858_v25, %v957_v10 }
 0x588   :  { %v3213_v6 = vpop.eup %3212  ;;  %v968_v54 = vmul.f32 1.442695, %v961_v16 }
 0x589   :  { %v976_v8 = vsel %vm88_vm0, %v3213_v6, 0.0 }
 0x58a   :  { %977 = vadd.xlane.f32.xlu1 %v976_v8  ;;  %3214 = vpow2.f32 %v968_v54 }
 0x58d   :  { %v578_v12 = vpop.f32.mrf.mxu0 }
 0x58e   :  { %3082 = vrot.lane.b32.xlu0 %v3665_v9, %s4655_s27  ;;  %2877 = vmatmul.msk.f32.gmra.mxu2 %vm267_vm14, %v578_v12  ;;  %s4698_s27 = smov 112  }
 0x590   :  { %v3215_v17 = vpop.eup %3214 }
 0x591   :  { %v979_v34 = vsel %vm88_vm0, %v3215_v17, 0.0 }
 0x595   :  { %v820_v13 = vpop.f32.mrf.mxu0 }
 0x596   :  { %2878 = vmatmul.msk.f32.gmra.mxu2 %vm267_vm14, %v3821_v55 }
 0x59d   :  { %v823_v15 = vpop.f32.mrf.mxu0 }
 0x59e   :  { %2895 = vmatmul.msk.f32.vlgmr.msra.gmra.mxu2 %vm267_vm14, %v820_v13 }
 0x5a6   :  { %2896 = vmatmul.msk.f32.gmra.mxu2 %vm267_vm14, %v823_v15 }
 0x5b8   :  { %980 = vadd.xlane.f32.xlu0 %v979_v34 }
 0x5c5   :  { %v613_v43 = vpop.f32.mrf.mxu2 }
 0x5c6   :  { %v655_v47 = vadd.f32 %v3827_v61, %v613_v43 }
 0x5cd   :  { %v616_v42 = vpop.f32.mrf.mxu2 }
 0x5ce   :  { %v826_v9 = vpop.f32.mrf.mxu0  ;;  %v658_v53 = vadd.f32 %v3833_v63, %v616_v42 }
 0x5cf   :  { %2897 = vmatmul.msk.f32.gmra.mxu2 %vm267_vm14, %v826_v9 }
 0x5d6   :  { %v829_v18 = vpop.f32.mrf.mxu0 }
 0x5d7   :  { %2898 = vmatmul.msk.f32.vlgmr.msra.gmra.mxu3 %vm267_vm14, %v829_v18 }
 0x5ed   :  { %v972_v55 = vpop.xlane.xlu0 %971 }
 0x5ee   :  { %3216 = vrcp.f32 %v972_v55 }
 0x5f4   :  { %v3217_v23 = vpop.eup %3216 }
 0x5f5   :  { %v975_v21 = vpop.xlane.xlu1 %974  ;;  %v986_v25 = vmul.f32 %v3217_v23, %v3209_v57 }
 0x5f6   :  { %3218 = vrcp.f32 %v975_v21 }
 0x5fc   :  { %v3219_v0 = vpop.eup %3218 }
 0x5fd   :  { %v978_v26 = vpop.xlane.xlu1 %977  ;;  %v987_v28 = vmul.f32 %v3219_v0, %v3211_v62 }
 0x5fe   :  { %3220 = vrcp.f32 %v978_v26 }
 0x600   :  { %v3083_v59 = vpop.permute.xlu0 %3082 }
 0x601   :  { %v3084_v35 = vunpack.i.l.bf16 %v3083_v59  ;;  %v3085_v24 = vunpack.i.h.bf16 %v3083_v59 }
 0x603   :  { %1028 = vmatpush.msrb.mxu3 %v3084_v35 }
 0x604   :  { %v3221_v37 = vpop.eup %3220 }
 0x605   :  { %1029 = vmatpush.msrb.mxu3 %v3085_v24  ;;  %v988_v30 = vmul.f32 %v3221_v37, %v3213_v6 }
 0x606   :  { %2907 = vmatmul.msk.f32.vlgmr.msrb.gmra.mxu3 %vm88_vm0, %v986_v25 }
 0x60e   :  { %2908 = vmatmul.msk.f32.gmra.mxu3 %vm88_vm0, %v987_v28 }
 0x611   :  { %v619_v44 = vpop.f32.mrf.mxu2 }
 0x612   :  { %v661_v62 = vadd.f32 %v3835_v1, %v619_v44 }
 0x616   :  { %2909 = vmatmul.msk.f32.gmra.mxu3 %vm88_vm0, %v988_v30 }
 0x619   :  { %v622_v45 = vpop.f32.mrf.mxu2 }
 0x61a   :  { %v664_v10 = vadd.f32 %v3839_v2, %v622_v45 }
 0x621   :  { %v861_v46 = vpop.f32.mrf.mxu2 }
 0x622   :  { %v873_v48 = vadd.f32 %v861_v46, %v655_v47 }
 0x629   :  { %v864_v52 = vpop.f32.mrf.mxu2 }
 0x62a   :  { %v874_v57 = vadd.f32 %v864_v52, %v658_v53 }
 0x62b   :  { %v981_v19 = vpop.xlane.xlu0 %980 }
 0x62c   :  { %3222 = vrcp.f32 %v981_v19 }
 0x632   :  { %v3223_v33 = vpop.eup %3222 }
 0x633   :  { %v989_v29 = vmul.f32 %v3223_v33, %v3215_v17 }
 0x635   :  { %2910 = vmatmul.msk.f32.gmra.mxu3 %vm88_vm0, %v989_v29  ;;  %v1207_v29 = vld [vmem:[%s4624_s11 + $0x18] sm:$0xff] }
 0x636   :  { %1236 = vmatpush.msrb.mxu2 %v1207_v29  ;;  %v1291_v29 = vld [vmem:[%s4626_s13 + $0x10] sm:$0xff] }
 0x638   :  { %1237 = vmatpush.msrb.mxu2 %v1206_v5  ;;  %v1290_v5 = vld [vmem:[%s4626_s13 + $0x8] sm:$0xff] }
 0x652   :  { %v867_v4 = vpop.f32.mrf.mxu2 }
 0x653   :  { %v875_v7 = vadd.f32 %v867_v4, %v661_v62 }
 0x65a   :  { %v870_v36 = vpop.f32.mrf.mxu3 }
 0x65b   :  { %v876_v15 = vadd.f32 %v870_v36, %v664_v10  ;;  %v1205_v36 = vld [vmem:[%s4624_s11 + $0x8] sm:$0xff] }
 0x65c   :  { %1238 = vmatpush.msrb.mxu2 %v1205_v36  ;;  %v1289_v36 = vld [vmem:[%s4626_s13] sm:$0xff] }
 0x689   :  { %v1031_v39 = vpop.f32.mrf.mxu3 }
 0x68a   :  { %2911 = vmatmul.msk.f32.vlgmr.msrb.gmra.mxu0 %vm267_vm14, %v1031_v39  ;;  %v1204_v39 = vld [vmem:[%s4624_s11] sm:$0xff] }
 0x68b   :  { %1239 = vmatpush.msrb.mxu2 %v1204_v39  ;;  %v3132_v39 = vld [vmem:[%s4623_s12] ss:$0 sm:$0xff] }
 0x691   :  { %v1034_v40 = vpop.f32.mrf.mxu3 }
 0x692   :  { %2912 = vmatmul.msk.f32.gmra.mxu0 %vm267_vm14, %v1034_v40 }
 0x699   :  { %v1037_v20 = vpop.f32.mrf.mxu3 }
 0x69a   :  { %2913 = vmatmul.msk.f32.gmra.mxu0 %vm267_vm14, %v1037_v20 }
 0x6b8   :  { %v1040_v41 = vpop.f32.mrf.mxu3 }
 0x6b9   :  { %2914 = vmatmul.msk.f32.gmra.mxu0 %vm267_vm14, %v1040_v41 }
 0x707   :  { %v1072_v50 = vpop.f32.mrf.mxu0 }
 0x708   :  { %v1084_v51 = vadd.f32 %v1072_v50, %v873_v48 }
 0x70a   :  { %v1092_v38 = vadd.f32 %v3129_v49, %v1084_v51 }
 0x70c   :  { %v1096_v56 = vadd.f32 %v1092_v38, %v3551_v11 }
 0x70e   :  { %v1102_v58 = vsel %vm88_vm0, %v1096_v56, 0.0 }
 0x70f   :  { %v1075_v32 = vpop.f32.mrf.mxu0  ;;  %1103 = vadd.xlane.f32.xlu2 %v1102_v58 }
 0x710   :  { %v1085_v3 = vadd.f32 %v1075_v32, %v874_v57  ;;  %v3130_v57 = vld [vmem:[%s4689_s4] ss:$0 sm:$0xff] }
 0x712   :  { %v1093_v61 = vadd.f32 %v3129_v49, %v1085_v3 }
 0x714   :  { %v1097_v60 = vadd.f32 %v1093_v61, %v3556_v22  ;;  %v3131_v61 = vld [vmem:[%s4690_s6] ss:$0 sm:$0xff] }
 0x716   :  { %v1105_v6 = vsel %vm88_vm0, %v1097_v60, 0.0 }
 0x717   :  { %v1078_v8 = vpop.f32.mrf.mxu0  ;;  %1106 = vadd.xlane.f32.xlu1 %v1105_v6 }
 0x718   :  { %v1086_v63 = vadd.f32 %v1078_v8, %v875_v7 }
 0x71a   :  { %v1094_v12 = vadd.f32 %v3129_v49, %v1086_v63 }
 0x71c   :  { %v1098_v11 = vadd.f32 %v1094_v12, %v3561_v27 }
 0x71e   :  { %v1108_v13 = vsel %vm88_vm0, %v1098_v11, 0.0 }
 0x71f   :  { %1109 = vadd.xlane.f32.xlu1 %v1108_v13 }
 0x736   :  { %v1081_v16 = vpop.f32.mrf.mxu0 }
 0x737   :  { %v1087_v54 = vadd.f32 %v1081_v16, %v876_v15 }
 0x739   :  { %v1095_v1 = vadd.f32 %v3129_v49, %v1087_v54 }
 0x73b   :  { %v1099_v22 = vadd.f32 %v1095_v1, %v3566_v31 }
 0x73d   :  { %v1111_v17 = vsel %vm88_vm0, %v1099_v22, 0.0 }
 0x73e   :  { %1112 = vadd.xlane.f32.xlu1 %v1111_v17 }
 0x782   :  { %v1104_v34 = vpop.xlane.xlu2 %1103 }
 0x783   :  { %v1114_v9 = vmul.f32 %v1104_v34, %v3502_v14 }
 0x785   :  { %v1118_v18 = vsub.f32 %v1096_v56, %v1114_v9 }
 0x787   :  { %v1122_v55 = vmul.f32 %v1118_v18, %v1118_v18 }
 0x789   :  { %v1126_v27 = vsel %vm88_vm0, %v1122_v55, 0.0 }
 0x78a   :  { %v1107_v21 = vpop.xlane.xlu1 %1106  ;;  %1127 = vadd.xlane.f32.xlu1 %v1126_v27 }
 0x78b   :  { %v1115_v2 = vmul.f32 %v1107_v21, %v3502_v14 }
 0x78d   :  { %v3925_v59 = vsub.f32 %v1097_v60, %v1115_v2 }
 0x78f   :  { %v1123_v23 = vmul.f32 %v3925_v59, %v3925_v59 }
 0x791   :  { %v1129_v31 = vsel %vm88_vm0, %v1123_v23, 0.0 }
 0x792   :  { %v1110_v35 = vpop.xlane.xlu1 %1109  ;;  %1130 = vadd.xlane.f32.xlu1 %v1129_v31 }
 0x793   :  { %v1116_v24 = vmul.f32 %v1110_v35, %v3502_v14 }
 0x795   :  { %v3931_v25 = vsub.f32 %v1098_v11, %v1116_v24 }
 0x797   :  { %v1124_v26 = vmul.f32 %v3931_v25, %v3931_v25 }
 0x799   :  { %v1132_v0 = vsel %vm88_vm0, %v1124_v26, 0.0 }
 0x79a   :  { %1133 = vadd.xlane.f32.xlu0 %v1132_v0 }
 0x7b1   :  { %v1113_v28 = vpop.xlane.xlu1 %1112 }
 0x7b2   :  { %v1117_v37 = vmul.f32 %v1113_v28, %v3502_v14  ;;  %v1296_v28 = vld [vmem:[%s4626_s13 + $0x38] sm:$0xff] }
 0x7b3   :  { %1322 = vmatpush.msra.mxu1 %v1296_v28 }
 0x7b4   :  { %v3937_v30 = vsub.f32 %v1099_v22, %v1117_v37  ;;  %v1295_v37 = vld [vmem:[%s4626_s13 + $0x30] sm:$0xff] }
 0x7b5   :  { %1323 = vmatpush.msra.mxu1 %v1295_v37 }
 0x7b6   :  { %v1125_v19 = vmul.f32 %v3937_v30, %v3937_v30 }
 0x7b8   :  { %v1135_v33 = vsel %vm88_vm0, %v1125_v19, 0.0  ;;  %v1293_v19 = vld [vmem:[%s4626_s13 + $0x20] sm:$0xff] }
 0x7b9   :  { %1136 = vadd.xlane.f32.xlu2 %v1135_v33  ;;  %v1292_v33 = vld [vmem:[%s4626_s13 + $0x18] sm:$0xff] }
 0x7fd   :  { %v1128_v40 = vpop.xlane.xlu1 %1127 }
 0x7fe   :  { %v1138_v20 = vmul.f32 %v1128_v40, %v3502_v14 }
 0x800   :  { %v1142_v41 = vadd.f32 1e-12, %v1138_v20 }
 0x802   :  { %3224 = vrsqrt.f32 %v1142_v41  ;;  %vm1152_vm1 = vweird.f32 %v1142_v41 }
 0x805   :  { %v1131_v43 = vpop.xlane.xlu1 %1130 }
 0x806   :  { %v1139_v42 = vmul.f32 %v1131_v43, %v3502_v14 }
 0x808   :  { %v3225_v44 = vpop.eup %3224  ;;  %v1143_v45 = vadd.f32 1e-12, %v1139_v42 }
 0x809   :  { %v1147_v46 = vmul.f32 %v3225_v44, %v1142_v41  ;;  %vm1153_vm15 = vweird.f32 %v3225_v44 }
 0x80a   :  { %3226 = vrsqrt.f32 %v1143_v45  ;;  %vm1154_vm2 = vmor %vm1152_vm1, %vm1153_vm15  ;;  %vm1162_vm4 = vweird.f32 %v1143_v45 }
 0x80b   :  { %v1148_v47 = vmul.f32 %v3225_v44, %v1147_v46 }
 0x80d   :  { %v1149_v48 = vmul.f32 0.5, %v1148_v47  ;;  %v1134_v49 = vpop.xlane.xlu0 %1133 }
 0x80e   :  { %v1140_v50 = vmul.f32 %v1134_v49, %v3502_v14 }
 0x80f   :  { %v1150_v51 = vsub.f32 1.5, %v1149_v48 }
 0x810   :  { %v3227_v38 = vpop.eup %3226  ;;  %v1144_v52 = vadd.f32 1e-12, %v1140_v50 }
 0x811   :  { %v1151_v53 = vmul.f32 %v3225_v44, %v1150_v51  ;;  %v1157_v56 = vmul.f32 %v3227_v38, %v1143_v45  ;;  %vm1163_vm3 = vweird.f32 %v3227_v38 }
 0x812   :  { %3228 = vrsqrt.f32 %v1144_v52  ;;  %vm1164_vm5 = vmor %vm1162_vm4, %vm1163_vm3  ;;  %vm1172_vm7 = vweird.f32 %v1144_v52 }
 0x813   :  { %v1155_v58 = vsel %vm1154_vm2, %v3225_v44, %v1151_v53  ;;  %v1158_v32 = vmul.f32 %v3227_v38, %v1157_v56 }
 0x814   :  { %v1186_v3 = vmul.f32 %v1155_v58, %v1118_v18 }
 0x815   :  { %v1159_v4 = vmul.f32 0.5, %v1158_v32 }
 0x816   :  { %v1193_v62 = vmul.f32 %v3130_v57, %v1186_v3 }
 0x817   :  { %v1160_v60 = vsub.f32 1.5, %v1159_v4 }
 0x818   :  { %v3229_v7 = vpop.eup %3228  ;;  %v3963_v6 = vadd.f32 %v3131_v61, %v1193_v62 }
 0x819   :  { %v1161_v8 = vmul.f32 %v3227_v38, %v1160_v60  ;;  %v1167_v63 = vmul.f32 %v3229_v7, %v1144_v52  ;;  %vm1173_vm6 = vweird.f32 %v3229_v7 }
 0x81a   :  { %2915 = vmatmul.msk.f32.vlgmr.msrb.gmra.mxu2 %vm88_vm0, %v3963_v6  ;;  %vm1174_vm8 = vmor %vm1172_vm7, %vm1173_vm6 }
 0x81b   :  { %v1165_v12 = vsel %vm1164_vm5, %v3227_v38, %v1161_v8  ;;  %v1168_v11 = vmul.f32 %v3229_v7, %v1167_v63 }
 0x81c   :  { %v1187_v13 = vmul.f32 %v1165_v12, %v3925_v59 }
 0x81d   :  { %v1169_v10 = vmul.f32 0.5, %v1168_v11 }
 0x81e   :  { %v1194_v15 = vmul.f32 %v3130_v57, %v1187_v13 }
 0x81f   :  { %v1170_v16 = vsub.f32 1.5, %v1169_v10 }
 0x820   :  { %v3968_v54 = vadd.f32 %v3131_v61, %v1194_v15 }
 0x821   :  { %v1171_v1 = vmul.f32 %v3229_v7, %v1170_v16 }
 0x822   :  { %2916 = vmatmul.msk.f32.gmra.mxu2 %vm88_vm0, %v3968_v54 }
 0x823   :  { %v1175_v22 = vsel %vm1174_vm8, %v3229_v7, %v1171_v1 }
 0x824   :  { %v1188_v17 = vmul.f32 %v1175_v22, %v3931_v25 }
 0x826   :  { %v1195_v34 = vmul.f32 %v3130_v57, %v1188_v17 }
 0x828   :  { %v3973_v9 = vadd.f32 %v3131_v61, %v1195_v34 }
 0x82a   :  { %2917 = vmatmul.msk.f32.gmra.mxu2 %vm88_vm0, %v3973_v9 }
 0x82c   :  { %v1137_v18 = vpop.xlane.xlu2 %1136 }
 0x82d   :  { %v1141_v55 = vmul.f32 %v1137_v18, %v3502_v14 }
 0x82f   :  { %v1145_v27 = vadd.f32 1e-12, %v1141_v55 }
 0x831   :  { %3230 = vrsqrt.f32 %v1145_v27  ;;  %vm1182_vm10 = vweird.f32 %v1145_v27 }
 0x837   :  { %v3231_v21 = vpop.eup %3230 }
 0x838   :  { %v1177_v2 = vmul.f32 %v3231_v21, %v1145_v27  ;;  %vm1183_vm9 = vweird.f32 %v3231_v21 }
 0x839   :  { %vm1184_vm11 = vmor %vm1182_vm10, %vm1183_vm9 }
 0x83a   :  { %v1178_v59 = vmul.f32 %v3231_v21, %v1177_v2 }
 0x83c   :  { %v1179_v23 = vmul.f32 0.5, %v1178_v59 }
 0x83e   :  { %v1180_v31 = vsub.f32 1.5, %v1179_v23  ;;  %v3133_v23 = vld [vmem:[%s4625_s14] ss:$0 sm:$0xff] }
 0x840   :  { %v1181_v35 = vmul.f32 %v3231_v21, %v1180_v31 }
 0x842   :  { %v1185_v24 = vsel %vm1184_vm11, %v3231_v21, %v1181_v35 }
 0x843   :  { %v1189_v25 = vmul.f32 %v1185_v24, %v3937_v30  ;;  %v1294_v30 = vld [vmem:[%s4626_s13 + $0x28] sm:$0xff] }
 0x844   :  { %1324 = vmatpush.msra.mxu1 %v1294_v30 }
 0x845   :  { %v1196_v26 = vmul.f32 %v3130_v57, %v1189_v25 }
 0x846   :  { %1325 = vmatpush.msra.mxu1 %v1293_v19 }
 0x847   :  { %v3979_v0 = vadd.f32 %v3131_v61, %v1196_v26 }
 0x848   :  { %1326 = vmatpush.msra.mxu1 %v1292_v33 }
 0x849   :  { %2918 = vmatmul.msk.f32.gmra.mxu2 %vm88_vm0, %v3979_v0 }
 0x84a   :  { %1327 = vmatpush.msra.mxu1 %v1291_v29 }
 0x84c   :  { %1328 = vmatpush.msra.mxu1 %v1290_v5 }
 0x84e   :  { %1329 = vmatpush.msra.mxu1 %v1289_v36 }
 0x89d   :  { %v1241_v40 = vpop.f32.mrf.mxu2 }
 0x89e   :  { %v1242_v20 = vadd.f32 %v3132_v39, %v1241_v40 }
 0x8a0   :  { %v1257_v41 = vmul.f32 %v1242_v20, %v1242_v20  ;;  %v1253_v58 = vmul.f32 0.5, %v1242_v20 }
 0x8a2   :  { %v1261_v43 = vmul.f32 %v1257_v41, %v1242_v20 }
 0x8a4   :  { %v1265_v42 = vmul.f32 0.044715, %v1261_v43 }
 0x8a5   :  { %v1244_v44 = vpop.f32.mrf.mxu2 }
 0x8a6   :  { %v1269_v45 = vadd.f32 %v1265_v42, %v1242_v20  ;;  %v1245_v46 = vadd.f32 %v3132_v39, %v1244_v44 }
 0x8a8   :  { %v1273_v47 = vmul.f32 0.7978846, %v1269_v45  ;;  %v1258_v48 = vmul.f32 %v1245_v46, %v1245_v46  ;;  %v1254_v8 = vmul.f32 0.5, %v1245_v46 }
 0x8aa   :  { %3232 = vtanh.f32 %v1273_v47  ;;  %v1262_v49 = vmul.f32 %v1258_v48, %v1245_v46 }
 0x8ac   :  { %v1266_v50 = vmul.f32 0.044715, %v1262_v49 }
 0x8ad   :  { %v1247_v51 = vpop.f32.mrf.mxu2 }
 0x8ae   :  { %v1270_v38 = vadd.f32 %v1266_v50, %v1245_v46  ;;  %v1248_v52 = vadd.f32 %v3132_v39, %v1247_v51 }
 0x8b0   :  { %v3233_v53 = vpop.eup %3232  ;;  %v1259_v56 = vmul.f32 %v1248_v52, %v1248_v52  ;;  %v1274_v57 = vmul.f32 0.7978846, %v1270_v38  ;;  %v1255_v13 = vmul.f32 0.5, %v1248_v52 }
 0x8b1   :  { %v1281_v32 = vadd.f32 1.0, %v3233_v53 }
 0x8b2   :  { %v1263_v3 = vmul.f32 %v1259_v56, %v1248_v52  ;;  %3234 = vtanh.f32 %v1274_v57 }
 0x8b3   :  { %v1285_v61 = vmul.f32 %v1281_v32, %v1253_v58  ;;  %v2926_v58 = vld [vmem:[%s4682_s28 + $0x38] sm:$0xff]  ;;  %v2925_v32 = vld [vmem:[%s4682_s28 + $0x30] sm:$0xff] }
 0x8b4   :  { %v1267_v4 = vmul.f32 0.044715, %v1263_v3  ;;  %1485 = vmatpush.msra.mxu3 %v2926_v58  ;;  %v2924_v3 = vld [vmem:[%s4682_s28 + $0x28] sm:$0xff] }
 0x8b5   :  { %2919 = vmatmul.msk.f32.vlgmr.msra.gmra.mxu1 %vm1301_vm12, %v1285_v61  ;;  %v2923_v61 = vld [vmem:[%s4682_s28 + $0x20] sm:$0xff]  ;;  %s4699_s28 = smov 56  }
 0x8b6   :  { %v1271_v62 = vadd.f32 %v1267_v4, %v1248_v52  ;;  %1486 = vmatpush.msra.mxu3 %v2925_v32 }
 0x8b8   :  { %v3235_v60 = vpop.eup %3234  ;;  %v1275_v7 = vmul.f32 0.7978846, %v1271_v62  ;;  %1487 = vmatpush.msra.mxu3 %v2924_v3 }
 0x8b9   :  { %v1282_v63 = vadd.f32 1.0, %v3235_v60 }
 0x8ba   :  { %3236 = vtanh.f32 %v1275_v7  ;;  %1488 = vmatpush.msra.mxu3 %v2923_v61 }
 0x8bb   :  { %v1286_v12 = vmul.f32 %v1282_v63, %v1254_v8 }
 0x8bd   :  { %2920 = vmatmul.msk.f32.gmra.mxu1 %vm1301_vm12, %v1286_v12 }
 0x8c0   :  { %v3237_v11 = vpop.eup %3236 }
 0x8c1   :  { %v1283_v10 = vadd.f32 1.0, %v3237_v11 }
 0x8c3   :  { %v1287_v15 = vmul.f32 %v1283_v10, %v1255_v13 }
 0x8c5   :  { %2921 = vmatmul.msk.f32.gmra.mxu1 %vm1301_vm12, %v1287_v15 }
 0x8cc   :  { %v1250_v16 = vpop.f32.mrf.mxu2 }
 0x8cd   :  { %v1251_v1 = vadd.f32 %v3132_v39, %v1250_v16 }
 0x8cf   :  { %v1260_v22 = vmul.f32 %v1251_v1, %v1251_v1  ;;  %v1256_v21 = vmul.f32 0.5, %v1251_v1 }
 0x8d1   :  { %v1264_v17 = vmul.f32 %v1260_v22, %v1251_v1 }
 0x8d3   :  { %v1268_v34 = vmul.f32 0.044715, %v1264_v17 }
 0x8d5   :  { %v1272_v18 = vadd.f32 %v1268_v34, %v1251_v1 }
 0x8d7   :  { %v1276_v55 = vmul.f32 0.7978846, %v1272_v18 }
 0x8d9   :  { %3238 = vtanh.f32 %v1276_v55  ;;  %v3134_v55 = vld [vmem:[%s4627_s15] ss:$0 sm:$0xff] }
 0x8df   :  { %v3239_v27 = vpop.eup %3238 }
 0x8e0   :  { %v1284_v2 = vadd.f32 1.0, %v3239_v27 }
 0x8e2   :  { %v1288_v59 = vmul.f32 %v1284_v2, %v1256_v21 }
 0x8e4   :  { %2922 = vmatmul.msk.f32.gmra.mxu1 %vm1301_vm12, %v1288_v59  ;;  %v3135_v59 = vld [vmem:[%s4628_s16] ss:$0 sm:$0xff] }
 0x932   :  { %v1331_v31 = vpop.f32.mrf.mxu1 }
 0x933   :  { %v1332_v35 = vadd.f32 %v3133_v23, %v1331_v31 }
 0x935   :  { %v1343_v24 = vadd.f32 %v1332_v35, %v3963_v6 }
 0x937   :  { %v1349_v25 = vsel %vm88_vm0, %v1343_v24, 0.0 }
 0x938   :  { %1350 = vadd.xlane.f32.xlu1 %v1349_v25 }
 0x93a   :  { %v1334_v26 = vpop.f32.mrf.mxu1 }
 0x93b   :  { %v1335_v28 = vadd.f32 %v3133_v23, %v1334_v26 }
 0x93d   :  { %v1344_v37 = vadd.f32 %v1335_v28, %v3968_v54 }
 0x93f   :  { %v1352_v30 = vsel %vm88_vm0, %v1344_v37, 0.0 }
 0x940   :  { %1353 = vadd.xlane.f32.xlu0 %v1352_v30 }
 0x942   :  { %v1337_v19 = vpop.f32.mrf.mxu1 }
 0x943   :  { %v1338_v33 = vadd.f32 %v3133_v23, %v1337_v19 }
 0x945   :  { %v1345_v29 = vadd.f32 %v1338_v33, %v3973_v9 }
 0x947   :  { %v1355_v5 = vsel %vm88_vm0, %v1345_v29, 0.0 }
 0x948   :  { %1356 = vadd.xlane.f32.xlu2 %v1355_v5 }
 0x961   :  { %v1340_v36 = vpop.f32.mrf.mxu1 }
 0x962   :  { %v1341_v39 = vadd.f32 %v3133_v23, %v1340_v36 }
 0x964   :  { %v1346_v6 = vadd.f32 %v1341_v39, %v3979_v0 }
 0x966   :  { %v1358_v40 = vsel %vm88_vm0, %v1346_v6, 0.0 }
 0x967   :  { %1359 = vadd.xlane.f32.xlu1 %v1358_v40 }
 0x9ab   :  { %v1351_v20 = vpop.xlane.xlu1 %1350 }
 0x9ac   :  { %v1361_v54 = vmul.f32 %v1351_v20, %v3502_v14 }
 0x9ae   :  { %v1365_v41 = vsub.f32 %v1343_v24, %v1361_v54 }
 0x9b0   :  { %v1369_v43 = vmul.f32 %v1365_v41, %v1365_v41 }
 0x9b2   :  { %v1373_v42 = vsel %vm88_vm0, %v1369_v43, 0.0 }
 0x9b3   :  { %v1354_v44 = vpop.xlane.xlu0 %1353  ;;  %1374 = vadd.xlane.f32.xlu0 %v1373_v42 }
 0x9b4   :  { %v1362_v9 = vmul.f32 %v1354_v44, %v3502_v14 }
 0x9b6   :  { %v4028_v45 = vsub.f32 %v1344_v37, %v1362_v9 }
 0x9b8   :  { %v1370_v46 = vmul.f32 %v4028_v45, %v4028_v45 }
 0x9ba   :  { %v1376_v0 = vsel %vm88_vm0, %v1370_v46, 0.0 }
 0x9bb   :  { %v1357_v47 = vpop.xlane.xlu2 %1356  ;;  %1377 = vadd.xlane.f32.xlu2 %v1376_v0 }
 0x9bc   :  { %v1363_v48 = vmul.f32 %v1357_v47, %v3502_v14 }
 0x9be   :  { %v4034_v49 = vsub.f32 %v1345_v29, %v1363_v48 }
 0x9c0   :  { %v1371_v50 = vmul.f32 %v4034_v49, %v4034_v49 }
 0x9c2   :  { %v1379_v51 = vsel %vm88_vm0, %v1371_v50, 0.0 }
 0x9c3   :  { %1380 = vadd.xlane.f32.xlu1 %v1379_v51 }
 0x9da   :  { %v1360_v38 = vpop.xlane.xlu1 %1359 }
 0x9db   :  { %v1364_v52 = vmul.f32 %v1360_v38, %v3502_v14 }
 0x9dd   :  { %v4040_v53 = vsub.f32 %v1346_v6, %v1364_v52  ;;  %v3136_v52 = vld [vmem:[%s4685_s10 + $0x1] ss:$0 sm:$0xff]  ;;  %s4696_s10 = smov 80  }
 0x9df   :  { %v1372_v56 = vmul.f32 %v4040_v53, %v4040_v53 }
 0x9e1   :  { %v1382_v57 = vsel %vm88_vm0, %v1372_v56, 0.0 }
 0x9e2   :  { %1383 = vadd.xlane.f32.xlu0 %v1382_v57 }
 0xa26   :  { %v1375_v4 = vpop.xlane.xlu0 %1374 }
 0xa27   :  { %v1385_v62 = vmul.f32 %v1375_v4, %v3502_v14 }
 0xa29   :  { %v1389_v60 = vadd.f32 1e-12, %v1385_v62 }
 0xa2b   :  { %3240 = vrsqrt.f32 %v1389_v60  ;;  %vm1399_vm15 = vweird.f32 %v1389_v60 }
 0xa2e   :  { %v1378_v7 = vpop.xlane.xlu2 %1377 }
 0xa2f   :  { %v1386_v8 = vmul.f32 %v1378_v7, %v3502_v14 }
 0xa31   :  { %v3241_v63 = vpop.eup %3240  ;;  %v1390_v12 = vadd.f32 1e-12, %v1386_v8 }
 0xa32   :  { %v1394_v11 = vmul.f32 %v3241_v63, %v1389_v60  ;;  %vm1400_vm13 = vweird.f32 %v3241_v63 }
 0xa33   :  { %3242 = vrsqrt.f32 %v1390_v12  ;;  %vm1401_vm1 = vmor %vm1399_vm15, %vm1400_vm13  ;;  %vm1409_vm3 = vweird.f32 %v1390_v12 }
 0xa34   :  { %v1395_v13 = vmul.f32 %v3241_v63, %v1394_v11 }
 0xa36   :  { %v1396_v10 = vmul.f32 0.5, %v1395_v13  ;;  %v1381_v15 = vpop.xlane.xlu1 %1380 }
 0xa37   :  { %v1387_v16 = vmul.f32 %v1381_v15, %v3502_v14 }
 0xa38   :  { %v1397_v1 = vsub.f32 1.5, %v1396_v10 }
 0xa39   :  { %v3243_v22 = vpop.eup %3242  ;;  %v1391_v17 = vadd.f32 1e-12, %v1387_v16  ;;  %v4127_v16 = vld [vmem:[%s4686_s8 + $0x8] sm:$0xff] }
 0xa3a   :  { %v1398_v34 = vmul.f32 %v3241_v63, %v1397_v1  ;;  %v1404_v18 = vmul.f32 %v3243_v22, %v1390_v12  ;;  %vm1410_vm2 = vweird.f32 %v3243_v22  ;;  %v4120_v12 = vld [vmem:[%s4686_s8] sm:$0xff] }
 0xa3b   :  { %3244 = vrsqrt.f32 %v1391_v17  ;;  %vm1411_vm4 = vmor %vm1409_vm3, %vm1410_vm2  ;;  %vm1419_vm6 = vweird.f32 %v1391_v17 }
 0xa3c   :  { %v1402_v27 = vsel %vm1401_vm1, %v3241_v63, %v1398_v34  ;;  %v1405_v21 = vmul.f32 %v3243_v22, %v1404_v18  ;;  %v4134_v18 = vld [vmem:[%s4686_s8 + $0x10] sm:$0xff] }
 0xa3d   :  { %v1433_v2 = vmul.f32 %v1402_v27, %v1365_v41 }
 0xa3e   :  { %v1406_v23 = vmul.f32 0.5, %v1405_v21 }
 0xa3f   :  { %v1440_v31 = vmul.f32 %v3134_v55, %v1433_v2 }
 0xa40   :  { %v1407_v35 = vsub.f32 1.5, %v1406_v23 }
 0xa41   :  { %v3245_v24 = vpop.eup %3244  ;;  %v4066_v25 = vadd.f32 %v3135_v59, %v1440_v31 }
 0xa42   :  { %v1408_v26 = vmul.f32 %v3243_v22, %v1407_v35  ;;  %v1414_v28 = vmul.f32 %v3245_v24, %v1391_v17  ;;  %vm1420_vm5 = vweird.f32 %v3245_v24 }
 0xa43   :  { %2928 = vmatmul.msk.f32.vlgmr.msra.gmra.mxu3 %vm88_vm0, %v4066_v25  ;;  %vm1421_vm7 = vmor %vm1419_vm6, %vm1420_vm5 }
 0xa44   :  { %v1412_v37 = vsel %vm1411_vm4, %v3243_v22, %v1408_v26  ;;  %v1415_v30 = vmul.f32 %v3245_v24, %v1414_v28 }
 0xa45   :  { %v1434_v19 = vmul.f32 %v1412_v37, %v4028_v45 }
 0xa46   :  { %v1416_v33 = vmul.f32 0.5, %v1415_v30 }
 0xa47   :  { %v1441_v29 = vmul.f32 %v3134_v55, %v1434_v19 }
 0xa48   :  { %v1417_v5 = vsub.f32 1.5, %v1416_v33 }
 0xa49   :  { %v4071_v36 = vadd.f32 %v3135_v59, %v1441_v29 }
 0xa4a   :  { %v1418_v39 = vmul.f32 %v3245_v24, %v1417_v5 }
 0xa4b   :  { %2929 = vmatmul.msk.f32.gmra.mxu3 %vm88_vm0, %v4071_v36 }
 0xa4c   :  { %v1422_v6 = vsel %vm1421_vm7, %v3245_v24, %v1418_v39 }
 0xa4d   :  { %v1435_v40 = vmul.f32 %v1422_v6, %v4034_v49 }
 0xa4f   :  { %v1442_v20 = vmul.f32 %v3134_v55, %v1435_v40 }
 0xa51   :  { %v4076_v54 = vadd.f32 %v3135_v59, %v1442_v20 }
 0xa53   :  { %2930 = vmatmul.msk.f32.gmra.mxu3 %vm88_vm0, %v4076_v54 }
 0xa55   :  { %v1384_v41 = vpop.xlane.xlu0 %1383 }
 0xa56   :  { %v1388_v43 = vmul.f32 %v1384_v41, %v3502_v14 }
 0xa58   :  { %v1392_v42 = vadd.f32 1e-12, %v1388_v43 }
 0xa5a   :  { %3246 = vrsqrt.f32 %v1392_v42  ;;  %vm1429_vm9 = vweird.f32 %v1392_v42 }
 0xa60   :  { %v3247_v44 = vpop.eup %3246 }
 0xa61   :  { %v1424_v9 = vmul.f32 %v3247_v44, %v1392_v42  ;;  %vm1430_vm8 = vweird.f32 %v3247_v44 }
 0xa62   :  { %vm1431_vm10 = vmor %vm1429_vm9, %vm1430_vm8 }
 0xa63   :  { %v1425_v45 = vmul.f32 %v3247_v44, %v1424_v9 }
 0xa65   :  { %v1426_v46 = vmul.f32 0.5, %v1425_v45 }
 0xa67   :  { %v1427_v0 = vsub.f32 1.5, %v1426_v46 }
 0xa69   :  { %v1428_v47 = vmul.f32 %v3247_v44, %v1427_v0 }
 0xa6b   :  { %v1432_v48 = vsel %vm1431_vm10, %v3247_v44, %v1428_v47 }
 0xa6c   :  { %v1436_v49 = vmul.f32 %v1432_v48, %v4040_v53 }
 0xa6e   :  { %v1443_v50 = vmul.f32 %v3134_v55, %v1436_v49 }
 0xa70   :  { %v4082_v51 = vadd.f32 %v3135_v59, %v1443_v50  ;;  %v4141_v59 = vld [vmem:[%s4686_s8 + $0x18] sm:$0xff]  ;;  %s4694_s8 = smov 120  }
 0xa72   :  { %2931 = vmatmul.msk.f32.gmra.mxu3 %vm88_vm0, %v4082_v51 }
 0xac6   :  { %v1490_v38 = vpop.f32.mrf.mxu3 }
 0xac7   :  { %v4101_v61 = vadd.f32 %v3136_v52, %v1490_v38 }
 0xace   :  { %v1493_v56 = vpop.f32.mrf.mxu3 }
 0xacf   :  { %v4089_v57 = vadd.f32 %v3136_v52, %v1493_v56 }
 0xad1   :  { %1513 = vrot.lane.b32.xlu0 %v4089_v57, %s4691_s29  ;;  %v4153_v24 = vpack.i.bf16 %v4101_v61, %v4089_v57 }
 0xad6   :  { %v1496_v58 = vpop.f32.mrf.mxu3 }
 0xad7   :  { %v4093_v32 = vadd.f32 %v3136_v52, %v1496_v58 }
 0xad9   :  { %1515 = vrot.lane.b32.xlu1 %v4093_v32, %s4691_s29 }
 0xaf5   :  { %v1499_v53 = vpop.f32.mrf.mxu3 }
 0xaf6   :  { %v4097_v3 = vadd.f32 %v3136_v52, %v1499_v53  ;;  %v2932_v53 = vld [vmem:[%s4687_s5 + $0x20] sm:$0xff] }
 0xaf8   :  { %1517 = vrot.lane.b32.xlu2 %v4097_v3, %s4691_s29  ;;  %v4147_v35 = vpack.i.bf16 %v4093_v32, %v4097_v3 }
 0xb00   :  { %1511 = vrot.lane.b32.xlu2 %v4101_v61, %s4691_s29 }
 0xb43   :  { %v1514_v60 = vpop.permute.xlu0 %1513 }
 0xb4b   :  { %v1516_v62 = vpop.permute.xlu1 %1515 }
 0xb52   :  { %v1518_v4 = vpop.permute.xlu2 %1517 }
 0xb53   :  { %2936 = vmatpush.xpose.msk.msra.mxu0 %vm267_vm14, %v1518_v4 }
 0xb57   :  { %2937 = vmatpush.xpose.msk.msra.mxu0 %vm267_vm14, %v1516_v62 }
 0xb5a   :  { %v1512_v7 = vpop.permute.xlu2 %1511 }
 0xb5b   :  { %2938 = vmatpush.xpose.msk.msra.mxu0 %vm267_vm14, %v1514_v60 }
 0xb5f   :  { %2939 = vmatpush.xpose.msk.msra.mxu0 %vm267_vm14, %v1512_v7 }
 0xb62   :  { %2940 = vmatmul.msk.f32.vlgmr.msra.gmra.mxu0 %vm267_vm14, %v4101_v61 }
 0xb6a   :  { %2941 = vmatmul.msk.f32.gmra.mxu0 %vm267_vm14, %v4089_v57 }
 0xb72   :  { %2942 = vmatmul.msk.f32.gmra.mxu0 %vm267_vm14, %v4093_v32 }
 0xb7a   :  { %2943 = vmatmul.msk.f32.gmra.mxu0 %vm267_vm14, %v4097_v3 }
 0xbdf   :  { %v1552_v8 = vpop.f32.mrf.mxu0 }
 0xbe0   :  { %v1564_v63 = vmul.f32 0.35355338, %v1552_v8 }
 0xbe2   :  { %v1568_v11 = vadd.f32 %v4120_v12, %v1564_v63 }
 0xbe4   :  { %v1572_v13 = vsel %vm88_vm0, %v1568_v11, -inf }
 0xbe5   :  { %1573 = vmax.xlane.f32.xlu1 %v1572_v13 }
 0xbe7   :  { %v1555_v10 = vpop.f32.mrf.mxu0 }
 0xbe8   :  { %v1565_v15 = vmul.f32 0.35355338, %v1555_v10 }
 0xbea   :  { %v1569_v1 = vadd.f32 %v4127_v16, %v1565_v15 }
 0xbec   :  { %v1575_v22 = vsel %vm88_vm0, %v1569_v1, -inf }
 0xbed   :  { %1576 = vmax.xlane.f32.xlu0 %v1575_v22 }
 0xbef   :  { %v1558_v17 = vpop.f32.mrf.mxu0 }
 0xbf0   :  { %v1566_v34 = vmul.f32 0.35355338, %v1558_v17 }
 0xbf2   :  { %v1570_v55 = vadd.f32 %v4134_v18, %v1566_v34 }
 0xbf4   :  { %v1578_v27 = vsel %vm88_vm0, %v1570_v55, -inf }
 0xbf5   :  { %1579 = vmax.xlane.f32.xlu2 %v1578_v27 }
 0xbf7   :  { %v1561_v21 = vpop.f32.mrf.mxu0 }
 0xbf8   :  { %v1567_v2 = vmul.f32 0.35355338, %v1561_v21 }
 0xbfa   :  { %v1571_v23 = vadd.f32 %v4141_v59, %v1567_v2 }
 0xbfc   :  { %v1581_v31 = vsel %vm88_vm0, %v1571_v23, -inf }
 0xbfd   :  { %1582 = vmax.xlane.f32.xlu1 %v1581_v31 }
 0xc0d   :  { %3087 = vrot.lane.b32.xlu2 %v4147_v35, %s4692_s3 }
 0xc15   :  { %1683 = vrot.lane.b32.xlu2 %v4097_v3, %s4693_s9 }
 0xc16   :  { %3092 = vrot.lane.b32.xlu1 %v4153_v24, %s4692_s3 }
 0xc1d   :  { %1677 = vrot.lane.b32.xlu2 %v4101_v61, %s4693_s9 }
 0xc1e   :  { %1681 = vrot.lane.b32.xlu1 %v4093_v32, %s4693_s9 }
 0xc25   :  { %1671 = vrot.lane.b32.xlu2 %v4089_v57, %s4694_s8 }
 0xc26   :  { %1669 = vrot.lane.b32.xlu1 %v4101_v61, %s4694_s8 }
 0xc2d   :  { %1673 = vrot.lane.b32.xlu2 %v4093_v32, %s4694_s8 }
 0xc2e   :  { %2142 = vrot.lane.b32.xlu1 %v4097_v3, %s4695_s0 }
 0xc35   :  { %1929 = vrot.lane.b32.xlu2 %v4093_v32, %s4696_s10 }
 0xc36   :  { %2140 = vrot.lane.b32.xlu1 %v4093_v32, %s4695_s0 }
 0xc3d   :  { %1927 = vrot.lane.b32.xlu2 %v4089_v57, %s4696_s10 }
 0xc3e   :  { %1675 = vrot.lane.b32.xlu1 %v4097_v3, %s4694_s8 }
 0xc45   :  { %1925 = vrot.lane.b32.xlu2 %v4101_v61, %s4696_s10 }
 0xc46   :  { %2128 = vrot.lane.b32.xlu1 %v4101_v61, %s4697_s26 }
 0xc4d   :  { %1919 = vrot.lane.b32.xlu2 %v4089_v57, %s4698_s27 }
 0xc4e   :  { %2130 = vrot.lane.b32.xlu1 %v4089_v57, %s4697_s26 }
 0xc55   :  { %2134 = vrot.lane.b32.xlu2 %v4097_v3, %s4697_s26 }
 0xc56   :  { %1921 = vrot.lane.b32.xlu1 %v4093_v32, %s4698_s27 }
 0xc58   :  { %v1574_v26 = vpop.xlane.xlu1 %1573 }
 0xc59   :  { %v1584_v28 = vsub.f32 %v1568_v11, %v1574_v26 }
 0xc5b   :  { %v1588_v37 = vmul.f32 1.442695, %v1584_v28 }
 0xc5d   :  { %3248 = vpow2.f32 %v1588_v37 }
 0xc60   :  { %v1577_v30 = vpop.xlane.xlu0 %1576 }
 0xc61   :  { %v1585_v19 = vsub.f32 %v1569_v1, %v1577_v30 }
 0xc63   :  { %v3249_v33 = vpop.eup %3248  ;;  %v1590_v29 = vmul.f32 1.442695, %v1585_v19 }
 0xc64   :  { %v1596_v5 = vsel %vm88_vm0, %v3249_v33, 0.0 }
 0xc65   :  { %3250 = vpow2.f32 %v1590_v29  ;;  %1597 = vadd.xlane.f32.xlu0 %v1596_v5 }
 0xc68   :  { %v1580_v39 = vpop.xlane.xlu2 %1579 }
 0xc69   :  { %v1586_v6 = vsub.f32 %v1570_v55, %v1580_v39 }
 0xc6b   :  { %v3251_v40 = vpop.eup %3250  ;;  %v1592_v20 = vmul.f32 1.442695, %v1586_v6 }
 0xc6c   :  { %v1599_v41 = vsel %vm88_vm0, %v3251_v40, 0.0 }
 0xc6d   :  { %3252 = vpow2.f32 %v1592_v20  ;;  %1600 = vadd.xlane.f32.xlu0 %v1599_v41 }
 0xc70   :  { %v3088_v43 = vpop.permute.xlu2 %3087  ;;  %v1583_v42 = vpop.xlane.xlu1 %1582 }
 0xc71   :  { %v3089_v44 = vunpack.i.l.bf16 %v3088_v43  ;;  %v1587_v9 = vsub.f32 %v1571_v23, %v1583_v42  ;;  %v3090_v46 = vunpack.i.h.bf16 %v3088_v43 }
 0xc73   :  { %v3253_v45 = vpop.eup %3252  ;;  %v1594_v0 = vmul.f32 1.442695, %v1587_v9  ;;  %1652 = vmatpush.msra.mxu2 %v3089_v44 }
 0xc74   :  { %v1602_v47 = vsel %vm88_vm0, %v3253_v45, 0.0 }
 0xc75   :  { %3254 = vpow2.f32 %v1594_v0  ;;  %1603 = vadd.xlane.f32.xlu0 %v1602_v47  ;;  %1653 = vmatpush.msra.mxu2 %v3090_v46 }
 0xc78   :  { %v1684_v48 = vpop.permute.xlu2 %1683 }
 0xc79   :  { %2948 = vmatpush.xpose.msk.msrb.mxu1 %vm267_vm14, %v1684_v48 }
 0xc7b   :  { %v3255_v49 = vpop.eup %3254 }
 0xc7c   :  { %v1605_v50 = vsel %vm88_vm0, %v3255_v49, 0.0 }
 0xc7d   :  { %1606 = vadd.xlane.f32.xlu0 %v1605_v50 }
 0xc88   :  { %v3093_v38 = vpop.permute.xlu1 %3092 }
 0xc89   :  { %v3094_v52 = vunpack.i.l.bf16 %v3093_v38  ;;  %v3095_v56 = vunpack.i.h.bf16 %v3093_v38 }
 0xc8b   :  { %1654 = vmatpush.msra.mxu2 %v3094_v52 }
 0xc8d   :  { %1655 = vmatpush.msra.mxu2 %v3095_v56 }
 0xc8f   :  { %1903 = vmatpush.msrb.mxu2 %v2932_v53 }
 0xc90   :  { %v1682_v58 = vpop.permute.xlu1 %1681 }
 0xc91   :  { %1679 = vrot.lane.b32.xlu0 %v4089_v57, %s4693_s9  ;;  %2949 = vmatpush.xpose.msk.msrb.mxu1 %vm267_vm14, %v1682_v58 }
 0xc98   :  { %v1670_v4 = vpop.permute.xlu1 %1669 }
 0xc99   :  { %1931 = vrot.lane.b32.xlu0 %v4097_v3, %s4696_s10 }
 0xca1   :  { %2138 = vrot.lane.b32.xlu0 %v4089_v57, %s4695_s0  ;;  %v2143_v57 = vpop.permute.xlu1 %2142 }
 0xca9   :  { %2136 = vrot.lane.b32.xlu0 %v4101_v61, %s4695_s0 }
 0xcb1   :  { %1917 = vrot.lane.b32.xlu0 %v4101_v61, %s4698_s27  ;;  %v2141_v61 = vpop.permute.xlu1 %2140 }
 0xcb9   :  { %2132 = vrot.lane.b32.xlu0 %v4093_v32, %s4697_s26  ;;  %v1678_v32 = vpop.permute.xlu2 %1677  ;;  %v1676_v28 = vpop.permute.xlu1 %1675 }
 0xcc1   :  { %1923 = vrot.lane.b32.xlu0 %v4097_v3, %s4698_s27  ;;  %v1672_v10 = vpop.permute.xlu2 %1671  ;;  %v2129_v37 = vpop.permute.xlu1 %2128 }
 0xcc9   :  { %v1674_v34 = vpop.permute.xlu2 %1673  ;;  %v2131_v19 = vpop.permute.xlu1 %2130 }
 0xcd1   :  { %v1930_v55 = vpop.permute.xlu2 %1929  ;;  %v1922_v5 = vpop.permute.xlu1 %1921 }
 0xcd8   :  { %v1598_v62 = vpop.xlane.xlu0 %1597 }
 0xcd9   :  { %3256 = vrcp.f32 %v1598_v62  ;;  %v1928_v2 = vpop.permute.xlu2 %1927 }
 0xcdf   :  { %v3257_v60 = vpop.eup %3256 }
 0xce0   :  { %v1612_v7 = vmul.f32 %v3257_v60, %v3249_v33  ;;  %v1601_v8 = vpop.xlane.xlu0 %1600 }
 0xce1   :  { %3258 = vrcp.f32 %v1601_v8  ;;  %v1926_v31 = vpop.permute.xlu2 %1925 }
 0xce2   :  { %2944 = vmatmul.msk.f32.vlgmr.msra.gmra.mxu2 %vm88_vm0, %v1612_v7 }
 0xce3   :  { %2984 = vmatpush.xpose.msk.msra.mxu2 %vm267_vm14, %v2143_v57 }
 0xce7   :  { %v3259_v3 = vpop.eup %3258  ;;  %2985 = vmatpush.xpose.msk.msra.mxu2 %vm267_vm14, %v2141_v61 }
 0xce8   :  { %v1604_v63 = vpop.xlane.xlu0 %1603  ;;  %v1613_v11 = vmul.f32 %v3259_v3, %v3251_v40 }
 0xce9   :  { %3260 = vrcp.f32 %v1604_v63  ;;  %v1920_v33 = vpop.permute.xlu2 %1919 }
 0xcea   :  { %2945 = vmatmul.msk.f32.gmra.mxu2 %vm88_vm0, %v1613_v11 }
 0xcef   :  { %v3261_v13 = vpop.eup %3260 }
 0xcf0   :  { %v1607_v15 = vpop.xlane.xlu0 %1606  ;;  %v1614_v1 = vmul.f32 %v3261_v13, %v3253_v45 }
 0xcf1   :  { %3262 = vrcp.f32 %v1607_v15  ;;  %v2135_v38 = vpop.permute.xlu2 %2134 }
 0xcf2   :  { %2946 = vmatmul.msk.f32.gmra.mxu2 %vm88_vm0, %v1614_v1 }
 0xcf7   :  { %v3263_v22 = vpop.eup %3262 }
 0xcf8   :  { %v1615_v17 = vmul.f32 %v3263_v22, %v3255_v49 }
 0xcfa   :  { %2947 = vmatmul.msk.f32.gmra.mxu2 %vm88_vm0, %v1615_v17 }
 0xd03   :  { %v1680_v27 = vpop.permute.xlu0 %1679 }
 0xd04   :  { %2950 = vmatpush.xpose.msk.msrb.mxu1 %vm267_vm14, %v1680_v27 }
 0xd08   :  { %2951 = vmatpush.xpose.msk.msrb.mxu1 %vm267_vm14, %v1678_v32 }
 0xd0b   :  { %v1932_v21 = vpop.permute.xlu0 %1931  ;;  %2952 = vmatmul.msk.f32.vlgmr.msrb.gmra.mxu1 %vm267_vm14, %v1670_v4 }
 0xd0c   :  { %2968 = vmatpush.xpose.msk.msra.mxu1 %vm267_vm14, %v1932_v21 }
 0xd10   :  { %2969 = vmatpush.xpose.msk.msra.mxu1 %vm267_vm14, %v1930_v55 }
 0xd13   :  { %v2139_v23 = vpop.permute.xlu0 %2138  ;;  %2953 = vmatmul.msk.f32.gmra.mxu1 %vm267_vm14, %v1672_v10 }
 0xd14   :  { %2970 = vmatpush.xpose.msk.msra.mxu1 %vm267_vm14, %v1928_v2  ;;  %2986 = vmatpush.xpose.msk.msra.mxu2 %vm267_vm14, %v2139_v23 }
 0xd18   :  { %2971 = vmatpush.xpose.msk.msra.mxu1 %vm267_vm14, %v1926_v31 }
 0xd1b   :  { %v2137_v26 = vpop.permute.xlu0 %2136  ;;  %2954 = vmatmul.msk.f32.gmra.mxu1 %vm267_vm14, %v1674_v34 }
 0xd1c   :  { %2987 = vmatpush.xpose.msk.msra.mxu2 %vm267_vm14, %v2137_v26 }
 0xd23   :  { %2955 = vmatmul.msk.f32.gmra.mxu1 %vm267_vm14, %v1676_v28  ;;  %v1918_v30 = vpop.permute.xlu0 %1917 }
 0xd2b   :  { %2972 = vmatmul.msk.f32.vlgmr.msra.gmra.mxu1 %vm267_vm14, %v1918_v30  ;;  %v2133_v29 = vpop.permute.xlu0 %2132 }
 0xd33   :  { %2973 = vmatmul.msk.f32.gmra.mxu1 %vm267_vm14, %v1920_v33  ;;  %v1924_v39 = vpop.permute.xlu0 %1923 }
 0xd3b   :  { %2974 = vmatmul.msk.f32.gmra.mxu1 %vm267_vm14, %v1922_v5 }
 0xd43   :  { %2975 = vmatmul.msk.f32.gmra.mxu1 %vm267_vm14, %v1924_v39 }
 0xd65   :  { %v1657_v6 = vpop.f32.mrf.mxu2 }
 0xd66   :  { %2964 = vmatmul.msk.f32.vlgmr.msrb.gmra.mxu2 %vm267_vm14, %v1657_v6 }
 0xd6d   :  { %v1660_v40 = vpop.f32.mrf.mxu2 }
 0xd6e   :  { %2965 = vmatmul.msk.f32.gmra.mxu2 %vm267_vm14, %v1660_v40 }
 0xd75   :  { %v1663_v20 = vpop.f32.mrf.mxu2 }
 0xd76   :  { %2966 = vmatmul.msk.f32.gmra.mxu2 %vm267_vm14, %v1663_v20 }
 0xd7d   :  { %v1666_v41 = vpop.f32.mrf.mxu2 }
 0xd7e   :  { %2967 = vmatmul.msk.f32.gmra.mxu2 %vm267_vm14, %v1666_v41 }
 0xd86   :  { %2988 = vmatmul.msk.f32.vlgmr.msra.gmra.mxu2 %vm267_vm14, %v2129_v37 }
 0xd88   :  { %v1718_v43 = vpop.f32.mrf.mxu1 }
 0xd89   :  { %v1730_v42 = vmul.f32 0.35355338, %v1718_v43 }
 0xd8b   :  { %v1734_v44 = vadd.f32 %v4120_v12, %v1730_v42 }
 0xd8d   :  { %v1738_v9 = vsel %vm88_vm0, %v1734_v44, -inf }
 0xd8e   :  { %1739 = vmax.xlane.f32.xlu1 %v1738_v9  ;;  %2989 = vmatmul.msk.f32.gmra.mxu2 %vm267_vm14, %v2131_v19 }
 0xd90   :  { %v1721_v45 = vpop.f32.mrf.mxu1 }
 0xd91   :  { %v1731_v46 = vmul.f32 0.35355338, %v1721_v45 }
 0xd93   :  { %v1735_v0 = vadd.f32 %v4127_v16, %v1731_v46 }
 0xd95   :  { %v1741_v47 = vsel %vm88_vm0, %v1735_v0, -inf }
 0xd96   :  { %1742 = vmax.xlane.f32.xlu2 %v1741_v47  ;;  %2990 = vmatmul.msk.f32.gmra.mxu2 %vm267_vm14, %v2133_v29 }
 0xd98   :  { %v1724_v48 = vpop.f32.mrf.mxu1 }
 0xd99   :  { %v1732_v49 = vmul.f32 0.35355338, %v1724_v48 }
 0xd9b   :  { %v1736_v50 = vadd.f32 %v4134_v18, %v1732_v49 }
 0xd9d   :  { %v1744_v52 = vsel %vm88_vm0, %v1736_v50, -inf }
 0xd9e   :  { %1745 = vmax.xlane.f32.xlu0 %v1744_v52  ;;  %2991 = vmatmul.msk.f32.gmra.mxu2 %vm267_vm14, %v2135_v38 }
 0xda0   :  { %v1727_v56 = vpop.f32.mrf.mxu1 }
 0xda1   :  { %v1733_v58 = vmul.f32 0.35355338, %v1727_v56 }
 0xda3   :  { %v4251_v53 = vadd.f32 %v4141_v59, %v1733_v58 }
 0xda5   :  { %v1747_v4 = vsel %vm88_vm0, %v4251_v53, -inf }
 0xda6   :  { %1748 = vmax.xlane.f32.xlu1 %v1747_v4 }
 0xda8   :  { %v1966_v62 = vpop.f32.mrf.mxu1 }
 0xda9   :  { %v1978_v57 = vmul.f32 0.35355338, %v1966_v62 }
 0xdab   :  { %v4256_v60 = vadd.f32 %v4120_v12, %v1978_v57 }
 0xdad   :  { %v1986_v7 = vsel %vm88_vm0, %v4256_v60, -inf }
 0xdae   :  { %1987 = vmax.xlane.f32.xlu2 %v1986_v7 }
 0xdb0   :  { %v1969_v8 = vpop.f32.mrf.mxu1 }
 0xdb1   :  { %v1979_v32 = vmul.f32 0.35355338, %v1969_v8 }
 0xdb3   :  { %v4261_v61 = vadd.f32 %v4127_v16, %v1979_v32 }
 0xdb5   :  { %v1989_v3 = vsel %vm88_vm0, %v4261_v61, -inf }
 0xdb6   :  { %1990 = vmax.xlane.f32.xlu1 %v1989_v3 }
 0xdb8   :  { %v1972_v63 = vpop.f32.mrf.mxu1 }
 0xdb9   :  { %v1980_v11 = vmul.f32 0.35355338, %v1972_v63 }
 0xdbb   :  { %v4266_v13 = vadd.f32 %v4134_v18, %v1980_v11 }
 0xdbd   :  { %v1992_v10 = vsel %vm88_vm0, %v4266_v13, -inf }
 0xdbe   :  { %1993 = vmax.xlane.f32.xlu0 %v1992_v10 }
 0xdc0   :  { %v1975_v15 = vpop.f32.mrf.mxu1 }
 0xdc1   :  { %v1981_v1 = vmul.f32 0.35355338, %v1975_v15 }
 0xdc3   :  { %v4271_v22 = vadd.f32 %v4141_v59, %v1981_v1 }
 0xdc5   :  { %v1995_v17 = vsel %vm88_vm0, %v4271_v22, -inf }
 0xdc6   :  { %1996 = vmax.xlane.f32.xlu1 %v1995_v17 }
 0xdd2   :  { %3097 = vrot.lane.b32.xlu0 %v4147_v35, %s4699_s28 }
 0xddf   :  { %3102 = vrot.lane.b32.xlu1 %v4153_v24, %s4699_s28 }
 0xde9   :  { %v4279_v34 = vpop.f32.mrf.mxu2 }
 0xdf1   :  { %v4281_v55 = vpop.f32.mrf.mxu2 }
 0xdf9   :  { %v4283_v27 = vpop.f32.mrf.mxu2 }
 0xe01   :  { %v1740_v21 = vpop.xlane.xlu1 %1739  ;;  %v4285_v2 = vpop.f32.mrf.mxu2 }
 0xe02   :  { %v1750_v23 = vsub.f32 %v1734_v44, %v1740_v21 }
 0xe04   :  { %v1754_v31 = vmul.f32 1.442695, %v1750_v23 }
 0xe06   :  { %3264 = vpow2.f32 %v1754_v31 }
 0xe09   :  { %v1743_v26 = vpop.xlane.xlu2 %1742  ;;  %v2177_v28 = vpop.f32.mrf.mxu2 }
 0xe0a   :  { %v1751_v37 = vsub.f32 %v1735_v0, %v1743_v26  ;;  %v2189_v9 = vmul.f32 0.35355338, %v2177_v28 }
 0xe0c   :  { %v4287_v30 = vpop.eup %3264  ;;  %v1756_v19 = vmul.f32 1.442695, %v1751_v37  ;;  %v4305_v0 = vadd.f32 %v4120_v12, %v2189_v9 }
 0xe0d   :  { %v1762_v33 = vsel %vm88_vm0, %v4287_v30, 0.0 }
 0xe0e   :  { %3266 = vpow2.f32 %v1756_v19  ;;  %1763 = vadd.xlane.f32.xlu2 %v1762_v33  ;;  %v2197_v47 = vsel %vm88_vm0, %v4305_v0, -inf }
 0xe11   :  { %v1746_v29 = vpop.xlane.xlu0 %1745  ;;  %v2180_v5 = vpop.f32.mrf.mxu2 }
 0xe12   :  { %v1752_v39 = vsub.f32 %v1736_v50, %v1746_v29  ;;  %v2190_v63 = vmul.f32 0.35355338, %v2180_v5 }
 0xe14   :  { %v4291_v6 = vpop.eup %3266  ;;  %v1758_v40 = vmul.f32 1.442695, %v1752_v39 }
 0xe15   :  { %v1765_v20 = vsel %vm88_vm0, %v4291_v6, 0.0 }
 0xe16   :  { %3268 = vpow2.f32 %v1758_v40  ;;  %1766 = vadd.xlane.f32.xlu2 %v1765_v20 }
 0xe19   :  { %v2183_v41 = vpop.f32.mrf.mxu2 }
 0xe1a   :  { %v2191_v43 = vmul.f32 0.35355338, %v2183_v41 }
 0xe1c   :  { %v4295_v42 = vpop.eup %3268  ;;  %v4298_v44 = vadd.f32 %v4134_v18, %v2191_v43  ;;  %v1749_v18 = vpop.xlane.xlu1 %1748 }
 0xe1d   :  { %v1768_v45 = vsel %vm88_vm0, %v4295_v42, 0.0  ;;  %v1753_v38 = vsub.f32 %v4251_v53, %v1749_v18 }
 0xe1e   :  { %1769 = vadd.xlane.f32.xlu0 %v1768_v45  ;;  %v2203_v46 = vsel %vm88_vm0, %v4298_v44, -inf }
 0xe1f   :  { %2204 = vmax.xlane.f32.xlu1 %v2203_v46  ;;  %v1760_v56 = vmul.f32 1.442695, %v1753_v38 }
 0xe21   :  { %v1988_v4 = vpop.xlane.xlu2 %1987  ;;  %3270 = vpow2.f32 %v1760_v56  ;;  %v2186_v10 = vpop.f32.mrf.mxu2 }
 0xe22   :  { %v1998_v62 = vsub.f32 %v4256_v60, %v1988_v4  ;;  %v4328_v60 = vadd.f32 %v4127_v16, %v2190_v63  ;;  %v2192_v15 = vmul.f32 0.35355338, %v2186_v10 }
 0xe24   :  { %v2002_v57 = vmul.f32 1.442695, %v1998_v62  ;;  %v2200_v1 = vsel %vm88_vm0, %v4328_v60, -inf  ;;  %v4333_v17 = vadd.f32 %v4141_v59, %v2192_v15 }
 0xe26   :  { %2198 = vmax.xlane.f32.xlu0 %v2197_v47  ;;  %3272 = vpow2.f32 %v2002_v57  ;;  %v2206_v21 = vsel %vm88_vm0, %v4333_v17, -inf }
 0xe27   :  { %v4319_v8 = vpop.eup %3270 }
 0xe28   :  { %v1771_v53 = vsel %vm88_vm0, %v4319_v8, 0.0 }
 0xe29   :  { %v1991_v49 = vpop.xlane.xlu1 %1990 }
 0xe2a   :  { %v1999_v41 = vsub.f32 %v4261_v61, %v1991_v49 }
 0xe2c   :  { %v4323_v3 = vpop.eup %3272 }
 0xe2d   :  { %v2010_v11 = vsel %vm88_vm0, %v4323_v3, 0.0 }
 0xe2e   :  { %3107 = vrot.lane.b32.xlu2 %v4147_v35, %s4700_s24 }
 0xe31   :  { %v4313_v48 = vpop.xlane.xlu0 %1993 }
 0xe32   :  { %v2000_v57 = vsub.f32 %v4266_v13, %v4313_v48 }
 0xe39   :  { %v4316_v58 = vpop.xlane.xlu1 %1996 }
 0xe3a   :  { %3112 = vrot.lane.b32.xlu0 %v4147_v35, %s4701_s25  ;;  %v2001_v61 = vsub.f32 %v4271_v22, %v4316_v58 }
 0xe3c   :  { %v2008_v38 = vmul.f32 1.442695, %v2001_v61 }
 0xe44   :  { %v3098_v50 = vpop.permute.xlu0 %3097 }
 0xe45   :  { %v3099_v52 = vunpack.i.l.bf16 %v3098_v50  ;;  %v3100_v12 = vunpack.i.h.bf16 %v3098_v50 }
 0xe47   :  { %1818 = vmatpush.msrb.mxu3 %v3099_v52 }
 0xe49   :  { %1819 = vmatpush.msrb.mxu3 %v3100_v12 }
 0xe51   :  { %v3103_v7 = vpop.permute.xlu1 %3102 }
 0xe52   :  { %v3104_v35 = vunpack.i.l.bf16 %v3103_v7  ;;  %v3105_v32 = vunpack.i.h.bf16 %v3103_v7  ;;  %v2006_v7 = vmul.f32 1.442695, %v2000_v57 }
 0xe54   :  { %1820 = vmatpush.msrb.mxu3 %v3104_v35 }
 0xe56   :  { %1821 = vmatpush.msrb.mxu3 %v3105_v32 }
 0xe57   :  { %1772 = vadd.xlane.f32.xlu2 %v1771_v53 }
 0xe5f   :  { %2011 = vadd.xlane.f32.xlu2 %v2010_v11 }
 0xe67   :  { %2201 = vmax.xlane.f32.xlu2 %v2200_v1 }
 0xe6f   :  { %2207 = vmax.xlane.f32.xlu2 %v2206_v21 }
 0xe81   :  { %v1764_v23 = vpop.xlane.xlu2 %1763 }
 0xe82   :  { %3274 = vrcp.f32 %v1764_v23 }
 0xe87   :  { %3117 = vrot.lane.b32.xlu2 %v4153_v24, %s4700_s24 }
 0xe88   :  { %v3275_v16 = vpop.eup %3274 }
 0xe89   :  { %v1778_v31 = vmul.f32 %v3275_v16, %v4287_v30  ;;  %v1767_v26 = vpop.xlane.xlu2 %1766 }
 0xe8a   :  { %3276 = vrcp.f32 %v1767_v26 }
 0xe8b   :  { %2956 = vmatmul.msk.f32.vlgmr.msrb.gmra.mxu3 %vm88_vm0, %v1778_v31  ;;  %v2933_v31 = vld [vmem:[%s4687_s5 + $0x28] sm:$0xff] }
 0xe8c   :  { %1862 = vmatpush.msrb.mxu0 %v2933_v31 }
 0xe90   :  { %v3277_v28 = vpop.eup %3276 }
 0xe91   :  { %v1770_v37 = vpop.xlane.xlu0 %1769  ;;  %v3108_v59 = vpop.permute.xlu2 %3107  ;;  %v1779_v19 = vmul.f32 %v3277_v28, %v4291_v6  ;;  %v2004_v6 = vmul.f32 1.442695, %v1999_v41 }
 0xe92   :  { %3278 = vrcp.f32 %v1770_v37  ;;  %v3109_v33 = vunpack.i.l.bf16 %v3108_v59  ;;  %v3110_v29 = vunpack.i.h.bf16 %v3108_v59  ;;  %v2205_v43 = vpop.xlane.xlu1 %2204 }
 0xe93   :  { %2957 = vmatmul.msk.f32.gmra.mxu3 %vm88_vm0, %v1779_v19  ;;  %v2211_v46 = vsub.f32 %v4298_v44, %v2205_v43 }
 0xe94   :  { %2066 = vmatpush.msra.mxu3 %v3109_v33 }
 0xe96   :  { %2067 = vmatpush.msra.mxu3 %v3110_v29 }
 0xe98   :  { %v3279_v5 = vpop.eup %3278 }
 0xe99   :  { %v2199_v39 = vpop.xlane.xlu0 %2198  ;;  %v1780_v30 = vmul.f32 %v3279_v5, %v4295_v42  ;;  %v2217_v42 = vmul.f32 1.442695, %v2211_v46 }
 0xe9a   :  { %v2209_v40 = vsub.f32 %v4305_v0, %v2199_v39 }
 0xe9b   :  { %2958 = vmatmul.msk.f32.gmra.mxu3 %vm88_vm0, %v1780_v30 }
 0xe9c   :  { %v2213_v20 = vmul.f32 1.442695, %v2209_v40 }
 0xe9e   :  { %3280 = vpow2.f32 %v2213_v20  ;;  %v2934_v20 = vld [vmem:[%s4687_s5 + $0x30] sm:$0xff] }
 0xe9f   :  { %3282 = vpow2.f32 %v2004_v6  ;;  %2110 = vmatpush.msra.mxu0 %v2934_v20 }
 0xea0   :  { %3284 = vpow2.f32 %v2217_v42 }
 0xea1   :  { %3286 = vpow2.f32 %v2008_v38 }
 0xea4   :  { %v4347_v9 = vpop.eup %3280 }
 0xea5   :  { %v2221_v45 = vsel %vm88_vm0, %v4347_v9, 0.0  ;;  %v4352_v47 = vpop.eup %3282 }
 0xea6   :  { %2222 = vadd.xlane.f32.xlu1 %v2221_v45  ;;  %v2013_v50 = vsel %vm88_vm0, %v4352_v47, 0.0  ;;  %v4358_v52 = vpop.eup %3284 }
 0xea7   :  { %v2227_v44 = vsel %vm88_vm0, %v4358_v52, 0.0  ;;  %v4362_v12 = vpop.eup %3286 }
 0xea8   :  { %v2019_v22 = vsel %vm88_vm0, %v4362_v12, 0.0 }
 0xeac   :  { %v3113_v0 = vpop.permute.xlu0 %3112 }
 0xead   :  { %v3114_v18 = vunpack.i.l.bf16 %v3113_v0  ;;  %v3115_v49 = vunpack.i.h.bf16 %v3113_v0 }
 0xeaf   :  { %2277 = vmatpush.msrb.mxu1 %v3114_v18 }
 0xeb0   :  { %2014 = vadd.xlane.f32.xlu2 %v2013_v50 }
 0xeb1   :  { %2278 = vmatpush.msrb.mxu1 %v3115_v49 }
 0xeb8   :  { %2228 = vadd.xlane.f32.xlu2 %v2227_v44 }
 0xebf   :  { %3122 = vrot.lane.b32.xlu1 %v4153_v24, %s4701_s25 }
 0xec0   :  { %2020 = vadd.xlane.f32.xlu2 %v2019_v22 }
 0xeca   :  { %v1773_v56 = vpop.xlane.xlu2 %1772 }
 0xecb   :  { %3288 = vrcp.f32 %v1773_v56 }
 0xecc   :  { %3290 = vpow2.f32 %v2006_v7 }
 0xed1   :  { %v3289_v58 = vpop.eup %3288 }
 0xed2   :  { %v2012_v4 = vpop.xlane.xlu2 %2011  ;;  %v1781_v62 = vmul.f32 %v3289_v58, %v4319_v8  ;;  %v3291_v11 = vpop.eup %3290  ;;  %v2935_v58 = vld [vmem:[%s4687_s5 + $0x38] sm:$0xff] }
 0xed3   :  { %v2016_v13 = vsel %vm88_vm0, %v3291_v11, 0.0 }
 0xed4   :  { %2959 = vmatmul.msk.f32.gmra.mxu3 %vm88_vm0, %v1781_v62 }
 0xeda   :  { %v2202_v35 = vpop.xlane.xlu2 %2201 }
 0xedb   :  { %v2210_v32 = vsub.f32 %v4328_v60, %v2202_v35 }
 0xedd   :  { %v2215_v24 = vmul.f32 1.442695, %v2210_v32 }
 0xedf   :  { %3292 = vpow2.f32 %v2215_v24 }
 0xee0   :  { %3294 = vrcp.f32 %v2012_v4 }
 0xee2   :  { %v2208_v53 = vpop.xlane.xlu2 %2207 }
 0xee3   :  { %v2212_v63 = vsub.f32 %v4333_v17, %v2208_v53 }
 0xee5   :  { %v3293_v10 = vpop.eup %3292  ;;  %v2219_v15 = vmul.f32 1.442695, %v2212_v63 }
 0xee6   :  { %v2224_v8 = vsel %vm88_vm0, %v3293_v10, 0.0  ;;  %v3295_v1 = vpop.eup %3294 }
 0xee7   :  { %3296 = vpow2.f32 %v2219_v15  ;;  %2225 = vadd.xlane.f32.xlu0 %v2224_v8  ;;  %v2026_v16 = vmul.f32 %v3295_v1, %v4323_v3  ;;  %v3137_v8 = vld [vmem:[%s4688_s30 + $0x1] ss:$0 sm:$0xff] }
 0xee9   :  { %2017 = vadd.xlane.f32.xlu1 %v2016_v13 }
 0xeea   :  { %v3118_v48 = vpop.permute.xlu2 %3117 }
 0xeeb   :  { %v3119_v60 = vunpack.i.l.bf16 %v3118_v48  ;;  %v3120_v23 = vunpack.i.h.bf16 %v3118_v48 }
 0xeed   :  { %v3297_v21 = vpop.eup %3296  ;;  %2068 = vmatpush.msra.mxu3 %v3119_v60 }
 0xeee   :  { %v2230_v17 = vsel %vm88_vm0, %v3297_v21, 0.0 }
 0xeef   :  { %2231 = vadd.xlane.f32.xlu0 %v2230_v17  ;;  %2069 = vmatpush.msra.mxu3 %v3120_v23 }
 0xef0   :  { %2976 = vmatmul.msk.f32.vlgmr.msra.gmra.mxu3 %vm88_vm0, %v2026_v16 }
 0xef1   :  { %2321 = vmatpush.msrb.mxu3 %v2935_v58 }
 0xf0e   :  { %v1823_v26 = vpop.f32.mrf.mxu3 }
 0xf0f   :  { %2960 = vmatmul.msk.f32.vlgmr.msrb.gmra.mxu0 %vm267_vm14, %v1823_v26 }
 0xf16   :  { %v1826_v28 = vpop.f32.mrf.mxu3 }
 0xf17   :  { %2961 = vmatmul.msk.f32.gmra.mxu0 %vm267_vm14, %v1826_v28 }
 0xf19   :  { %v2223_v59 = vpop.xlane.xlu1 %2222 }
 0xf1e   :  { %v1829_v37 = vpop.f32.mrf.mxu3 }
 0xf1f   :  { %2962 = vmatmul.msk.f32.gmra.mxu0 %vm267_vm14, %v1829_v37 }
 0xf23   :  { %v2015_v3 = vpop.xlane.xlu2 %2014 }
 0xf24   :  { %3298 = vrcp.f32 %v2015_v3 }
 0xf25   :  { %3300 = vrcp.f32 %v2223_v59 }
 0xf2a   :  { %v3299_v19 = vpop.eup %3298 }
 0xf2b   :  { %v2027_v33 = vmul.f32 %v3299_v19, %v4352_v47  ;;  %v3301_v5 = vpop.eup %3300  ;;  %v2229_v41 = vpop.xlane.xlu2 %2228 }
 0xf2c   :  { %v2237_v40 = vmul.f32 %v3301_v5, %v4347_v9 }
 0xf2d   :  { %2977 = vmatmul.msk.f32.gmra.mxu3 %vm88_vm0, %v2027_v33 }
 0xf31   :  { %v3123_v29 = vpop.permute.xlu1 %3122 }
 0xf32   :  { %v3124_v39 = vunpack.i.l.bf16 %v3123_v29  ;;  %v3125_v30 = vunpack.i.h.bf16 %v3123_v29 }
 0xf33   :  { %v2021_v46 = vpop.xlane.xlu2 %2020 }
 0xf34   :  { %2279 = vmatpush.msrb.mxu1 %v3124_v39 }
 0xf36   :  { %2280 = vmatpush.msrb.mxu1 %v3125_v30 }
 0xf37   :  { %2992 = vmatmul.msk.f32.vlgmr.msrb.gmra.mxu1 %vm88_vm0, %v2237_v40 }
 0xf57   :  { %v1832_v6 = vpop.f32.mrf.mxu3 }
 0xf58   :  { %2963 = vmatmul.msk.f32.gmra.mxu0 %vm267_vm14, %v1832_v6 }
 0xf5a   :  { %v2226_v43 = vpop.xlane.xlu0 %2225 }
 0xf5b   :  { %3302 = vrcp.f32 %v2226_v43 }
 0xf5c   :  { %v2018_v45 = vpop.xlane.xlu1 %2017 }
 0xf5d   :  { %3304 = vrcp.f32 %v2018_v45 }
 0xf5e   :  { %3306 = vrcp.f32 %v2229_v41 }
 0xf5f   :  { %3308 = vrcp.f32 %v2021_v46 }
 0xf61   :  { %v3303_v42 = vpop.eup %3302 }
 0xf62   :  { %v2238_v9 = vmul.f32 %v3303_v42, %v3293_v10  ;;  %v2232_v18 = vpop.xlane.xlu0 %2231 }
 0xf63   :  { %v3305_v47 = vpop.eup %3304  ;;  %3310 = vrcp.f32 %v2232_v18 }
 0xf64   :  { %2993 = vmatmul.msk.f32.gmra.mxu1 %vm88_vm0, %v2238_v9  ;;  %v2028_v0 = vmul.f32 %v3305_v47, %v3291_v11  ;;  %v3307_v61 = vpop.eup %3306 }
 0xf65   :  { %v3309_v49 = vpop.eup %3308  ;;  %v2239_v50 = vmul.f32 %v3307_v61, %v4358_v52 }
 0xf66   :  { %2978 = vmatmul.msk.f32.gmra.mxu3 %vm88_vm0, %v2028_v0  ;;  %v2029_v38 = vmul.f32 %v3309_v49, %v4362_v12 }
 0xf69   :  { %v3311_v44 = vpop.eup %3310 }
 0xf6a   :  { %v2240_v22 = vmul.f32 %v3311_v44, %v3297_v21 }
 0xf6c   :  { %2994 = vmatmul.msk.f32.gmra.mxu1 %vm88_vm0, %v2239_v50 }
 0xf6e   :  { %2979 = vmatmul.msk.f32.gmra.mxu3 %vm88_vm0, %v2029_v38 }
 0xf73   :  { %v2071_v56 = vpop.f32.mrf.mxu3 }
 0xf74   :  { %2980 = vmatmul.msk.f32.vlgmr.msra.gmra.mxu0 %vm267_vm14, %v2071_v56  ;;  %2995 = vmatmul.msk.f32.gmra.mxu1 %vm88_vm0, %v2240_v22 }
 0xf8c   :  { %v1864_v32 = vpop.f32.mrf.mxu0 }
 0xf8d   :  { %v1906_v10 = vadd.f32 %v4279_v34, %v1864_v32 }
 0xf94   :  { %v1867_v24 = vpop.f32.mrf.mxu0 }
 0xf95   :  { %v1909_v16 = vadd.f32 %v4281_v55, %v1867_v24 }
 0xf9c   :  { %v1870_v53 = vpop.f32.mrf.mxu0 }
 0xf9d   :  { %v1912_v37 = vadd.f32 %v4283_v27, %v1870_v53 }
 0xfb0   :  { %v2074_v4 = vpop.f32.mrf.mxu3 }
 0xfb1   :  { %2981 = vmatmul.msk.f32.gmra.mxu0 %vm267_vm14, %v2074_v4 }
 0xfb4   :  { %v2282_v52 = vpop.f32.mrf.mxu1 }
 0xfb5   :  { %2996 = vmatmul.msk.f32.vlgmr.msrb.gmra.mxu3 %vm267_vm14, %v2282_v52  ;;  %v3006_v52 = vld [vmem:[%s4624_s11 + $0x38] sm:$0xff] }
 0xfb6   :  { %2492 = vmatpush.msrb.mxu0 %v3006_v52  ;;  %v3014_v52 = vld [vmem:[%s4626_s13 + $0x50] sm:$0xff] }
 0xfd5   :  { %v1873_v63 = vpop.f32.mrf.mxu0 }
 0xfd6   :  { %v1915_v55 = vadd.f32 %v4285_v2, %v1873_v63 }
 0xfe1   :  { %v2285_v12 = vpop.f32.mrf.mxu1 }
 0xfe2   :  { %2997 = vmatmul.msk.f32.gmra.mxu3 %vm267_vm14, %v2285_v12  ;;  %v3005_v12 = vld [vmem:[%s4624_s11 + $0x30] sm:$0xff] }
 0xfe3   :  { %2493 = vmatpush.msrb.mxu0 %v3005_v12  ;;  %v3013_v12 = vld [vmem:[%s4626_s13 + $0x48] sm:$0xff] }
 0xfe9   :  { %v2077_v62 = vpop.f32.mrf.mxu3  ;;  %v2288_v57 = vpop.f32.mrf.mxu1 }
 0xfea   :  { %2982 = vmatmul.msk.f32.gmra.mxu0 %vm267_vm14, %v2077_v62  ;;  %2998 = vmatmul.msk.f32.gmra.mxu3 %vm267_vm14, %v2288_v57  ;;  %v3004_v62 = vld [vmem:[%s4624_s11 + $0x28] sm:$0xff]  ;;  %v3003_v57 = vld [vmem:[%s4624_s11 + $0x20] sm:$0xff] }
 0xfeb   :  { %2494 = vmatpush.msrb.mxu0 %v3004_v62  ;;  %v3012_v62 = vld [vmem:[%s4626_s13 + $0x40] sm:$0xff] }
 0xfed   :  { %2495 = vmatpush.msrb.mxu0 %v3003_v57  ;;  %v3140_v57 = vld [vmem:[%s4623_s12 + $0x1] ss:$0 sm:$0xff] }
 0xff1   :  { %v2080_v7 = vpop.f32.mrf.mxu3  ;;  %v2291_v35 = vpop.f32.mrf.mxu1 }
 0xff2   :  { %2983 = vmatmul.msk.f32.gmra.mxu0 %vm267_vm14, %v2080_v7  ;;  %2999 = vmatmul.msk.f32.gmra.mxu3 %vm267_vm14, %v2291_v35  ;;  %v2112_v11 = vpop.f32.mrf.mxu0 }
 0xff3   :  { %v2124_v15 = vadd.f32 %v2112_v11, %v1906_v10 }
0x102e   :  { %v2115_v23 = vpop.f32.mrf.mxu0 }
0x102f   :  { %v2125_v17 = vadd.f32 %v2115_v23, %v1909_v16 }
0x1038   :  { %v2323_v13 = vpop.f32.mrf.mxu3 }
0x1039   :  { %v2335_v48 = vadd.f32 %v2323_v13, %v2124_v15 }
0x103b   :  { %v2344_v1 = vadd.f32 %v3137_v8, %v2335_v48  ;;  %v3139_v48 = vld [vmem:[%s4690_s6 + $0x1] ss:$0 sm:$0xff] }
0x103d   :  { %v2348_v60 = vadd.f32 %v2344_v1, %v4066_v25 }
0x103f   :  { %v2356_v21 = vsel %vm88_vm0, %v2348_v60, 0.0 }
0x1040   :  { %2357 = vadd.xlane.f32.xlu2 %v2356_v21 }
0x1065   :  { %v2326_v31 = vpop.f32.mrf.mxu3 }
0x1066   :  { %v2336_v26 = vadd.f32 %v2326_v31, %v2125_v17 }
0x1067   :  { %v2118_v28 = vpop.f32.mrf.mxu0 }
0x1068   :  { %v2345_v34 = vadd.f32 %v3137_v8, %v2336_v26  ;;  %v2126_v59 = vadd.f32 %v2118_v28, %v1912_v37 }
0x106a   :  { %v2349_v3 = vadd.f32 %v2345_v34, %v4071_v36 }
0x106c   :  { %v2359_v19 = vsel %vm88_vm0, %v2349_v3, 0.0 }
0x106d   :  { %v2329_v33 = vpop.f32.mrf.mxu3  ;;  %2360 = vadd.xlane.f32.xlu0 %v2359_v19 }
0x106e   :  { %v2337_v25 = vadd.f32 %v2329_v33, %v2126_v59 }
0x106f   :  { %v2121_v5 = vpop.f32.mrf.mxu0 }
0x1070   :  { %v2346_v29 = vadd.f32 %v3137_v8, %v2337_v25  ;;  %v2127_v40 = vadd.f32 %v2121_v5, %v1915_v55 }
0x1072   :  { %v2350_v39 = vadd.f32 %v2346_v29, %v4076_v54 }
0x1074   :  { %v2362_v30 = vsel %vm88_vm0, %v2350_v39, 0.0 }
0x1075   :  { %2363 = vadd.xlane.f32.xlu2 %v2362_v30  ;;  %v2332_v20 = vpop.f32.mrf.mxu3 }
0x1076   :  { %v2338_v27 = vadd.f32 %v2332_v20, %v2127_v40 }
0x1078   :  { %v2347_v41 = vadd.f32 %v3137_v8, %v2338_v27  ;;  %v3138_v8 = vld [vmem:[%s4689_s4 + $0x1] ss:$0 sm:$0xff] }
0x107a   :  { %v2351_v36 = vadd.f32 %v2347_v41, %v4082_v51 }
0x107c   :  { %v2365_v6 = vsel %vm88_vm0, %v2351_v36, 0.0 }
0x107d   :  { %2366 = vadd.xlane.f32.xlu0 %v2365_v6 }
0x10b3   :  { %v2358_v43 = vpop.xlane.xlu2 %2357 }
0x10b4   :  { %v2368_v45 = vmul.f32 %v2358_v43, %v3502_v14 }
0x10b6   :  { %v2372_v46 = vsub.f32 %v2348_v60, %v2368_v45 }
0x10b8   :  { %v2376_v42 = vmul.f32 %v2372_v46, %v2372_v46 }
0x10ba   :  { %v2380_v54 = vsel %vm88_vm0, %v2376_v42, 0.0 }
0x10bb   :  { %2381 = vadd.xlane.f32.xlu2 %v2380_v54 }
0x10e0   :  { %v2361_v2 = vpop.xlane.xlu0 %2360 }
0x10e1   :  { %v2369_v9 = vmul.f32 %v2361_v2, %v3502_v14 }
0x10e3   :  { %v4429_v47 = vsub.f32 %v2349_v3, %v2369_v9 }
0x10e5   :  { %v2377_v0 = vmul.f32 %v4429_v47, %v4429_v47 }
0x10e7   :  { %v2383_v51 = vsel %vm88_vm0, %v2377_v0, 0.0 }
0x10e8   :  { %2384 = vadd.xlane.f32.xlu1 %v2383_v51  ;;  %v2364_v18 = vpop.xlane.xlu2 %2363 }
0x10e9   :  { %v2370_v61 = vmul.f32 %v2364_v18, %v3502_v14 }
0x10eb   :  { %v4435_v49 = vsub.f32 %v2350_v39, %v2370_v61 }
0x10ed   :  { %v2378_v50 = vmul.f32 %v4435_v49, %v4435_v49 }
0x10ef   :  { %v2386_v38 = vsel %vm88_vm0, %v2378_v50, 0.0 }
0x10f0   :  { %2387 = vadd.xlane.f32.xlu0 %v2386_v38  ;;  %v2367_v44 = vpop.xlane.xlu0 %2366 }
0x10f1   :  { %v2371_v22 = vmul.f32 %v2367_v44, %v3502_v14 }
0x10f3   :  { %v4441_v56 = vsub.f32 %v2351_v36, %v2371_v22  ;;  %v3018_v22 = vld [vmem:[%s4626_s13 + $0x70] sm:$0xff] }
0x10f5   :  { %v2379_v58 = vmul.f32 %v4441_v56, %v4441_v56 }
0x10f7   :  { %v2389_v4 = vsel %vm88_vm0, %v2379_v58, 0.0  ;;  %v3016_v58 = vld [vmem:[%s4626_s13 + $0x60] sm:$0xff] }
0x10f8   :  { %2390 = vadd.xlane.f32.xlu2 %v2389_v4  ;;  %v3015_v4 = vld [vmem:[%s4626_s13 + $0x58] sm:$0xff] }
0x112e   :  { %v2382_v7 = vpop.xlane.xlu2 %2381 }
0x112f   :  { %v2392_v35 = vmul.f32 %v2382_v7, %v3502_v14 }
0x1131   :  { %v2396_v32 = vadd.f32 1e-12, %v2392_v35 }
0x1133   :  { %3312 = vrsqrt.f32 %v2396_v32  ;;  %vm2406_vm11 = vweird.f32 %v2396_v32 }
0x1139   :  { %v3313_v24 = vpop.eup %3312 }
0x113a   :  { %v2401_v53 = vmul.f32 %v3313_v24, %v2396_v32  ;;  %vm2407_vm14 = vweird.f32 %v3313_v24 }
0x113b   :  { %vm2408_vm13 = vmor %vm2406_vm11, %vm2407_vm14 }
0x113c   :  { %v2402_v63 = vmul.f32 %v3313_v24, %v2401_v53 }
0x113e   :  { %v2403_v11 = vmul.f32 0.5, %v2402_v63 }
0x1140   :  { %v2404_v10 = vsub.f32 1.5, %v2403_v11 }
0x1142   :  { %v2405_v15 = vmul.f32 %v3313_v24, %v2404_v10 }
0x1144   :  { %v2409_v13 = vsel %vm2408_vm13, %v3313_v24, %v2405_v15 }
0x1145   :  { %v2440_v1 = vmul.f32 %v2409_v13, %v2372_v46 }
0x1147   :  { %v2447_v60 = vmul.f32 %v3138_v8, %v2440_v1 }
0x1149   :  { %v4465_v21 = vadd.f32 %v3139_v48, %v2447_v60 }
0x114b   :  { %3008 = vmatmul.msk.f32.vlgmr.msrb.gmra.mxu0 %vm88_vm0, %v4465_v21 }
0x115b   :  { %v2385_v23 = vpop.xlane.xlu1 %2384 }
0x115c   :  { %v2393_v16 = vmul.f32 %v2385_v23, %v3502_v14 }
0x115e   :  { %v2397_v17 = vadd.f32 1e-12, %v2393_v16 }
0x1160   :  { %3314 = vrsqrt.f32 %v2397_v17  ;;  %vm2416_vm1 = vweird.f32 %v2397_v17 }
0x1163   :  { %v2388_v31 = vpop.xlane.xlu0 %2387 }
0x1164   :  { %v2394_v26 = vmul.f32 %v2388_v31, %v3502_v14 }
0x1166   :  { %v3315_v34 = vpop.eup %3314  ;;  %v2398_v28 = vadd.f32 1e-12, %v2394_v26 }
0x1167   :  { %v2411_v37 = vmul.f32 %v3315_v34, %v2397_v17  ;;  %vm2417_vm15 = vweird.f32 %v3315_v34 }
0x1168   :  { %3316 = vrsqrt.f32 %v2398_v28  ;;  %vm2418_vm2 = vmor %vm2416_vm1, %vm2417_vm15  ;;  %vm2426_vm4 = vweird.f32 %v2398_v28 }
0x1169   :  { %v2412_v3 = vmul.f32 %v3315_v34, %v2411_v37 }
0x116b   :  { %v2413_v59 = vmul.f32 0.5, %v2412_v3  ;;  %v2391_v19 = vpop.xlane.xlu2 %2390 }
0x116c   :  { %v2395_v25 = vmul.f32 %v2391_v19, %v3502_v14 }
0x116d   :  { %v2414_v33 = vsub.f32 1.5, %v2413_v59 }
0x116e   :  { %v3317_v29 = vpop.eup %3316  ;;  %v2399_v55 = vadd.f32 1e-12, %v2395_v25 }
0x116f   :  { %v2415_v5 = vmul.f32 %v3315_v34, %v2414_v33  ;;  %v2421_v39 = vmul.f32 %v3317_v29, %v2398_v28  ;;  %vm2427_vm3 = vweird.f32 %v3317_v29 }
0x1170   :  { %3318 = vrsqrt.f32 %v2399_v55  ;;  %vm2428_vm5 = vmor %vm2426_vm4, %vm2427_vm3  ;;  %vm2436_vm7 = vweird.f32 %v2399_v55 }
0x1171   :  { %v2419_v30 = vsel %vm2418_vm2, %v3315_v34, %v2415_v5  ;;  %v2422_v40 = vmul.f32 %v3317_v29, %v2421_v39 }
0x1172   :  { %v2441_v20 = vmul.f32 %v2419_v30, %v4429_v47 }
0x1173   :  { %v2423_v27 = vmul.f32 0.5, %v2422_v40 }
0x1174   :  { %v2448_v41 = vmul.f32 %v3138_v8, %v2441_v20 }
0x1175   :  { %v2424_v36 = vsub.f32 1.5, %v2423_v27 }
0x1176   :  { %v4473_v6 = vadd.f32 %v3139_v48, %v2448_v41  ;;  %v3319_v43 = vpop.eup %3318 }
0x1177   :  { %v2425_v45 = vmul.f32 %v3317_v29, %v2424_v36  ;;  %v2431_v46 = vmul.f32 %v3319_v43, %v2399_v55  ;;  %vm2437_vm6 = vweird.f32 %v3319_v43 }
0x1178   :  { %3009 = vmatmul.msk.f32.gmra.mxu0 %vm88_vm0, %v4473_v6  ;;  %vm2438_vm8 = vmor %vm2436_vm7, %vm2437_vm6 }
0x1179   :  { %v2429_v42 = vsel %vm2428_vm5, %v3317_v29, %v2425_v45  ;;  %v2432_v2 = vmul.f32 %v3319_v43, %v2431_v46 }
0x117a   :  { %v2442_v54 = vmul.f32 %v2429_v42, %v4435_v49  ;;  %v3019_v49 = vld [vmem:[%s4626_s13 + $0x78] sm:$0xff] }
0x117b   :  { %v2433_v9 = vmul.f32 0.5, %v2432_v2  ;;  %2579 = vmatpush.msrb.mxu2 %v3019_v49 }
0x117c   :  { %v2449_v47 = vmul.f32 %v3138_v8, %v2442_v54 }
0x117d   :  { %v2434_v0 = vsub.f32 1.5, %v2433_v9  ;;  %2580 = vmatpush.msrb.mxu2 %v3018_v22 }
0x117e   :  { %v4478_v51 = vadd.f32 %v3139_v48, %v2449_v47 }
0x117f   :  { %v2435_v18 = vmul.f32 %v3319_v43, %v2434_v0  ;;  %v3141_v0 = vld [vmem:[%s4625_s14 + $0x1] ss:$0 sm:$0xff]  ;;  %s4703_s14 = sld [smem:[#allocation14_spill]] }
0x1180   :  { %3010 = vmatmul.msk.f32.gmra.mxu0 %vm88_vm0, %v4478_v51 }
0x1181   :  { %v2439_v61 = vsel %vm2438_vm8, %v3319_v43, %v2435_v18 }
0x1182   :  { %v2443_v50 = vmul.f32 %v2439_v61, %v4441_v56  ;;  %v3017_v56 = vld [vmem:[%s4626_s13 + $0x68] sm:$0xff] }
0x1183   :  { %2581 = vmatpush.msrb.mxu2 %v3017_v56 }
0x1184   :  { %v2450_v38 = vmul.f32 %v3138_v8, %v2443_v50 }
0x1185   :  { %2582 = vmatpush.msrb.mxu2 %v3016_v58 }
0x1186   :  { %v4483_v44 = vadd.f32 %v3139_v48, %v2450_v38 }
0x1187   :  { %2583 = vmatpush.msrb.mxu2 %v3015_v4 }
0x1188   :  { %3011 = vmatmul.msk.f32.gmra.mxu0 %vm88_vm0, %v4483_v44 }
0x1189   :  { %2584 = vmatpush.msrb.mxu2 %v3014_v52 }
0x118b   :  { %2585 = vmatpush.msrb.mxu2 %v3013_v12 }
0x118d   :  { %2586 = vmatpush.msrb.mxu2 %v3012_v62 }
0x11c8   :  { %v2497_v7 = vpop.f32.mrf.mxu0 }
0x11c9   :  { %v2498_v35 = vadd.f32 %v3140_v57, %v2497_v7 }
0x11cb   :  { %v2513_v32 = vmul.f32 %v2498_v35, %v2498_v35  ;;  %v2509_v15 = vmul.f32 0.5, %v2498_v35 }
0x11cd   :  { %v2517_v24 = vmul.f32 %v2513_v32, %v2498_v35 }
0x11cf   :  { %v2521_v53 = vmul.f32 0.044715, %v2517_v24 }
0x11d1   :  { %v2525_v63 = vadd.f32 %v2521_v53, %v2498_v35 }
0x11d3   :  { %v2529_v11 = vmul.f32 0.7978846, %v2525_v63 }
0x11d5   :  { %3320 = vtanh.f32 %v2529_v11 }
0x11db   :  { %v3321_v10 = vpop.eup %3320 }
0x11dc   :  { %v2537_v8 = vadd.f32 1.0, %v3321_v10 }
0x11de   :  { %v2541_v13 = vmul.f32 %v2537_v8, %v2509_v15 }
0x11e0   :  { %3021 = vmatmul.msk.f32.vlgmr.msrb.gmra.mxu2 %vm1301_vm12, %v2541_v13 }
0x11f5   :  { %v2500_v48 = vpop.f32.mrf.mxu0 }
0x11f6   :  { %v2501_v1 = vadd.f32 %v3140_v57, %v2500_v48 }
0x11f8   :  { %v2514_v60 = vmul.f32 %v2501_v1, %v2501_v1  ;;  %v2510_v5 = vmul.f32 0.5, %v2501_v1 }
0x11fa   :  { %v2518_v23 = vmul.f32 %v2514_v60, %v2501_v1 }
0x11fc   :  { %v2522_v16 = vmul.f32 0.044715, %v2518_v23 }
0x11fd   :  { %v2503_v17 = vpop.f32.mrf.mxu0 }
0x11fe   :  { %v2526_v31 = vadd.f32 %v2522_v16, %v2501_v1  ;;  %v2504_v26 = vadd.f32 %v3140_v57, %v2503_v17 }
0x1200   :  { %v2530_v34 = vmul.f32 0.7978846, %v2526_v31  ;;  %v2515_v28 = vmul.f32 %v2504_v26, %v2504_v26  ;;  %v2511_v36 = vmul.f32 0.5, %v2504_v26 }
0x1202   :  { %3322 = vtanh.f32 %v2530_v34  ;;  %v2519_v37 = vmul.f32 %v2515_v28, %v2504_v26 }
0x1204   :  { %v2523_v3 = vmul.f32 0.044715, %v2519_v37 }
0x1205   :  { %v2506_v19 = vpop.f32.mrf.mxu0 }
0x1206   :  { %v2527_v59 = vadd.f32 %v2523_v3, %v2504_v26  ;;  %v2507_v33 = vadd.f32 %v3140_v57, %v2506_v19 }
0x1208   :  { %v3323_v25 = vpop.eup %3322  ;;  %v2531_v29 = vmul.f32 0.7978846, %v2527_v59  ;;  %v2516_v39 = vmul.f32 %v2507_v33, %v2507_v33  ;;  %v2512_v54 = vmul.f32 0.5, %v2507_v33 }
0x1209   :  { %v2538_v55 = vadd.f32 1.0, %v3323_v25 }
0x120a   :  { %3324 = vtanh.f32 %v2531_v29  ;;  %v2520_v30 = vmul.f32 %v2516_v39, %v2507_v33 }
0x120b   :  { %v2542_v40 = vmul.f32 %v2538_v55, %v2510_v5 }
0x120c   :  { %v2524_v20 = vmul.f32 0.044715, %v2520_v30 }
0x120d   :  { %3022 = vmatmul.msk.f32.gmra.mxu2 %vm1301_vm12, %v2542_v40 }
0x120e   :  { %v2528_v27 = vadd.f32 %v2524_v20, %v2507_v33  ;;  %v2737_v20 = vld [vmem:[%s4629_s17 + $0x18] sm:$0xff] }
0x120f   :  { %2757 = vmatpush.msra.mxu3 %v2737_v20 }
0x1210   :  { %v3325_v41 = vpop.eup %3324  ;;  %v2532_v43 = vmul.f32 0.7978846, %v2528_v27  ;;  %v2736_v27 = vld [vmem:[%s4629_s17 + $0x10] sm:$0xff] }
0x1211   :  { %v2539_v45 = vadd.f32 1.0, %v3325_v41  ;;  %2758 = vmatpush.msra.mxu3 %v2736_v27 }
0x1212   :  { %3326 = vtanh.f32 %v2532_v43 }
0x1213   :  { %v2543_v46 = vmul.f32 %v2539_v45, %v2511_v36  ;;  %v2735_v45 = vld [vmem:[%s4629_s17 + $0x8] sm:$0xff] }
0x1214   :  { %2759 = vmatpush.msra.mxu3 %v2735_v45 }
0x1215   :  { %3023 = vmatmul.msk.f32.gmra.mxu2 %vm1301_vm12, %v2543_v46 }
0x1218   :  { %v3327_v42 = vpop.eup %3326 }
0x1219   :  { %v2540_v2 = vadd.f32 1.0, %v3327_v42 }
0x121b   :  { %v2544_v9 = vmul.f32 %v2540_v2, %v2512_v54  ;;  %v2734_v54 = vld [vmem:[%s4629_s17] sm:$0xff] }
0x121c   :  { %2760 = vmatpush.msra.mxu3 %v2734_v54 }
0x121d   :  { %3024 = vmatmul.msk.f32.gmra.mxu2 %vm1301_vm12, %v2544_v9 }
0x1263   :  { %v2588_v47 = vpop.f32.mrf.mxu2 }
0x1264   :  { %v2589_v62 = vadd.f32 %v3141_v0, %v2588_v47 }
0x1290   :  { %v2591_v18 = vpop.f32.mrf.mxu2 }
0x1291   :  { %v2592_v61 = vadd.f32 %v3141_v0, %v2591_v18 }
0x1293   :  { %v2601_v50 = vadd.f32 %v2592_v61, %v4473_v6  ;;  %v2600_v6 = vadd.f32 %v2589_v62, %v4465_v21 }
0x1295   :  { %v2611_v38 = vsel %vm88_vm0, %v2601_v50, 0.0  ;;  %v2608_v7 = vsel %vm88_vm0, %v2600_v6, 0.0 }
0x1296   :  { %2612 = vadd.xlane.f32.xlu2 %v2611_v38 }
0x1298   :  { %v2594_v49 = vpop.f32.mrf.mxu2 }
0x1299   :  { %v2595_v22 = vadd.f32 %v3141_v0, %v2594_v49 }
0x129b   :  { %v2602_v56 = vadd.f32 %v2595_v22, %v4478_v51 }
0x129d   :  { %v2614_v58 = vsel %vm88_vm0, %v2602_v56, 0.0 }
0x129e   :  { %2615 = vadd.xlane.f32.xlu0 %v2614_v58 }
0x12a0   :  { %v2597_v4 = vpop.f32.mrf.mxu2 }
0x12a1   :  { %v2598_v52 = vadd.f32 %v3141_v0, %v2597_v4 }
0x12a3   :  { %v2603_v12 = vadd.f32 %v2598_v52, %v4483_v44 }
0x12a5   :  { %v2617_v57 = vsel %vm88_vm0, %v2603_v12, 0.0 }
0x12a6   :  { %2618 = vadd.xlane.f32.xlu1 %v2617_v57 }
0x12ae   :  { %2609 = vadd.xlane.f32.xlu1 %v2608_v7 }
0x1309   :  { %v2613_v35 = vpop.xlane.xlu2 %2612 }
0x130a   :  { %v2621_v32 = vmul.f32 %v2613_v35, %v3502_v14 }
0x130c   :  { %v4530_v51 = vsub.f32 %v2601_v50, %v2621_v32 }
0x130e   :  { %v2629_v24 = vmul.f32 %v4530_v51, %v4530_v51 }
0x1310   :  { %v2635_v53 = vsel %vm88_vm0, %v2629_v24, 0.0  ;;  %v3143_v24 = vld [vmem:[%s4628_s16 + $0x1] ss:$0 sm:$0xff] }
0x1311   :  { %v2616_v44 = vpop.xlane.xlu0 %2615  ;;  %2636 = vadd.xlane.f32.xlu1 %v2635_v53 }
0x1312   :  { %v2622_v63 = vmul.f32 %v2616_v44, %v3502_v14 }
0x1314   :  { %v4536_v11 = vsub.f32 %v2602_v56, %v2622_v63 }
0x1316   :  { %v2630_v21 = vmul.f32 %v4536_v11, %v4536_v11 }
0x1318   :  { %v2638_v10 = vsel %vm88_vm0, %v2630_v21, 0.0 }
0x1319   :  { %2639 = vadd.xlane.f32.xlu2 %v2638_v10  ;;  %v2619_v15 = vpop.xlane.xlu1 %2618 }
0x131a   :  { %v2623_v8 = vmul.f32 %v2619_v15, %v3502_v14 }
0x131c   :  { %v4542_v13 = vsub.f32 %v2603_v12, %v2623_v8 }
0x131e   :  { %v2631_v48 = vmul.f32 %v4542_v13, %v4542_v13 }
0x1320   :  { %v2641_v1 = vsel %vm88_vm0, %v2631_v48, 0.0 }
0x1321   :  { %2642 = vadd.xlane.f32.xlu0 %v2641_v1  ;;  %v2610_v60 = vpop.xlane.xlu1 %2609  ;;  %v2710_v1 = vld [vmem:[%s4630_s2] sm:$0xf] }
0x1322   :  { %v2620_v23 = vmul.f32 %v2610_v60, %v3502_v14  ;;  %v3144_v60 = vld [vmem:[%s4631_s19] ss:$0 sm:$0xff] }
0x1324   :  { %v4548_v16 = vsub.f32 %v2600_v6, %v2620_v23  ;;  %v3142_v6 = vld [vmem:[%s4627_s15 + $0x1] ss:$0 sm:$0xff]  ;;  %v2769_v23 = vld [vmem:[%s4636_s22] sm:$0x1] }
0x1326   :  { %v2628_v17 = vmul.f32 %v4548_v16, %v4548_v16 }
0x1328   :  { %v2632_v31 = vsel %vm88_vm0, %v2628_v17, 0.0  ;;  %v2775_v17 = vadd.f32 1e-05, %v2769_v23 }
0x1329   :  { %2633 = vadd.xlane.f32.xlu0 %v2632_v31  ;;  %v3145_v31 = vld [vmem:[%s4632_s23] ss:$0 sm:$0xff]  ;;  %s4702_s23 = sld [smem:[#allocation13_spill]] }
0x132a   :  { %vm2782_vm6 = vweird.f32 %v2775_v17 }
0x133d   :  { %2807 = vrot.lane.b32.xlu0 %v3144_v60, %s4691_s29 }
0x1345   :  { %2824 = vrot.lane.b32.xlu0 %v3145_v31, %s4691_s29 }
0x1384   :  { %v2637_v26 = vpop.xlane.xlu1 %2636 }
0x1385   :  { %v2645_v34 = vmul.f32 %v2637_v26, %v3502_v14  ;;  %v3147_v26 = vld [vmem:[%s4634_s20] ss:$0 sm:$0xff] }
0x1387   :  { %v2649_v28 = vadd.f32 1e-12, %v2645_v34 }
0x1389   :  { %3328 = vrsqrt.f32 %v2649_v28  ;;  %vm2668_vm11 = vweird.f32 %v2649_v28 }
0x138c   :  { %v2640_v37 = vpop.xlane.xlu2 %2639 }
0x138d   :  { %v2646_v3 = vmul.f32 %v2640_v37, %v3502_v14 }
0x138f   :  { %v2650_v59 = vadd.f32 1e-12, %v2646_v3  ;;  %v3329_v19 = vpop.eup %3328 }
0x1390   :  { %v2663_v33 = vmul.f32 %v3329_v19, %v2649_v28  ;;  %vm2669_vm9 = vweird.f32 %v3329_v19 }
0x1391   :  { %3330 = vrsqrt.f32 %v2650_v59  ;;  %vm2678_vm10 = vweird.f32 %v2650_v59  ;;  %vm2670_vm15 = vmor %vm2668_vm11, %vm2669_vm9  ;;  %vm2841_vm9 = vcmask 1024  }
0x1392   :  { %v2664_v30 = vmul.f32 %v3329_v19, %v2663_v33 }
0x1394   :  { %v2643_v25 = vpop.xlane.xlu0 %2642  ;;  %v2665_v36 = vmul.f32 0.5, %v2664_v30 }
0x1395   :  { %v2647_v29 = vmul.f32 %v2643_v25, %v3502_v14 }
0x1396   :  { %v2666_v47 = vsub.f32 1.5, %v2665_v36 }
0x1397   :  { %v3331_v5 = vpop.eup %3330  ;;  %v2651_v55 = vadd.f32 1e-12, %v2647_v29 }
0x1398   :  { %v2673_v39 = vmul.f32 %v3331_v5, %v2650_v59  ;;  %vm2679_vm12 = vweird.f32 %v3331_v5  ;;  %v2667_v50 = vmul.f32 %v3329_v19, %v2666_v47 }
0x1399   :  { %3332 = vrsqrt.f32 %v2651_v55  ;;  %vm2680_vm14 = vmor %vm2678_vm10, %vm2679_vm12  ;;  %vm2688_vm1 = vweird.f32 %v2651_v55  ;;  %vm2820_vm12 = vcmask 254976  }
0x139a   :  { %v2674_v40 = vmul.f32 %v3331_v5, %v2673_v39  ;;  %v2671_v56 = vsel %vm2670_vm15, %v3329_v19, %v2667_v50 }
0x139b   :  { %v2693_v7 = vmul.f32 %v2671_v56, %v4530_v51 }
0x139c   :  { %v2675_v41 = vmul.f32 0.5, %v2674_v40  ;;  %v2634_v43 = vpop.xlane.xlu0 %2633 }
0x139d   :  { %v2644_v46 = vmul.f32 %v2634_v43, %v3502_v14 }
0x139e   :  { %v2676_v42 = vsub.f32 1.5, %v2675_v41 }
0x139f   :  { %v3333_v2 = vpop.eup %3332  ;;  %v2648_v9 = vadd.f32 1e-12, %v2644_v46 }
0x13a0   :  { %v2683_v0 = vmul.f32 %v3333_v2, %v2651_v55  ;;  %v2677_v18 = vmul.f32 %v3331_v5, %v2676_v42  ;;  %vm2689_vm13 = vweird.f32 %v3333_v2 }
0x13a1   :  { %3334 = vrsqrt.f32 %v2648_v9  ;;  %vm2690_vm2 = vmor %vm2688_vm1, %vm2689_vm13  ;;  %vm2658_vm4 = vweird.f32 %v2648_v9 }
0x13a2   :  { %v2684_v61 = vmul.f32 %v3333_v2, %v2683_v0  ;;  %v2681_v38 = vsel %vm2680_vm14, %v3331_v5, %v2677_v18  ;;  %3336 = vrsqrt.f32 %v2775_v17  ;;  %v3148_v5 = vld [vmem:[%s4635_s18] ss:$0 sm:$0xff] }
0x13a3   :  { %v2694_v52 = vmul.f32 %v2681_v38, %v4536_v11  ;;  %v2700_v11 = vmul.f32 %v3142_v6, %v2693_v7 }
0x13a4   :  { %v2685_v14 = vmul.f32 0.5, %v2684_v61 }
0x13a5   :  { %v2701_v53 = vmul.f32 %v3142_v6, %v2694_v52  ;;  %v2707_v8 = vadd.f32 %v3143_v24, %v2700_v11 }
0x13a6   :  { %v2686_v49 = vsub.f32 1.5, %v2685_v14 }
0x13a7   :  { %v3335_v22 = vpop.eup %3334  ;;  %v2708_v10 = vadd.f32 %v3143_v24, %v2701_v53 }
0x13a8   :  { %v2687_v58 = vmul.f32 %v3333_v2, %v2686_v49  ;;  %v2653_v4 = vmul.f32 %v3335_v22, %v2648_v9  ;;  %vm2659_vm3 = vweird.f32 %v3335_v22  ;;  %v3337_v34 = vpop.eup %3336  ;;  %v30_v49 = vstv %s4702_s23 }
0x13a9   :  { %vm2660_vm5 = vmor %vm2658_vm4, %vm2659_vm3  ;;  %v2777_v28 = vmul.f32 %v3337_v34, %v2775_v17  ;;  %vm2783_vm7 = vweird.f32 %v3337_v34  ;;  %31 = vst [vmem:[#allocation2] sm:$0x1] %v30_v49 }
0x13aa   :  { %v2691_v12 = vsel %vm2690_vm2, %v3333_v2, %v2687_v58  ;;  %v2654_v62 = vmul.f32 %v3335_v22, %v2653_v4  ;;  %vm2784_vm8 = vmor %vm2782_vm6, %vm2783_vm7 }
0x13ab   :  { %v2695_v57 = vmul.f32 %v2691_v12, %v4542_v13  ;;  %v2778_v37 = vmul.f32 %v3337_v34, %v2777_v28 }
0x13ac   :  { %v2655_v35 = vmul.f32 0.5, %v2654_v62 }
0x13ad   :  { %v2702_v32 = vmul.f32 %v3142_v6, %v2695_v57  ;;  %v2779_v3 = vmul.f32 0.5, %v2778_v37 }
0x13ae   :  { %v2656_v44 = vsub.f32 1.5, %v2655_v35 }
0x13af   :  { %v2709_v63 = vadd.f32 %v3143_v24, %v2702_v32  ;;  %v2780_v59 = vsub.f32 1.5, %v2779_v3  ;;  %v2808_v40 = vpop.permute.xlu0 %2807 }
0x13b0   :  { %v2657_v21 = vmul.f32 %v3335_v22, %v2656_v44  ;;  %v3149_v58 = vld [vmem:[#allocation2] ss:$0 sm:$0xff] }
0x13b1   :  { %2726 = vmatpush.msra.mxu1 %v2709_v63  ;;  %v2781_v19 = vmul.f32 %v3337_v34, %v2780_v59 }
0x13b2   :  { %v2661_v15 = vsel %vm2660_vm5, %v3335_v22, %v2657_v21 }
0x13b3   :  { %2727 = vmatpush.msra.mxu1 %v2708_v10  ;;  %v2692_v51 = vmul.f32 %v2661_v15, %v4548_v16  ;;  %v3146_v16 = vld [vmem:[%s4633_s21] ss:$0 sm:$0xff]  ;;  %v2785_v33 = vsel %vm2784_vm8, %v3337_v34, %v2781_v19 }
0x13b4   :  { %2799 = vrot.lane.b32.xlu2 %v3146_v16, %s4691_s29  ;;  %v2787_v25 = vperm.slane %v2785_v33, 0 }
0x13b5   :  { %2728 = vmatpush.msra.mxu1 %v2707_v8  ;;  %v2699_v13 = vmul.f32 %v3142_v6, %v2692_v51 }
0x13b6   :  { %2803 = vrot.lane.b32.xlu1 %v2787_v25, %s4691_s29 }
0x13b7   :  { %v2706_v48 = vadd.f32 %v3143_v24, %v2699_v13  ;;  %v2825_v47 = vpop.permute.xlu0 %2824 }
0x13b9   :  { %2729 = vmatpush.msra.mxu1 %v2706_v48 }
0x13ba   :  { %3027 = vmatmul.msk.f32.vlgmr.msra.gmra.mxu1 %vm88_vm0, %v2710_v1 }
0x13bc   :  { %2811 = vrot.lane.b32.xlu2 %v3147_v26, %s4691_s29 }
0x140e   :  { %v2800_v30 = vpop.permute.xlu2 %2799 }
0x1416   :  { %v2812_v46 = vpop.permute.xlu2 %2811 }
0x1428   :  { %v2804_v27 = vpop.permute.xlu1 %2803 }
0x1437   :  { %v2731_v29 = vpop.f32.mrf.mxu1 }
0x1438   :  { %3028 = vmatmul.msk.f32.vlgmr.msra.gmra.mxu3 %vm88_vm0, %v2731_v29  ;;  %vm2828_vm0 = vcmask 257026  }
0x14bb   :  { %v2762_v39 = vpop.f32.mrf.mxu3 }
0x14bc   :  { %v2763_v55 = vadd.f32 %v3148_v5, %v2762_v39 }
0x14be   :  { %3338 = vtanh.f32 %v2763_v55 }
0x14c4   :  { %v3339_v20 = vpop.eup %3338 }
0x14c5   :  { %v2774_v41 = vsub.f32 %v3339_v20, %v3146_v16  ;;  %v2802_v36 = vsub.f32 %v3339_v20, %v2800_v30 }
0x14c7   :  { %v2789_v43 = vmul.f32 %v2787_v25, %v2774_v41  ;;  %v2806_v45 = vmul.f32 %v2804_v27, %v2802_v36 }
0x14c9   :  { %v2810_v42 = vmul.f32 %v2808_v40, %v2806_v45  ;;  %v2793_v54 = vmul.f32 %v3144_v60, %v2789_v43 }
0x14cb   :  { %v2814_v2 = vadd.f32 %v2812_v46, %v2810_v42  ;;  %v2797_v9 = vadd.f32 %v3147_v26, %v2793_v54 }
0x14cd   :  { %v2815_v0 = vmax.f32 %v2814_v2, 0.0  ;;  %v2798_v18 = vmax.f32 %v2797_v9, 0.0 }
0x14cf   :  { %v2827_v61 = vmul.f32 %v2825_v47, %v2815_v0  ;;  %v2819_v50 = vmul.f32 %v3145_v31, %v2798_v18 }
0x14d1   :  { %v2829_v14 = vsel %vm2828_vm0, %v2827_v61, 0.0  ;;  %v2821_v38 = vsel %vm2820_vm12, %v2819_v50, 0.0 }
0x14d2   :  { %2830 = vadd.xlane.f32.xlu1 %v2829_v14  ;;  %2822 = vadd.xlane.f32.xlu2 %v2821_v38 }
0x1545   :  { %v2831_v22 = vpop.xlane.xlu1 %2830  ;;  %v2823_v4 = vpop.xlane.xlu2 %2822 }
0x1546   :  { %v2833_v56 = vrot.slane %v2831_v22, 2 }
0x1548   :  { %v2835_v52 = vadd.f32 %v2833_v56, %v2823_v4 }
0x154a   :  { %v2840_v12 = vadd.f32 %v3149_v58, %v2835_v52 }
0x154c   :  { %2842 = vst.msk [vmem:[%s4703_s14] sm:$0x3] %vm2841_vm9, %v2840_v12 }

</bundles_post_ra>
